<compile_context>
chip_gen: v7x
topology: tpu7x:2x2x1
jax: 0.10.0
libtpu: 0.0.40
codegen_flags: <defaults>
</compile_context>

<pallas_src>
import math
import functools

import jax
import jax.numpy as jnp
from jax import lax
from jax.experimental import pallas as pl
from jax.experimental.pallas import tpu as pltpu

_EPS = 1e-5  # nn.LayerNorm default eps
_SQRT_2_OVER_PI = math.sqrt(2.0 / math.pi)


def _gelu(z):
    # tanh-approximate GELU (EUP tanh); nn.GELU()'s exact-erf differs by <~1e-3,
    # well inside the test tolerance.
    return 0.5 * z * (1.0 + jnp.tanh(_SQRT_2_OVER_PI * (z + 0.044715 * (z * z * z))))


def _gmlp_kernel(x_ref, g1_ref, be1_ref,
                 w1a_ref, b1a_ref, w1b_ref, b1b_ref,
                 g2_ref, be2_ref, wsp_ref, bsp_ref,
                 w2_ref, b2_ref,
                 o_ref, *, seq_len, bt, d_model, hffn, fused):
    """One batch tile: x block is (seq_len, bt, d_model); bt % 8 == 0."""
    # Layout-preserving merge of the two leading dims: token-major rows r = i*bt + b.
    x2 = x_ref[...].reshape(seq_len * bt, d_model)          # (tokens, dm) f32

    # --- LayerNorm over d_model (f32 statistics) ---
    mu = jnp.mean(x2, axis=-1, keepdims=True)
    var = jnp.mean((x2 - mu) ** 2, axis=-1, keepdims=True)
    xn = (x2 - mu) * lax.rsqrt(var + _EPS)
    xn = xn * g1_ref[...] + be1_ref[...]
    xn_b = xn.astype(jnp.bfloat16)                          # MXU inputs in bf16

    # --- z2 branch first (halves the live intermediate footprint):
    #     proj1 second half + GELU + SGU LayerNorm ---
    z2 = jnp.dot(xn_b, w1b_ref[...], preferred_element_type=jnp.float32) + b1b_ref[...]
    z2 = _gelu(z2)
    mu2 = jnp.mean(z2, axis=-1, keepdims=True)
    var2 = jnp.mean((z2 - mu2) ** 2, axis=-1, keepdims=True)
    z2n = (z2 - mu2) * lax.rsqrt(var2 + _EPS)
    z2n = z2n * g2_ref[...] + be2_ref[...]                  # (tokens, hffn) f32

    # --- Spatial Gating Unit: ONE fused matmul over all batch elements ---
    if fused:
        # wsp_ref: (seq, seq).  (seq*bt, hffn) -> (seq, bt*hffn) fuses batch and
        # feature into the matmul N dimension; contraction is over seq only.
        z2f = z2n.reshape(seq_len, bt * hffn).astype(jnp.bfloat16)
        zsp = jnp.dot(wsp_ref[...], z2f,
                      preferred_element_type=jnp.float32) + bsp_ref[...]
        zsp = zsp.reshape(seq_len * bt, hffn)               # back to token-major
    else:
        # Fallback: wsp_ref holds kron(wsp, I_bt) of shape (seq*bt, seq*bt) and
        # bsp_ref is (seq*bt, 1): identical math, expressed directly in the
        # token-major layout (no lane<->sublane reshapes), still a single matmul.
        zsp = jnp.dot(wsp_ref[...], z2n.astype(jnp.bfloat16),
                      preferred_element_type=jnp.float32) + bsp_ref[...]

    # --- z1 branch: proj1 first half + GELU ---
    z1 = jnp.dot(xn_b, w1a_ref[...], preferred_element_type=jnp.float32) + b1a_ref[...]
    z1 = _gelu(z1)

    # --- gating (bf16), proj2, residual (f32) ---
    gated = z1.astype(jnp.bfloat16) * zsp.astype(jnp.bfloat16)
    y = jnp.dot(gated, w2_ref[...], preferred_element_type=jnp.float32) + b2_ref[...]
    y = y + x2
    o_ref[...] = y.reshape(seq_len, bt, d_model).astype(o_ref.dtype)


def _round_up(n, m):
    return ((n + m - 1) // m) * m


def _pick_batch_tile(padded_batch):
    """padded_batch is a multiple of 8.  Prefer tiles that leave >= 2 grid steps
    (keeps both v7x TensorCores busy and gives the pipeline work to overlap)."""
    if padded_batch <= 8:
        return padded_batch
    if padded_batch % 16 == 0 and padded_batch >= 32:
        return 16
    return 8


def _vmem_limit_bytes():
    """Generation-aware VMEM budget: leave headroom below the physical capacity."""
    try:
        cap = pltpu.get_tpu_info().vmem_capacity_bytes
    except Exception:
        return None                                   # fall back to compiler default
    return min(100 * 1024 * 1024, int(cap * 3 // 4))  # ~48 MiB on v7x, ~96 MiB on v5e/v6e


def gmlp_block(x, params, *, batch_tile=None, interpret=False):
    """x: [seq_len, batch, d_model]  ->  [seq_len, batch, d_model]"""
    seq_len, batch, d_model = x.shape
    d_ffn = params["w1"].shape[1]
    hffn = d_ffn // 2

    # Pad batch to a multiple of 8 so the in-kernel reshapes stay layout-preserving
    # (bt fills the f32 sublane tile).  Padded rows are computed then discarded.
    padded_batch = max(8, _round_up(batch, 8))
    xp = x if padded_batch == batch else jnp.pad(
        x, ((0, 0), (0, padded_batch - batch), (0, 0)))

    bt = batch_tile if batch_tile is not None else _pick_batch_tile(padded_batch)
    assert padded_batch % bt == 0 and bt % 8 == 0, "bad batch tile"

    bf16 = jnp.bfloat16
    # Split proj1 into its z1/z2 halves outside the kernel (no in-kernel lane
    # slicing) and store matmul weights in bf16 (halves weight HBM/VMEM traffic).
    w1, b1 = params["w1"], params["b1"]
    w1a = w1[:, :hffn].astype(bf16)
    w1b = w1[:, hffn:].astype(bf16)
    b1a = b1[:, :hffn]
    b1b = b1[:, hffn:]
    w2 = params["w2"].astype(bf16)

    grid = (padded_batch // bt,)
    vmem_limit = _vmem_limit_bytes()

    def _const_spec(shape, single_buffer):
        zeros = (0,) * len(shape)

        def idx(b):
            return zeros

        if single_buffer and hasattr(pl, "Buffered"):
            try:
                # Constant across the grid: one VMEM copy is enough.
                return pl.BlockSpec(shape, idx, pipeline_mode=pl.Buffered(buffer_count=1))
            except TypeError:
                pass
        return pl.BlockSpec(shape, idx)

    def _run(fused, single_buffer):
        if fused:
            wsp_in = params["wsp"].astype(bf16)                       # (seq, seq)
            bsp_in = params["bsp"]                                    # (seq, 1)
        else:
            # Block-diagonal expansion for the reshape-free fallback path.
            wsp_in = jnp.kron(params["wsp"],
                              jnp.eye(bt, dtype=params["wsp"].dtype)).astype(bf16)
            bsp_in = jnp.repeat(params["bsp"], bt, axis=0)            # (seq*bt, 1)

        kernel = functools.partial(_gmlp_kernel, seq_len=seq_len, bt=bt,
                                   d_model=d_model, hffn=hffn, fused=fused)
        cs = lambda s: _const_spec(s, single_buffer)

        out = pl.pallas_call(
            kernel,
            out_shape=jax.ShapeDtypeStruct((seq_len, padded_batch, d_model), x.dtype),
            grid=grid,
            in_specs=[
                pl.BlockSpec((seq_len, bt, d_model), lambda b: (0, b, 0)),  # x
                cs((1, d_model)), cs((1, d_model)),                          # LN1 gamma/beta
                cs((d_model, hffn)), cs((1, hffn)),                          # proj1 z1 half
                cs((d_model, hffn)), cs((1, hffn)),                          # proj1 z2 half
                cs((1, hffn)), cs((1, hffn)),                                # SGU LN gamma/beta
                cs(tuple(wsp_in.shape)), cs(tuple(bsp_in.shape)),            # spatial W, bias
                cs((hffn, d_model)), cs((1, d_model)),                       # proj2 W, b
            ],
            out_specs=pl.BlockSpec((seq_len, bt, d_model), lambda b: (0, b, 0)),
            compiler_params=pltpu.CompilerParams(
                dimension_semantics=("parallel",),
                vmem_limit_bytes=vmem_limit,
            ),
            interpret=interpret,
        )(xp, params["g1"], params["be1"],
          w1a, b1a, w1b, b1b,
          params["g2"], params["be2"], wsp_in, bsp_in,
          w2, params["b2"])
        return jax.block_until_ready(out)

    # Try the fused single-matmul SGU first; fall back to the reshape-free
    # formulation (and/or default double-buffered constants) if lowering rejects it.
    out = None
    last_err = None
    for fused, single_buffer in ((True, True), (True, False),
                                 (False, True), (False, False)):
        try:
            out = _run(fused, single_buffer)
            break
        except Exception as e:  # lowering / compile failure -> try the next config
            last_err = e
    if out is None:
        raise last_err

    if padded_batch != batch:
        out = out[:, :batch, :]
    return out


def _reference(x, p):
    """Plain-JAX f32 reference mirroring the PyTorch forward (tiny_attn=False, mask=None)."""
    def ln(v, g, b):
        mu = jnp.mean(v, -1, keepdims=True)
        var = jnp.mean((v - mu) ** 2, -1, keepdims=True)
        return (v - mu) * lax.rsqrt(var + _EPS) * g + b

    shortcut = x
    xn = ln(x, p["g1"][0], p["be1"][0])
    z = xn @ p["w1"] + p["b1"][0]
    z = 0.5 * z * (1.0 + lax.erf(z / math.sqrt(2.0)))       # exact GELU (PyTorch default)
    hffn = z.shape[-1] // 2
    z1, z2 = z[..., :hffn], z[..., hffn:]
    z2 = ln(z2, p["g2"][0], p["be2"][0])
    z2 = jnp.einsum("ij,jbd->ibd", p["wsp"], z2) + p["bsp"][:, :, None]
    g = z1 * z2
    y = g @ p["w2"] + p["b2"][0]
    return y + shortcut


def init_params(key, d_model, d_ffn, seq_len):
    hffn = d_ffn // 2
    ks = jax.random.split(key, 6)
    u = lambda k, shape, bound: jax.random.uniform(
        k, shape, jnp.float32, minval=-bound, maxval=bound)
    return {
        # LayerNorm(d_model): weight=1, bias=0
        "g1":  jnp.ones((1, d_model), jnp.float32),
        "be1": jnp.zeros((1, d_model), jnp.float32),
        # proj1: Linear(d_model, d_ffn)  (stored as [in, out])
        "w1": u(ks[0], (d_model, d_ffn), 1.0 / math.sqrt(d_model)),
        "b1": u(ks[1], (1, d_ffn),       1.0 / math.sqrt(d_model)),
        # SGU LayerNorm(d_ffn // 2)
        "g2":  jnp.ones((1, hffn), jnp.float32),
        "be2": jnp.zeros((1, hffn), jnp.float32),
        # SGU spatial weight uniform(-0.01, 0.01), bias = ones(seq_len)
        "wsp": u(ks[2], (seq_len, seq_len), 0.01),
        "bsp": jnp.ones((seq_len, 1), jnp.float32),
        # proj2: Linear(d_ffn // 2, d_model)
        "w2": u(ks[3], (hffn, d_model), 1.0 / math.sqrt(hffn)),
        "b2": u(ks[4], (1, d_model),    1.0 / math.sqrt(hffn)),
    }


if __name__ == "__main__":
    seq_len, batch, d_model, d_ffn = 8, 2, 32, 64

    key = jax.random.PRNGKey(0)
    kx, kp = jax.random.split(key)
    x = jax.random.normal(kx, (seq_len, batch, d_model), jnp.float32)
    params = init_params(kp, d_model, d_ffn, seq_len)

    out = gmlp_block(x, params)
    out = jax.block_until_ready(out)

    ref = _reference(x, params)
    assert out.shape == (seq_len, batch, d_model)
    # Kernel uses bf16 MXU inputs with f32 accumulation and tanh-approx GELU,
    # hence the tolerance vs the pure-f32 exact-erf reference.
    assert jnp.allclose(out, ref, atol=3e-2, rtol=3e-2), "mismatch vs JAX reference"

    print("KERNEL_OK")
</pallas_src>

<mosaic_0001>
module attributes {stable_mosaic.version = 11 : i64} {
  func.func @_gmlp_kernel(%arg0: i32, %arg1: memref<8x8x32xf32, #tpu.memory_space<vmem>>, %arg2: memref<1x32xf32, #tpu.memory_space<vmem>>, %arg3: memref<1x32xf32, #tpu.memory_space<vmem>>, %arg4: memref<32x32xbf16, #tpu.memory_space<vmem>>, %arg5: memref<1x32xf32, #tpu.memory_space<vmem>>, %arg6: memref<32x32xbf16, #tpu.memory_space<vmem>>, %arg7: memref<1x32xf32, #tpu.memory_space<vmem>>, %arg8: memref<1x32xf32, #tpu.memory_space<vmem>>, %arg9: memref<1x32xf32, #tpu.memory_space<vmem>>, %arg10: memref<8x8xbf16, #tpu.memory_space<vmem>>, %arg11: memref<8x1xf32, #tpu.memory_space<vmem>>, %arg12: memref<32x32xbf16, #tpu.memory_space<vmem>>, %arg13: memref<1x32xf32, #tpu.memory_space<vmem>>, %arg14: memref<8x8x32xf32, #tpu.memory_space<vmem>>) attributes {dimension_semantics = [#tpu.dimension_semantics<parallel>], iteration_bounds = array<i64: 1>, scalar_prefetch = 0 : i64, scratch_operands = 0 : i64, tpu.core_type = #tpu.core_type<tc>, window_params = [{transform_indices = @transform_0, window_bounds = array<i64: 8, 8, 32>}, {pipeline_mode = #tpu.pipeline_mode<synchronous>, transform_indices = @transform_1, window_bounds = array<i64: 1, 32>}, {pipeline_mode = #tpu.pipeline_mode<synchronous>, transform_indices = @transform_2, window_bounds = array<i64: 1, 32>}, {pipeline_mode = #tpu.pipeline_mode<synchronous>, transform_indices = @transform_3, window_bounds = array<i64: 32, 32>}, {pipeline_mode = #tpu.pipeline_mode<synchronous>, transform_indices = @transform_4, window_bounds = array<i64: 1, 32>}, {pipeline_mode = #tpu.pipeline_mode<synchronous>, transform_indices = @transform_5, window_bounds = array<i64: 32, 32>}, {pipeline_mode = #tpu.pipeline_mode<synchronous>, transform_indices = @transform_6, window_bounds = array<i64: 1, 32>}, {pipeline_mode = #tpu.pipeline_mode<synchronous>, transform_indices = @transform_7, window_bounds = array<i64: 1, 32>}, {pipeline_mode = #tpu.pipeline_mode<synchronous>, transform_indices = @transform_8, window_bounds = array<i64: 1, 32>}, {pipeline_mode = #tpu.pipeline_mode<synchronous>, transform_indices = @transform_9, window_bounds = array<i64: 8, 8>}, {pipeline_mode = #tpu.pipeline_mode<synchronous>, transform_indices = @transform_10, window_bounds = array<i64: 8, 1>}, {pipeline_mode = #tpu.pipeline_mode<synchronous>, transform_indices = @transform_11, window_bounds = array<i64: 32, 32>}, {pipeline_mode = #tpu.pipeline_mode<synchronous>, transform_indices = @transform_12, window_bounds = array<i64: 1, 32>}, {transform_indices = @transform_13, window_bounds = array<i64: 8, 8, 32>}]} {
    %c0 = arith.constant 0 : index
    %c0_0 = arith.constant 0 : index
    %c0_1 = arith.constant 0 : index
    %0 = vector.load %arg1[%c0, %c0_0, %c0_1] : memref<8x8x32xf32, #tpu.memory_space<vmem>>, vector<8x8x32xf32>
    %1 = vector.shape_cast %0 : vector<8x8x32xf32> to vector<64x32xf32>
    %cst = arith.constant dense<0.000000e+00> : vector<64xf32>
    %2 = vector.multi_reduction <add>, %1, %cst [1] : vector<64x32xf32> to vector<64xf32>
    %3 = vector.shape_cast %2 : vector<64xf32> to vector<64x1xf32>
    %cst_2 = arith.constant 3.200000e+01 : f32
    %4 = vector.broadcast %cst_2 : f32 to vector<64x1xf32>
    %5 = arith.divf %3, %4 : vector<64x1xf32>
    %6 = vector.broadcast %5 : vector<64x1xf32> to vector<64x32xf32>
    %7 = arith.subf %1, %6 : vector<64x32xf32>
    %8 = arith.mulf %7, %7 : vector<64x32xf32>
    %cst_3 = arith.constant dense<0.000000e+00> : vector<64xf32>
    %9 = vector.multi_reduction <add>, %8, %cst_3 [1] : vector<64x32xf32> to vector<64xf32>
    %10 = vector.shape_cast %9 : vector<64xf32> to vector<64x1xf32>
    %cst_4 = arith.constant 3.200000e+01 : f32
    %11 = vector.broadcast %cst_4 : f32 to vector<64x1xf32>
    %12 = arith.divf %10, %11 : vector<64x1xf32>
    %13 = vector.broadcast %5 : vector<64x1xf32> to vector<64x32xf32>
    %14 = arith.subf %1, %13 : vector<64x32xf32>
    %cst_5 = arith.constant 9.99999974E-6 : f32
    %15 = vector.broadcast %cst_5 : f32 to vector<64x1xf32>
    %16 = arith.addf %12, %15 : vector<64x1xf32>
    %17 = math.rsqrt %16 : vector<64x1xf32>
    %18 = vector.broadcast %17 : vector<64x1xf32> to vector<64x32xf32>
    %19 = arith.mulf %14, %18 : vector<64x32xf32>
    %c0_6 = arith.constant 0 : index
    %c0_7 = arith.constant 0 : index
    %20 = vector.load %arg2[%c0_6, %c0_7] : memref<1x32xf32, #tpu.memory_space<vmem>>, vector<1x32xf32>
    %21 = vector.broadcast %20 : vector<1x32xf32> to vector<64x32xf32>
    %22 = arith.mulf %19, %21 : vector<64x32xf32>
    %c0_8 = arith.constant 0 : index
    %c0_9 = arith.constant 0 : index
    %23 = vector.load %arg3[%c0_8, %c0_9] : memref<1x32xf32, #tpu.memory_space<vmem>>, vector<1x32xf32>
    %24 = vector.broadcast %23 : vector<1x32xf32> to vector<64x32xf32>
    %25 = arith.addf %22, %24 : vector<64x32xf32>
    %26 = arith.truncf %25 : vector<64x32xf32> to vector<64x32xbf16>
    %c0_10 = arith.constant 0 : index
    %c0_11 = arith.constant 0 : index
    %27 = vector.load %arg6[%c0_10, %c0_11] : memref<32x32xbf16, #tpu.memory_space<vmem>>, vector<32x32xbf16>
    %cst_12 = arith.constant dense<0.000000e+00> : vector<64x32xf32>
    %28 = tpu.matmul %26, %27, %cst_12 {dimension_numbers = #tpu.dot_dimension_numbers<[1], [0], [0], [1], [0, 0, 1, 1], [], []>} : vector<64x32xbf16>, vector<32x32xbf16>, vector<64x32xf32> -> vector<64x32xf32>
    %c0_13 = arith.constant 0 : index
    %c0_14 = arith.constant 0 : index
    %29 = vector.load %arg7[%c0_13, %c0_14] : memref<1x32xf32, #tpu.memory_space<vmem>>, vector<1x32xf32>
    %30 = vector.broadcast %29 : vector<1x32xf32> to vector<64x32xf32>
    %31 = arith.addf %28, %30 : vector<64x32xf32>
    %cst_15 = arith.constant 5.000000e-01 : f32
    %32 = vector.broadcast %cst_15 : f32 to vector<64x32xf32>
    %33 = arith.mulf %32, %31 : vector<64x32xf32>
    %34 = arith.mulf %31, %31 : vector<64x32xf32>
    %35 = arith.mulf %34, %31 : vector<64x32xf32>
    %cst_16 = arith.constant 4.471500e-02 : f32
    %36 = vector.broadcast %cst_16 : f32 to vector<64x32xf32>
    %37 = arith.mulf %36, %35 : vector<64x32xf32>
    %38 = arith.addf %31, %37 : vector<64x32xf32>
    %cst_17 = arith.constant 0.797884583 : f32
    %39 = vector.broadcast %cst_17 : f32 to vector<64x32xf32>
    %40 = arith.mulf %39, %38 : vector<64x32xf32>
    %41 = math.tanh %40 : vector<64x32xf32>
    %cst_18 = arith.constant 1.000000e+00 : f32
    %42 = vector.broadcast %cst_18 : f32 to vector<64x32xf32>
    %43 = arith.addf %42, %41 : vector<64x32xf32>
    %44 = arith.mulf %33, %43 : vector<64x32xf32>
    %cst_19 = arith.constant dense<0.000000e+00> : vector<64xf32>
    %45 = vector.multi_reduction <add>, %44, %cst_19 [1] : vector<64x32xf32> to vector<64xf32>
    %46 = vector.shape_cast %45 : vector<64xf32> to vector<64x1xf32>
    %cst_20 = arith.constant 3.200000e+01 : f32
    %47 = vector.broadcast %cst_20 : f32 to vector<64x1xf32>
    %48 = arith.divf %46, %47 : vector<64x1xf32>
    %49 = vector.broadcast %48 : vector<64x1xf32> to vector<64x32xf32>
    %50 = arith.subf %44, %49 : vector<64x32xf32>
    %51 = arith.mulf %50, %50 : vector<64x32xf32>
    %cst_21 = arith.constant dense<0.000000e+00> : vector<64xf32>
    %52 = vector.multi_reduction <add>, %51, %cst_21 [1] : vector<64x32xf32> to vector<64xf32>
    %53 = vector.shape_cast %52 : vector<64xf32> to vector<64x1xf32>
    %cst_22 = arith.constant 3.200000e+01 : f32
    %54 = vector.broadcast %cst_22 : f32 to vector<64x1xf32>
    %55 = arith.divf %53, %54 : vector<64x1xf32>
    %56 = vector.broadcast %48 : vector<64x1xf32> to vector<64x32xf32>
    %57 = arith.subf %44, %56 : vector<64x32xf32>
    %cst_23 = arith.constant 9.99999974E-6 : f32
    %58 = vector.broadcast %cst_23 : f32 to vector<64x1xf32>
    %59 = arith.addf %55, %58 : vector<64x1xf32>
    %60 = math.rsqrt %59 : vector<64x1xf32>
    %61 = vector.broadcast %60 : vector<64x1xf32> to vector<64x32xf32>
    %62 = arith.mulf %57, %61 : vector<64x32xf32>
    %c0_24 = arith.constant 0 : index
    %c0_25 = arith.constant 0 : index
    %63 = vector.load %arg8[%c0_24, %c0_25] : memref<1x32xf32, #tpu.memory_space<vmem>>, vector<1x32xf32>
    %64 = vector.broadcast %63 : vector<1x32xf32> to vector<64x32xf32>
    %65 = arith.mulf %62, %64 : vector<64x32xf32>
    %c0_26 = arith.constant 0 : index
    %c0_27 = arith.constant 0 : index
    %66 = vector.load %arg9[%c0_26, %c0_27] : memref<1x32xf32, #tpu.memory_space<vmem>>, vector<1x32xf32>
    %67 = vector.broadcast %66 : vector<1x32xf32> to vector<64x32xf32>
    %68 = arith.addf %65, %67 : vector<64x32xf32>
    %69 = vector.shape_cast %68 : vector<64x32xf32> to vector<8x256xf32>
    %70 = arith.truncf %69 : vector<8x256xf32> to vector<8x256xbf16>
    %c0_28 = arith.constant 0 : index
    %c0_29 = arith.constant 0 : index
    %71 = vector.load %arg10[%c0_28, %c0_29] : memref<8x8xbf16, #tpu.memory_space<vmem>>, vector<8x8xbf16>
    %cst_30 = arith.constant dense<0.000000e+00> : vector<8x256xf32>
    %72 = tpu.matmul %71, %70, %cst_30 {dimension_numbers = #tpu.dot_dimension_numbers<[1], [0], [0], [1], [0, 0, 1, 1], [], []>} : vector<8x8xbf16>, vector<8x256xbf16>, vector<8x256xf32> -> vector<8x256xf32>
    %c0_31 = arith.constant 0 : index
    %c0_32 = arith.constant 0 : index
    %73 = vector.load %arg11[%c0_31, %c0_32] : memref<8x1xf32, #tpu.memory_space<vmem>>, vector<8x1xf32>
    %74 = vector.broadcast %73 : vector<8x1xf32> to vector<8x256xf32>
    %75 = arith.addf %72, %74 : vector<8x256xf32>
    %76 = vector.shape_cast %75 : vector<8x256xf32> to vector<64x32xf32>
    %c0_33 = arith.constant 0 : index
    %c0_34 = arith.constant 0 : index
    %77 = vector.load %arg4[%c0_33, %c0_34] : memref<32x32xbf16, #tpu.memory_space<vmem>>, vector<32x32xbf16>
    %cst_35 = arith.constant dense<0.000000e+00> : vector<64x32xf32>
    %78 = tpu.matmul %26, %77, %cst_35 {dimension_numbers = #tpu.dot_dimension_numbers<[1], [0], [0], [1], [0, 0, 1, 1], [], []>} : vector<64x32xbf16>, vector<32x32xbf16>, vector<64x32xf32> -> vector<64x32xf32>
    %c0_36 = arith.constant 0 : index
    %c0_37 = arith.constant 0 : index
    %79 = vector.load %arg5[%c0_36, %c0_37] : memref<1x32xf32, #tpu.memory_space<vmem>>, vector<1x32xf32>
    %80 = vector.broadcast %79 : vector<1x32xf32> to vector<64x32xf32>
    %81 = arith.addf %78, %80 : vector<64x32xf32>
    %cst_38 = arith.constant 5.000000e-01 : f32
    %82 = vector.broadcast %cst_38 : f32 to vector<64x32xf32>
    %83 = arith.mulf %82, %81 : vector<64x32xf32>
    %84 = arith.mulf %81, %81 : vector<64x32xf32>
    %85 = arith.mulf %84, %81 : vector<64x32xf32>
    %cst_39 = arith.constant 4.471500e-02 : f32
    %86 = vector.broadcast %cst_39 : f32 to vector<64x32xf32>
    %87 = arith.mulf %86, %85 : vector<64x32xf32>
    %88 = arith.addf %81, %87 : vector<64x32xf32>
    %cst_40 = arith.constant 0.797884583 : f32
    %89 = vector.broadcast %cst_40 : f32 to vector<64x32xf32>
    %90 = arith.mulf %89, %88 : vector<64x32xf32>
    %91 = math.tanh %90 : vector<64x32xf32>
    %cst_41 = arith.constant 1.000000e+00 : f32
    %92 = vector.broadcast %cst_41 : f32 to vector<64x32xf32>
    %93 = arith.addf %92, %91 : vector<64x32xf32>
    %94 = arith.mulf %83, %93 : vector<64x32xf32>
    %95 = arith.truncf %94 : vector<64x32xf32> to vector<64x32xbf16>
    %96 = arith.truncf %76 : vector<64x32xf32> to vector<64x32xbf16>
    %97 = arith.mulf %95, %96 : vector<64x32xbf16>
    %c0_42 = arith.constant 0 : index
    %c0_43 = arith.constant 0 : index
    %98 = vector.load %arg12[%c0_42, %c0_43] : memref<32x32xbf16, #tpu.memory_space<vmem>>, vector<32x32xbf16>
    %cst_44 = arith.constant dense<0.000000e+00> : vector<64x32xf32>
    %99 = tpu.matmul %97, %98, %cst_44 {dimension_numbers = #tpu.dot_dimension_numbers<[1], [0], [0], [1], [0, 0, 1, 1], [], []>} : vector<64x32xbf16>, vector<32x32xbf16>, vector<64x32xf32> -> vector<64x32xf32>
    %c0_45 = arith.constant 0 : index
    %c0_46 = arith.constant 0 : index
    %100 = vector.load %arg13[%c0_45, %c0_46] : memref<1x32xf32, #tpu.memory_space<vmem>>, vector<1x32xf32>
    %101 = vector.broadcast %100 : vector<1x32xf32> to vector<64x32xf32>
    %102 = arith.addf %99, %101 : vector<64x32xf32>
    %103 = arith.addf %102, %1 : vector<64x32xf32>
    %104 = vector.shape_cast %103 : vector<64x32xf32> to vector<8x8x32xf32>
    %c0_47 = arith.constant 0 : index
    %c0_48 = arith.constant 0 : index
    %c0_49 = arith.constant 0 : index
    %105 = vector.load %arg14[%c0_47, %c0_48, %c0_49] : memref<8x8x32xf32, #tpu.memory_space<vmem>>, vector<8x8x32xf32>
    tpu.vector_store %arg14[%c0_47, %c0_48, %c0_49], %104 {strides = array<i32>} : memref<8x8x32xf32, #tpu.memory_space<vmem>>, vector<8x8x32xf32>,
    return
  }
  func.func @transform_0(%arg0: i32) -> (i32, i32, i32) {
    %c0_i32 = arith.constant 0 : i32
    %c0_i32_0 = arith.constant 0 : i32
    %c0_i32_1 = arith.constant 0 : i32
    return %c0_i32, %arg0, %c0_i32_0 : i32, i32, i32
  }
  func.func @transform_1(%arg0: i32) -> (i32, i32) {
    %c0_i32 = arith.constant 0 : i32
    %c0_i32_0 = arith.constant 0 : i32
    %c0_i32_1 = arith.constant 0 : i32
    return %c0_i32, %c0_i32_0 : i32, i32
  }
  func.func @transform_2(%arg0: i32) -> (i32, i32) {
    %c0_i32 = arith.constant 0 : i32
    %c0_i32_0 = arith.constant 0 : i32
    %c0_i32_1 = arith.constant 0 : i32
    return %c0_i32, %c0_i32_0 : i32, i32
  }
  func.func @transform_3(%arg0: i32) -> (i32, i32) {
    %c0_i32 = arith.constant 0 : i32
    %c0_i32_0 = arith.constant 0 : i32
    %c0_i32_1 = arith.constant 0 : i32
    return %c0_i32, %c0_i32_0 : i32, i32
  }
  func.func @transform_4(%arg0: i32) -> (i32, i32) {
    %c0_i32 = arith.constant 0 : i32
    %c0_i32_0 = arith.constant 0 : i32
    %c0_i32_1 = arith.constant 0 : i32
    return %c0_i32, %c0_i32_0 : i32, i32
  }
  func.func @transform_5(%arg0: i32) -> (i32, i32) {
    %c0_i32 = arith.constant 0 : i32
    %c0_i32_0 = arith.constant 0 : i32
    %c0_i32_1 = arith.constant 0 : i32
    return %c0_i32, %c0_i32_0 : i32, i32
  }
  func.func @transform_6(%arg0: i32) -> (i32, i32) {
    %c0_i32 = arith.constant 0 : i32
    %c0_i32_0 = arith.constant 0 : i32
    %c0_i32_1 = arith.constant 0 : i32
    return %c0_i32, %c0_i32_0 : i32, i32
  }
  func.func @transform_7(%arg0: i32) -> (i32, i32) {
    %c0_i32 = arith.constant 0 : i32
    %c0_i32_0 = arith.constant 0 : i32
    %c0_i32_1 = arith.constant 0 : i32
    return %c0_i32, %c0_i32_0 : i32, i32
  }
  func.func @transform_8(%arg0: i32) -> (i32, i32) {
    %c0_i32 = arith.constant 0 : i32
    %c0_i32_0 = arith.constant 0 : i32
    %c0_i32_1 = arith.constant 0 : i32
    return %c0_i32, %c0_i32_0 : i32, i32
  }
  func.func @transform_9(%arg0: i32) -> (i32, i32) {
    %c0_i32 = arith.constant 0 : i32
    %c0_i32_0 = arith.constant 0 : i32
    %c0_i32_1 = arith.constant 0 : i32
    return %c0_i32, %c0_i32_0 : i32, i32
  }
  func.func @transform_10(%arg0: i32) -> (i32, i32) {
    %c0_i32 = arith.constant 0 : i32
    %c0_i32_0 = arith.constant 0 : i32
    %c0_i32_1 = arith.constant 0 : i32
    return %c0_i32, %c0_i32_0 : i32, i32
  }
  func.func @transform_11(%arg0: i32) -> (i32, i32) {
    %c0_i32 = arith.constant 0 : i32
    %c0_i32_0 = arith.constant 0 : i32
    %c0_i32_1 = arith.constant 0 : i32
    return %c0_i32, %c0_i32_0 : i32, i32
  }
  func.func @transform_12(%arg0: i32) -> (i32, i32) {
    %c0_i32 = arith.constant 0 : i32
    %c0_i32_0 = arith.constant 0 : i32
    %c0_i32_1 = arith.constant 0 : i32
    return %c0_i32, %c0_i32_0 : i32, i32
  }
  func.func @transform_13(%arg0: i32) -> (i32, i32, i32) {
    %c0_i32 = arith.constant 0 : i32
    %c0_i32_0 = arith.constant 0 : i32
    %c0_i32_1 = arith.constant 0 : i32
    return %c0_i32, %arg0, %c0_i32_0 : i32, i32, i32
  }
}

module attributes {stable_mosaic.version = 11 : i64} {
  func.func @_gmlp_kernel(%arg0: i32, %arg1: memref<8x8x32xf32, #tpu.memory_space<vmem>>, %arg2: memref<1x32xf32, #tpu.memory_space<vmem>>, %arg3: memref<1x32xf32, #tpu.memory_space<vmem>>, %arg4: memref<32x32xbf16, #tpu.memory_space<vmem>>, %arg5: memref<1x32xf32, #tpu.memory_space<vmem>>, %arg6: memref<32x32xbf16, #tpu.memory_space<vmem>>, %arg7: memref<1x32xf32, #tpu.memory_space<vmem>>, %arg8: memref<1x32xf32, #tpu.memory_space<vmem>>, %arg9: memref<1x32xf32, #tpu.memory_space<vmem>>, %arg10: memref<8x8xbf16, #tpu.memory_space<vmem>>, %arg11: memref<8x1xf32, #tpu.memory_space<vmem>>, %arg12: memref<32x32xbf16, #tpu.memory_space<vmem>>, %arg13: memref<1x32xf32, #tpu.memory_space<vmem>>, %arg14: memref<8x8x32xf32, #tpu.memory_space<vmem>>) attributes {dimension_semantics = [#tpu.dimension_semantics<parallel>], iteration_bounds = array<i64: 1>, scalar_prefetch = 0 : i64, scratch_operands = 0 : i64, tpu.core_type = #tpu.core_type<tc>, window_params = [{transform_indices = @transform_0, window_bounds = array<i64: 8, 8, 32>}, {pipeline_mode = #tpu.pipeline_mode<synchronous>, transform_indices = @transform_1, window_bounds = array<i64: 1, 32>}, {pipeline_mode = #tpu.pipeline_mode<synchronous>, transform_indices = @transform_2, window_bounds = array<i64: 1, 32>}, {pipeline_mode = #tpu.pipeline_mode<synchronous>, transform_indices = @transform_3, window_bounds = array<i64: 32, 32>}, {pipeline_mode = #tpu.pipeline_mode<synchronous>, transform_indices = @transform_4, window_bounds = array<i64: 1, 32>}, {pipeline_mode = #tpu.pipeline_mode<synchronous>, transform_indices = @transform_5, window_bounds = array<i64: 32, 32>}, {pipeline_mode = #tpu.pipeline_mode<synchronous>, transform_indices = @transform_6, window_bounds = array<i64: 1, 32>}, {pipeline_mode = #tpu.pipeline_mode<synchronous>, transform_indices = @transform_7, window_bounds = array<i64: 1, 32>}, {pipeline_mode = #tpu.pipeline_mode<synchronous>, transform_indices = @transform_8, window_bounds = array<i64: 1, 32>}, {pipeline_mode = #tpu.pipeline_mode<synchronous>, transform_indices = @transform_9, window_bounds = array<i64: 8, 8>}, {pipeline_mode = #tpu.pipeline_mode<synchronous>, transform_indices = @transform_10, window_bounds = array<i64: 8, 1>}, {pipeline_mode = #tpu.pipeline_mode<synchronous>, transform_indices = @transform_11, window_bounds = array<i64: 32, 32>}, {pipeline_mode = #tpu.pipeline_mode<synchronous>, transform_indices = @transform_12, window_bounds = array<i64: 1, 32>}, {transform_indices = @transform_13, window_bounds = array<i64: 8, 8, 32>}]} {
    %c0 = arith.constant 0 : index
    %c0_0 = arith.constant 0 : index
    %c0_1 = arith.constant 0 : index
    %0 = vector.load %arg1[%c0, %c0_0, %c0_1] : memref<8x8x32xf32, #tpu.memory_space<vmem>>, vector<8x8x32xf32>
    %1 = vector.shape_cast %0 : vector<8x8x32xf32> to vector<64x32xf32>
    %cst = arith.constant dense<0.000000e+00> : vector<64xf32>
    %2 = vector.multi_reduction <add>, %1, %cst [1] : vector<64x32xf32> to vector<64xf32>
    %3 = vector.shape_cast %2 : vector<64xf32> to vector<64x1xf32>
    %cst_2 = arith.constant 3.200000e+01 : f32
    %4 = vector.broadcast %cst_2 : f32 to vector<64x1xf32>
    %5 = arith.divf %3, %4 : vector<64x1xf32>
    %6 = vector.broadcast %5 : vector<64x1xf32> to vector<64x32xf32>
    %7 = arith.subf %1, %6 : vector<64x32xf32>
    %8 = arith.mulf %7, %7 : vector<64x32xf32>
    %cst_3 = arith.constant dense<0.000000e+00> : vector<64xf32>
    %9 = vector.multi_reduction <add>, %8, %cst_3 [1] : vector<64x32xf32> to vector<64xf32>
    %10 = vector.shape_cast %9 : vector<64xf32> to vector<64x1xf32>
    %cst_4 = arith.constant 3.200000e+01 : f32
    %11 = vector.broadcast %cst_4 : f32 to vector<64x1xf32>
    %12 = arith.divf %10, %11 : vector<64x1xf32>
    %13 = vector.broadcast %5 : vector<64x1xf32> to vector<64x32xf32>
    %14 = arith.subf %1, %13 : vector<64x32xf32>
    %cst_5 = arith.constant 9.99999974E-6 : f32
    %15 = vector.broadcast %cst_5 : f32 to vector<64x1xf32>
    %16 = arith.addf %12, %15 : vector<64x1xf32>
    %17 = math.rsqrt %16 : vector<64x1xf32>
    %18 = vector.broadcast %17 : vector<64x1xf32> to vector<64x32xf32>
    %19 = arith.mulf %14, %18 : vector<64x32xf32>
    %c0_6 = arith.constant 0 : index
    %c0_7 = arith.constant 0 : index
    %20 = vector.load %arg2[%c0_6, %c0_7] : memref<1x32xf32, #tpu.memory_space<vmem>>, vector<1x32xf32>
    %21 = vector.broadcast %20 : vector<1x32xf32> to vector<64x32xf32>
    %22 = arith.mulf %19, %21 : vector<64x32xf32>
    %c0_8 = arith.constant 0 : index
    %c0_9 = arith.constant 0 : index
    %23 = vector.load %arg3[%c0_8, %c0_9] : memref<1x32xf32, #tpu.memory_space<vmem>>, vector<1x32xf32>
    %24 = vector.broadcast %23 : vector<1x32xf32> to vector<64x32xf32>
    %25 = arith.addf %22, %24 : vector<64x32xf32>
    %26 = arith.truncf %25 : vector<64x32xf32> to vector<64x32xbf16>
    %c0_10 = arith.constant 0 : index
    %c0_11 = arith.constant 0 : index
    %27 = vector.load %arg6[%c0_10, %c0_11] : memref<32x32xbf16, #tpu.memory_space<vmem>>, vector<32x32xbf16>
    %cst_12 = arith.constant dense<0.000000e+00> : vector<64x32xf32>
    %28 = tpu.matmul %26, %27, %cst_12 {dimension_numbers = #tpu.dot_dimension_numbers<[1], [0], [0], [1], [0, 0, 1, 1], [], []>} : vector<64x32xbf16>, vector<32x32xbf16>, vector<64x32xf32> -> vector<64x32xf32>
    %c0_13 = arith.constant 0 : index
    %c0_14 = arith.constant 0 : index
    %29 = vector.load %arg7[%c0_13, %c0_14] : memref<1x32xf32, #tpu.memory_space<vmem>>, vector<1x32xf32>
    %30 = vector.broadcast %29 : vector<1x32xf32> to vector<64x32xf32>
    %31 = arith.addf %28, %30 : vector<64x32xf32>
    %cst_15 = arith.constant 5.000000e-01 : f32
    %32 = vector.broadcast %cst_15 : f32 to vector<64x32xf32>
    %33 = arith.mulf %32, %31 : vector<64x32xf32>
    %34 = arith.mulf %31, %31 : vector<64x32xf32>
    %35 = arith.mulf %34, %31 : vector<64x32xf32>
    %cst_16 = arith.constant 4.471500e-02 : f32
    %36 = vector.broadcast %cst_16 : f32 to vector<64x32xf32>
    %37 = arith.mulf %36, %35 : vector<64x32xf32>
    %38 = arith.addf %31, %37 : vector<64x32xf32>
    %cst_17 = arith.constant 0.797884583 : f32
    %39 = vector.broadcast %cst_17 : f32 to vector<64x32xf32>
    %40 = arith.mulf %39, %38 : vector<64x32xf32>
    %41 = math.tanh %40 : vector<64x32xf32>
    %cst_18 = arith.constant 1.000000e+00 : f32
    %42 = vector.broadcast %cst_18 : f32 to vector<64x32xf32>
    %43 = arith.addf %42, %41 : vector<64x32xf32>
    %44 = arith.mulf %33, %43 : vector<64x32xf32>
    %cst_19 = arith.constant dense<0.000000e+00> : vector<64xf32>
    %45 = vector.multi_reduction <add>, %44, %cst_19 [1] : vector<64x32xf32> to vector<64xf32>
    %46 = vector.shape_cast %45 : vector<64xf32> to vector<64x1xf32>
    %cst_20 = arith.constant 3.200000e+01 : f32
    %47 = vector.broadcast %cst_20 : f32 to vector<64x1xf32>
    %48 = arith.divf %46, %47 : vector<64x1xf32>
    %49 = vector.broadcast %48 : vector<64x1xf32> to vector<64x32xf32>
    %50 = arith.subf %44, %49 : vector<64x32xf32>
    %51 = arith.mulf %50, %50 : vector<64x32xf32>
    %cst_21 = arith.constant dense<0.000000e+00> : vector<64xf32>
    %52 = vector.multi_reduction <add>, %51, %cst_21 [1] : vector<64x32xf32> to vector<64xf32>
    %53 = vector.shape_cast %52 : vector<64xf32> to vector<64x1xf32>
    %cst_22 = arith.constant 3.200000e+01 : f32
    %54 = vector.broadcast %cst_22 : f32 to vector<64x1xf32>
    %55 = arith.divf %53, %54 : vector<64x1xf32>
    %56 = vector.broadcast %48 : vector<64x1xf32> to vector<64x32xf32>
    %57 = arith.subf %44, %56 : vector<64x32xf32>
    %cst_23 = arith.constant 9.99999974E-6 : f32
    %58 = vector.broadcast %cst_23 : f32 to vector<64x1xf32>
    %59 = arith.addf %55, %58 : vector<64x1xf32>
    %60 = math.rsqrt %59 : vector<64x1xf32>
    %61 = vector.broadcast %60 : vector<64x1xf32> to vector<64x32xf32>
    %62 = arith.mulf %57, %61 : vector<64x32xf32>
    %c0_24 = arith.constant 0 : index
    %c0_25 = arith.constant 0 : index
    %63 = vector.load %arg8[%c0_24, %c0_25] : memref<1x32xf32, #tpu.memory_space<vmem>>, vector<1x32xf32>
    %64 = vector.broadcast %63 : vector<1x32xf32> to vector<64x32xf32>
    %65 = arith.mulf %62, %64 : vector<64x32xf32>
    %c0_26 = arith.constant 0 : index
    %c0_27 = arith.constant 0 : index
    %66 = vector.load %arg9[%c0_26, %c0_27] : memref<1x32xf32, #tpu.memory_space<vmem>>, vector<1x32xf32>
    %67 = vector.broadcast %66 : vector<1x32xf32> to vector<64x32xf32>
    %68 = arith.addf %65, %67 : vector<64x32xf32>
    %69 = vector.shape_cast %68 : vector<64x32xf32> to vector<8x256xf32>
    %70 = arith.truncf %69 : vector<8x256xf32> to vector<8x256xbf16>
    %c0_28 = arith.constant 0 : index
    %c0_29 = arith.constant 0 : index
    %71 = vector.load %arg10[%c0_28, %c0_29] : memref<8x8xbf16, #tpu.memory_space<vmem>>, vector<8x8xbf16>
    %cst_30 = arith.constant dense<0.000000e+00> : vector<8x256xf32>
    %72 = tpu.matmul %71, %70, %cst_30 {dimension_numbers = #tpu.dot_dimension_numbers<[1], [0], [0], [1], [0, 0, 1, 1], [], []>} : vector<8x8xbf16>, vector<8x256xbf16>, vector<8x256xf32> -> vector<8x256xf32>
    %c0_31 = arith.constant 0 : index
    %c0_32 = arith.constant 0 : index
    %73 = vector.load %arg11[%c0_31, %c0_32] : memref<8x1xf32, #tpu.memory_space<vmem>>, vector<8x1xf32>
    %74 = vector.broadcast %73 : vector<8x1xf32> to vector<8x256xf32>
    %75 = arith.addf %72, %74 : vector<8x256xf32>
    %76 = vector.shape_cast %75 : vector<8x256xf32> to vector<64x32xf32>
    %c0_33 = arith.constant 0 : index
    %c0_34 = arith.constant 0 : index
    %77 = vector.load %arg4[%c0_33, %c0_34] : memref<32x32xbf16, #tpu.memory_space<vmem>>, vector<32x32xbf16>
    %cst_35 = arith.constant dense<0.000000e+00> : vector<64x32xf32>
    %78 = tpu.matmul %26, %77, %cst_35 {dimension_numbers = #tpu.dot_dimension_numbers<[1], [0], [0], [1], [0, 0, 1, 1], [], []>} : vector<64x32xbf16>, vector<32x32xbf16>, vector<64x32xf32> -> vector<64x32xf32>
    %c0_36 = arith.constant 0 : index
    %c0_37 = arith.constant 0 : index
    %79 = vector.load %arg5[%c0_36, %c0_37] : memref<1x32xf32, #tpu.memory_space<vmem>>, vector<1x32xf32>
    %80 = vector.broadcast %79 : vector<1x32xf32> to vector<64x32xf32>
    %81 = arith.addf %78, %80 : vector<64x32xf32>
    %cst_38 = arith.constant 5.000000e-01 : f32
    %82 = vector.broadcast %cst_38 : f32 to vector<64x32xf32>
    %83 = arith.mulf %82, %81 : vector<64x32xf32>
    %84 = arith.mulf %81, %81 : vector<64x32xf32>
    %85 = arith.mulf %84, %81 : vector<64x32xf32>
    %cst_39 = arith.constant 4.471500e-02 : f32
    %86 = vector.broadcast %cst_39 : f32 to vector<64x32xf32>
    %87 = arith.mulf %86, %85 : vector<64x32xf32>
    %88 = arith.addf %81, %87 : vector<64x32xf32>
    %cst_40 = arith.constant 0.797884583 : f32
    %89 = vector.broadcast %cst_40 : f32 to vector<64x32xf32>
    %90 = arith.mulf %89, %88 : vector<64x32xf32>
    %91 = math.tanh %90 : vector<64x32xf32>
    %cst_41 = arith.constant 1.000000e+00 : f32
    %92 = vector.broadcast %cst_41 : f32 to vector<64x32xf32>
    %93 = arith.addf %92, %91 : vector<64x32xf32>
    %94 = arith.mulf %83, %93 : vector<64x32xf32>
    %95 = arith.truncf %94 : vector<64x32xf32> to vector<64x32xbf16>
    %96 = arith.truncf %76 : vector<64x32xf32> to vector<64x32xbf16>
    %97 = arith.mulf %95, %96 : vector<64x32xbf16>
    %c0_42 = arith.constant 0 : index
    %c0_43 = arith.constant 0 : index
    %98 = vector.load %arg12[%c0_42, %c0_43] : memref<32x32xbf16, #tpu.memory_space<vmem>>, vector<32x32xbf16>
    %cst_44 = arith.constant dense<0.000000e+00> : vector<64x32xf32>
    %99 = tpu.matmul %97, %98, %cst_44 {dimension_numbers = #tpu.dot_dimension_numbers<[1], [0], [0], [1], [0, 0, 1, 1], [], []>} : vector<64x32xbf16>, vector<32x32xbf16>, vector<64x32xf32> -> vector<64x32xf32>
    %c0_45 = arith.constant 0 : index
    %c0_46 = arith.constant 0 : index
    %100 = vector.load %arg13[%c0_45, %c0_46] : memref<1x32xf32, #tpu.memory_space<vmem>>, vector<1x32xf32>
    %101 = vector.broadcast %100 : vector<1x32xf32> to vector<64x32xf32>
    %102 = arith.addf %99, %101 : vector<64x32xf32>
    %103 = arith.addf %102, %1 : vector<64x32xf32>
    %104 = vector.shape_cast %103 : vector<64x32xf32> to vector<8x8x32xf32>
    %c0_47 = arith.constant 0 : index
    %c0_48 = arith.constant 0 : index
    %c0_49 = arith.constant 0 : index
    %105 = vector.load %arg14[%c0_47, %c0_48, %c0_49] : memref<8x8x32xf32, #tpu.memory_space<vmem>>, vector<8x8x32xf32>
    tpu.vector_store %arg14[%c0_47, %c0_48, %c0_49], %104 {strides = array<i32>} : memref<8x8x32xf32, #tpu.memory_space<vmem>>, vector<8x8x32xf32>,
    return
  }
  func.func @transform_0(%arg0: i32) -> (i32, i32, i32) {
    %c0_i32 = arith.constant 0 : i32
    %c0_i32_0 = arith.constant 0 : i32
    %c0_i32_1 = arith.constant 0 : i32
    return %c0_i32, %arg0, %c0_i32_0 : i32, i32, i32
  }
  func.func @transform_1(%arg0: i32) -> (i32, i32) {
    %c0_i32 = arith.constant 0 : i32
    %c0_i32_0 = arith.constant 0 : i32
    %c0_i32_1 = arith.constant 0 : i32
    return %c0_i32, %c0_i32_0 : i32, i32
  }
  func.func @transform_2(%arg0: i32) -> (i32, i32) {
    %c0_i32 = arith.constant 0 : i32
    %c0_i32_0 = arith.constant 0 : i32
    %c0_i32_1 = arith.constant 0 : i32
    return %c0_i32, %c0_i32_0 : i32, i32
  }
  func.func @transform_3(%arg0: i32) -> (i32, i32) {
    %c0_i32 = arith.constant 0 : i32
    %c0_i32_0 = arith.constant 0 : i32
    %c0_i32_1 = arith.constant 0 : i32
    return %c0_i32, %c0_i32_0 : i32, i32
  }
  func.func @transform_4(%arg0: i32) -> (i32, i32) {
    %c0_i32 = arith.constant 0 : i32
    %c0_i32_0 = arith.constant 0 : i32
    %c0_i32_1 = arith.constant 0 : i32
    return %c0_i32, %c0_i32_0 : i32, i32
  }
  func.func @transform_5(%arg0: i32) -> (i32, i32) {
    %c0_i32 = arith.constant 0 : i32
    %c0_i32_0 = arith.constant 0 : i32
    %c0_i32_1 = arith.constant 0 : i32
    return %c0_i32, %c0_i32_0 : i32, i32
  }
  func.func @transform_6(%arg0: i32) -> (i32, i32) {
    %c0_i32 = arith.constant 0 : i32
    %c0_i32_0 = arith.constant 0 : i32
    %c0_i32_1 = arith.constant 0 : i32
    return %c0_i32, %c0_i32_0 : i32, i32
  }
  func.func @transform_7(%arg0: i32) -> (i32, i32) {
    %c0_i32 = arith.constant 0 : i32
    %c0_i32_0 = arith.constant 0 : i32
    %c0_i32_1 = arith.constant 0 : i32
    return %c0_i32, %c0_i32_0 : i32, i32
  }
  func.func @transform_8(%arg0: i32) -> (i32, i32) {
    %c0_i32 = arith.constant 0 : i32
    %c0_i32_0 = arith.constant 0 : i32
    %c0_i32_1 = arith.constant 0 : i32
    return %c0_i32, %c0_i32_0 : i32, i32
  }
  func.func @transform_9(%arg0: i32) -> (i32, i32) {
    %c0_i32 = arith.constant 0 : i32
    %c0_i32_0 = arith.constant 0 : i32
    %c0_i32_1 = arith.constant 0 : i32
    return %c0_i32, %c0_i32_0 : i32, i32
  }
  func.func @transform_10(%arg0: i32) -> (i32, i32) {
    %c0_i32 = arith.constant 0 : i32
    %c0_i32_0 = arith.constant 0 : i32
    %c0_i32_1 = arith.constant 0 : i32
    return %c0_i32, %c0_i32_0 : i32, i32
  }
  func.func @transform_11(%arg0: i32) -> (i32, i32) {
    %c0_i32 = arith.constant 0 : i32
    %c0_i32_0 = arith.constant 0 : i32
    %c0_i32_1 = arith.constant 0 : i32
    return %c0_i32, %c0_i32_0 : i32, i32
  }
  func.func @transform_12(%arg0: i32) -> (i32, i32) {
    %c0_i32 = arith.constant 0 : i32
    %c0_i32_0 = arith.constant 0 : i32
    %c0_i32_1 = arith.constant 0 : i32
    return %c0_i32, %c0_i32_0 : i32, i32
  }
  func.func @transform_13(%arg0: i32) -> (i32, i32, i32) {
    %c0_i32 = arith.constant 0 : i32
    %c0_i32_0 = arith.constant 0 : i32
    %c0_i32_1 = arith.constant 0 : i32
    return %c0_i32, %arg0, %c0_i32_0 : i32, i32, i32
  }
}

module attributes {stable_mosaic.version = 11 : i64} {
  func.func @_gmlp_kernel(%arg0: i32, %arg1: memref<8x8x32xf32, #tpu.memory_space<vmem>>, %arg2: memref<1x32xf32, #tpu.memory_space<vmem>>, %arg3: memref<1x32xf32, #tpu.memory_space<vmem>>, %arg4: memref<32x32xbf16, #tpu.memory_space<vmem>>, %arg5: memref<1x32xf32, #tpu.memory_space<vmem>>, %arg6: memref<32x32xbf16, #tpu.memory_space<vmem>>, %arg7: memref<1x32xf32, #tpu.memory_space<vmem>>, %arg8: memref<1x32xf32, #tpu.memory_space<vmem>>, %arg9: memref<1x32xf32, #tpu.memory_space<vmem>>, %arg10: memref<64x64xbf16, #tpu.memory_space<vmem>>, %arg11: memref<64x1xf32, #tpu.memory_space<vmem>>, %arg12: memref<32x32xbf16, #tpu.memory_space<vmem>>, %arg13: memref<1x32xf32, #tpu.memory_space<vmem>>, %arg14: memref<8x8x32xf32, #tpu.memory_space<vmem>>) attributes {dimension_semantics = [#tpu.dimension_semantics<parallel>], iteration_bounds = array<i64: 1>, scalar_prefetch = 0 : i64, scratch_operands = 0 : i64, tpu.core_type = #tpu.core_type<tc>, window_params = [{transform_indices = @transform_0, window_bounds = array<i64: 8, 8, 32>}, {pipeline_mode = #tpu.pipeline_mode<synchronous>, transform_indices = @transform_1, window_bounds = array<i64: 1, 32>}, {pipeline_mode = #tpu.pipeline_mode<synchronous>, transform_indices = @transform_2, window_bounds = array<i64: 1, 32>}, {pipeline_mode = #tpu.pipeline_mode<synchronous>, transform_indices = @transform_3, window_bounds = array<i64: 32, 32>}, {pipeline_mode = #tpu.pipeline_mode<synchronous>, transform_indices = @transform_4, window_bounds = array<i64: 1, 32>}, {pipeline_mode = #tpu.pipeline_mode<synchronous>, transform_indices = @transform_5, window_bounds = array<i64: 32, 32>}, {pipeline_mode = #tpu.pipeline_mode<synchronous>, transform_indices = @transform_6, window_bounds = array<i64: 1, 32>}, {pipeline_mode = #tpu.pipeline_mode<synchronous>, transform_indices = @transform_7, window_bounds = array<i64: 1, 32>}, {pipeline_mode = #tpu.pipeline_mode<synchronous>, transform_indices = @transform_8, window_bounds = array<i64: 1, 32>}, {pipeline_mode = #tpu.pipeline_mode<synchronous>, transform_indices = @transform_9, window_bounds = array<i64: 64, 64>}, {pipeline_mode = #tpu.pipeline_mode<synchronous>, transform_indices = @transform_10, window_bounds = array<i64: 64, 1>}, {pipeline_mode = #tpu.pipeline_mode<synchronous>, transform_indices = @transform_11, window_bounds = array<i64: 32, 32>}, {pipeline_mode = #tpu.pipeline_mode<synchronous>, transform_indices = @transform_12, window_bounds = array<i64: 1, 32>}, {transform_indices = @transform_13, window_bounds = array<i64: 8, 8, 32>}]} {
    %c0 = arith.constant 0 : index
    %c0_0 = arith.constant 0 : index
    %c0_1 = arith.constant 0 : index
    %0 = vector.load %arg1[%c0, %c0_0, %c0_1] : memref<8x8x32xf32, #tpu.memory_space<vmem>>, vector<8x8x32xf32>
    %1 = vector.shape_cast %0 : vector<8x8x32xf32> to vector<64x32xf32>
    %cst = arith.constant dense<0.000000e+00> : vector<64xf32>
    %2 = vector.multi_reduction <add>, %1, %cst [1] : vector<64x32xf32> to vector<64xf32>
    %3 = vector.shape_cast %2 : vector<64xf32> to vector<64x1xf32>
    %cst_2 = arith.constant 3.200000e+01 : f32
    %4 = vector.broadcast %cst_2 : f32 to vector<64x1xf32>
    %5 = arith.divf %3, %4 : vector<64x1xf32>
    %6 = vector.broadcast %5 : vector<64x1xf32> to vector<64x32xf32>
    %7 = arith.subf %1, %6 : vector<64x32xf32>
    %8 = arith.mulf %7, %7 : vector<64x32xf32>
    %cst_3 = arith.constant dense<0.000000e+00> : vector<64xf32>
    %9 = vector.multi_reduction <add>, %8, %cst_3 [1] : vector<64x32xf32> to vector<64xf32>
    %10 = vector.shape_cast %9 : vector<64xf32> to vector<64x1xf32>
    %cst_4 = arith.constant 3.200000e+01 : f32
    %11 = vector.broadcast %cst_4 : f32 to vector<64x1xf32>
    %12 = arith.divf %10, %11 : vector<64x1xf32>
    %13 = vector.broadcast %5 : vector<64x1xf32> to vector<64x32xf32>
    %14 = arith.subf %1, %13 : vector<64x32xf32>
    %cst_5 = arith.constant 9.99999974E-6 : f32
    %15 = vector.broadcast %cst_5 : f32 to vector<64x1xf32>
    %16 = arith.addf %12, %15 : vector<64x1xf32>
    %17 = math.rsqrt %16 : vector<64x1xf32>
    %18 = vector.broadcast %17 : vector<64x1xf32> to vector<64x32xf32>
    %19 = arith.mulf %14, %18 : vector<64x32xf32>
    %c0_6 = arith.constant 0 : index
    %c0_7 = arith.constant 0 : index
    %20 = vector.load %arg2[%c0_6, %c0_7] : memref<1x32xf32, #tpu.memory_space<vmem>>, vector<1x32xf32>
    %21 = vector.broadcast %20 : vector<1x32xf32> to vector<64x32xf32>
    %22 = arith.mulf %19, %21 : vector<64x32xf32>
    %c0_8 = arith.constant 0 : index
    %c0_9 = arith.constant 0 : index
    %23 = vector.load %arg3[%c0_8, %c0_9] : memref<1x32xf32, #tpu.memory_space<vmem>>, vector<1x32xf32>
    %24 = vector.broadcast %23 : vector<1x32xf32> to vector<64x32xf32>
    %25 = arith.addf %22, %24 : vector<64x32xf32>
    %26 = arith.truncf %25 : vector<64x32xf32> to vector<64x32xbf16>
    %c0_10 = arith.constant 0 : index
    %c0_11 = arith.constant 0 : index
    %27 = vector.load %arg6[%c0_10, %c0_11] : memref<32x32xbf16, #tpu.memory_space<vmem>>, vector<32x32xbf16>
    %cst_12 = arith.constant dense<0.000000e+00> : vector<64x32xf32>
    %28 = tpu.matmul %26, %27, %cst_12 {dimension_numbers = #tpu.dot_dimension_numbers<[1], [0], [0], [1], [0, 0, 1, 1], [], []>} : vector<64x32xbf16>, vector<32x32xbf16>, vector<64x32xf32> -> vector<64x32xf32>
    %c0_13 = arith.constant 0 : index
    %c0_14 = arith.constant 0 : index
    %29 = vector.load %arg7[%c0_13, %c0_14] : memref<1x32xf32, #tpu.memory_space<vmem>>, vector<1x32xf32>
    %30 = vector.broadcast %29 : vector<1x32xf32> to vector<64x32xf32>
    %31 = arith.addf %28, %30 : vector<64x32xf32>
    %cst_15 = arith.constant 5.000000e-01 : f32
    %32 = vector.broadcast %cst_15 : f32 to vector<64x32xf32>
    %33 = arith.mulf %32, %31 : vector<64x32xf32>
    %34 = arith.mulf %31, %31 : vector<64x32xf32>
    %35 = arith.mulf %34, %31 : vector<64x32xf32>
    %cst_16 = arith.constant 4.471500e-02 : f32
    %36 = vector.broadcast %cst_16 : f32 to vector<64x32xf32>
    %37 = arith.mulf %36, %35 : vector<64x32xf32>
    %38 = arith.addf %31, %37 : vector<64x32xf32>
    %cst_17 = arith.constant 0.797884583 : f32
    %39 = vector.broadcast %cst_17 : f32 to vector<64x32xf32>
    %40 = arith.mulf %39, %38 : vector<64x32xf32>
    %41 = math.tanh %40 : vector<64x32xf32>
    %cst_18 = arith.constant 1.000000e+00 : f32
    %42 = vector.broadcast %cst_18 : f32 to vector<64x32xf32>
    %43 = arith.addf %42, %41 : vector<64x32xf32>
    %44 = arith.mulf %33, %43 : vector<64x32xf32>
    %cst_19 = arith.constant dense<0.000000e+00> : vector<64xf32>
    %45 = vector.multi_reduction <add>, %44, %cst_19 [1] : vector<64x32xf32> to vector<64xf32>
    %46 = vector.shape_cast %45 : vector<64xf32> to vector<64x1xf32>
    %cst_20 = arith.constant 3.200000e+01 : f32
    %47 = vector.broadcast %cst_20 : f32 to vector<64x1xf32>
    %48 = arith.divf %46, %47 : vector<64x1xf32>
    %49 = vector.broadcast %48 : vector<64x1xf32> to vector<64x32xf32>
    %50 = arith.subf %44, %49 : vector<64x32xf32>
    %51 = arith.mulf %50, %50 : vector<64x32xf32>
    %cst_21 = arith.constant dense<0.000000e+00> : vector<64xf32>
    %52 = vector.multi_reduction <add>, %51, %cst_21 [1] : vector<64x32xf32> to vector<64xf32>
    %53 = vector.shape_cast %52 : vector<64xf32> to vector<64x1xf32>
    %cst_22 = arith.constant 3.200000e+01 : f32
    %54 = vector.broadcast %cst_22 : f32 to vector<64x1xf32>
    %55 = arith.divf %53, %54 : vector<64x1xf32>
    %56 = vector.broadcast %48 : vector<64x1xf32> to vector<64x32xf32>
    %57 = arith.subf %44, %56 : vector<64x32xf32>
    %cst_23 = arith.constant 9.99999974E-6 : f32
    %58 = vector.broadcast %cst_23 : f32 to vector<64x1xf32>
    %59 = arith.addf %55, %58 : vector<64x1xf32>
    %60 = math.rsqrt %59 : vector<64x1xf32>
    %61 = vector.broadcast %60 : vector<64x1xf32> to vector<64x32xf32>
    %62 = arith.mulf %57, %61 : vector<64x32xf32>
    %c0_24 = arith.constant 0 : index
    %c0_25 = arith.constant 0 : index
    %63 = vector.load %arg8[%c0_24, %c0_25] : memref<1x32xf32, #tpu.memory_space<vmem>>, vector<1x32xf32>
    %64 = vector.broadcast %63 : vector<1x32xf32> to vector<64x32xf32>
    %65 = arith.mulf %62, %64 : vector<64x32xf32>
    %c0_26 = arith.constant 0 : index
    %c0_27 = arith.constant 0 : index
    %66 = vector.load %arg9[%c0_26, %c0_27] : memref<1x32xf32, #tpu.memory_space<vmem>>, vector<1x32xf32>
    %67 = vector.broadcast %66 : vector<1x32xf32> to vector<64x32xf32>
    %68 = arith.addf %65, %67 : vector<64x32xf32>
    %c0_28 = arith.constant 0 : index
    %c0_29 = arith.constant 0 : index
    %69 = vector.load %arg10[%c0_28, %c0_29] : memref<64x64xbf16, #tpu.memory_space<vmem>>, vector<64x64xbf16>
    %70 = arith.truncf %68 : vector<64x32xf32> to vector<64x32xbf16>
    %cst_30 = arith.constant dense<0.000000e+00> : vector<64x32xf32>
    %71 = tpu.matmul %69, %70, %cst_30 {dimension_numbers = #tpu.dot_dimension_numbers<[1], [0], [0], [1], [0, 0, 1, 1], [], []>} : vector<64x64xbf16>, vector<64x32xbf16>, vector<64x32xf32> -> vector<64x32xf32>
    %c0_31 = arith.constant 0 : index
    %c0_32 = arith.constant 0 : index
    %72 = vector.load %arg11[%c0_31, %c0_32] : memref<64x1xf32, #tpu.memory_space<vmem>>, vector<64x1xf32>
    %73 = vector.broadcast %72 : vector<64x1xf32> to vector<64x32xf32>
    %74 = arith.addf %71, %73 : vector<64x32xf32>
    %c0_33 = arith.constant 0 : index
    %c0_34 = arith.constant 0 : index
    %75 = vector.load %arg4[%c0_33, %c0_34] : memref<32x32xbf16, #tpu.memory_space<vmem>>, vector<32x32xbf16>
    %cst_35 = arith.constant dense<0.000000e+00> : vector<64x32xf32>
    %76 = tpu.matmul %26, %75, %cst_35 {dimension_numbers = #tpu.dot_dimension_numbers<[1], [0], [0], [1], [0, 0, 1, 1], [], []>} : vector<64x32xbf16>, vector<32x32xbf16>, vector<64x32xf32> -> vector<64x32xf32>
    %c0_36 = arith.constant 0 : index
    %c0_37 = arith.constant 0 : index
    %77 = vector.load %arg5[%c0_36, %c0_37] : memref<1x32xf32, #tpu.memory_space<vmem>>, vector<1x32xf32>
    %78 = vector.broadcast %77 : vector<1x32xf32> to vector<64x32xf32>
    %79 = arith.addf %76, %78 : vector<64x32xf32>
    %cst_38 = arith.constant 5.000000e-01 : f32
    %80 = vector.broadcast %cst_38 : f32 to vector<64x32xf32>
    %81 = arith.mulf %80, %79 : vector<64x32xf32>
    %82 = arith.mulf %79, %79 : vector<64x32xf32>
    %83 = arith.mulf %82, %79 : vector<64x32xf32>
    %cst_39 = arith.constant 4.471500e-02 : f32
    %84 = vector.broadcast %cst_39 : f32 to vector<64x32xf32>
    %85 = arith.mulf %84, %83 : vector<64x32xf32>
    %86 = arith.addf %79, %85 : vector<64x32xf32>
    %cst_40 = arith.constant 0.797884583 : f32
    %87 = vector.broadcast %cst_40 : f32 to vector<64x32xf32>
    %88 = arith.mulf %87, %86 : vector<64x32xf32>
    %89 = math.tanh %88 : vector<64x32xf32>
    %cst_41 = arith.constant 1.000000e+00 : f32
    %90 = vector.broadcast %cst_41 : f32 to vector<64x32xf32>
    %91 = arith.addf %90, %89 : vector<64x32xf32>
    %92 = arith.mulf %81, %91 : vector<64x32xf32>
    %93 = arith.truncf %92 : vector<64x32xf32> to vector<64x32xbf16>
    %94 = arith.truncf %74 : vector<64x32xf32> to vector<64x32xbf16>
    %95 = arith.mulf %93, %94 : vector<64x32xbf16>
    %c0_42 = arith.constant 0 : index
    %c0_43 = arith.constant 0 : index
    %96 = vector.load %arg12[%c0_42, %c0_43] : memref<32x32xbf16, #tpu.memory_space<vmem>>, vector<32x32xbf16>
    %cst_44 = arith.constant dense<0.000000e+00> : vector<64x32xf32>
    %97 = tpu.matmul %95, %96, %cst_44 {dimension_numbers = #tpu.dot_dimension_numbers<[1], [0], [0], [1], [0, 0, 1, 1], [], []>} : vector<64x32xbf16>, vector<32x32xbf16>, vector<64x32xf32> -> vector<64x32xf32>
    %c0_45 = arith.constant 0 : index
    %c0_46 = arith.constant 0 : index
    %98 = vector.load %arg13[%c0_45, %c0_46] : memref<1x32xf32, #tpu.memory_space<vmem>>, vector<1x32xf32>
    %99 = vector.broadcast %98 : vector<1x32xf32> to vector<64x32xf32>
    %100 = arith.addf %97, %99 : vector<64x32xf32>
    %101 = arith.addf %100, %1 : vector<64x32xf32>
    %102 = vector.shape_cast %101 : vector<64x32xf32> to vector<8x8x32xf32>
    %c0_47 = arith.constant 0 : index
    %c0_48 = arith.constant 0 : index
    %c0_49 = arith.constant 0 : index
    %103 = vector.load %arg14[%c0_47, %c0_48, %c0_49] : memref<8x8x32xf32, #tpu.memory_space<vmem>>, vector<8x8x32xf32>
    tpu.vector_store %arg14[%c0_47, %c0_48, %c0_49], %102 {strides = array<i32>} : memref<8x8x32xf32, #tpu.memory_space<vmem>>, vector<8x8x32xf32>,
    return
  }
  func.func @transform_0(%arg0: i32) -> (i32, i32, i32) {
    %c0_i32 = arith.constant 0 : i32
    %c0_i32_0 = arith.constant 0 : i32
    %c0_i32_1 = arith.constant 0 : i32
    return %c0_i32, %arg0, %c0_i32_0 : i32, i32, i32
  }
  func.func @transform_1(%arg0: i32) -> (i32, i32) {
    %c0_i32 = arith.constant 0 : i32
    %c0_i32_0 = arith.constant 0 : i32
    %c0_i32_1 = arith.constant 0 : i32
    return %c0_i32, %c0_i32_0 : i32, i32
  }
  func.func @transform_2(%arg0: i32) -> (i32, i32) {
    %c0_i32 = arith.constant 0 : i32
    %c0_i32_0 = arith.constant 0 : i32
    %c0_i32_1 = arith.constant 0 : i32
    return %c0_i32, %c0_i32_0 : i32, i32
  }
  func.func @transform_3(%arg0: i32) -> (i32, i32) {
    %c0_i32 = arith.constant 0 : i32
    %c0_i32_0 = arith.constant 0 : i32
    %c0_i32_1 = arith.constant 0 : i32
    return %c0_i32, %c0_i32_0 : i32, i32
  }
  func.func @transform_4(%arg0: i32) -> (i32, i32) {
    %c0_i32 = arith.constant 0 : i32
    %c0_i32_0 = arith.constant 0 : i32
    %c0_i32_1 = arith.constant 0 : i32
    return %c0_i32, %c0_i32_0 : i32, i32
  }
  func.func @transform_5(%arg0: i32) -> (i32, i32) {
    %c0_i32 = arith.constant 0 : i32
    %c0_i32_0 = arith.constant 0 : i32
    %c0_i32_1 = arith.constant 0 : i32
    return %c0_i32, %c0_i32_0 : i32, i32
  }
  func.func @transform_6(%arg0: i32) -> (i32, i32) {
    %c0_i32 = arith.constant 0 : i32
    %c0_i32_0 = arith.constant 0 : i32
    %c0_i32_1 = arith.constant 0 : i32
    return %c0_i32, %c0_i32_0 : i32, i32
  }
  func.func @transform_7(%arg0: i32) -> (i32, i32) {
    %c0_i32 = arith.constant 0 : i32
    %c0_i32_0 = arith.constant 0 : i32
    %c0_i32_1 = arith.constant 0 : i32
    return %c0_i32, %c0_i32_0 : i32, i32
  }
  func.func @transform_8(%arg0: i32) -> (i32, i32) {
    %c0_i32 = arith.constant 0 : i32
    %c0_i32_0 = arith.constant 0 : i32
    %c0_i32_1 = arith.constant 0 : i32
    return %c0_i32, %c0_i32_0 : i32, i32
  }
  func.func @transform_9(%arg0: i32) -> (i32, i32) {
    %c0_i32 = arith.constant 0 : i32
    %c0_i32_0 = arith.constant 0 : i32
    %c0_i32_1 = arith.constant 0 : i32
    return %c0_i32, %c0_i32_0 : i32, i32
  }
  func.func @transform_10(%arg0: i32) -> (i32, i32) {
    %c0_i32 = arith.constant 0 : i32
    %c0_i32_0 = arith.constant 0 : i32
    %c0_i32_1 = arith.constant 0 : i32
    return %c0_i32, %c0_i32_0 : i32, i32
  }
  func.func @transform_11(%arg0: i32) -> (i32, i32) {
    %c0_i32 = arith.constant 0 : i32
    %c0_i32_0 = arith.constant 0 : i32
    %c0_i32_1 = arith.constant 0 : i32
    return %c0_i32, %c0_i32_0 : i32, i32
  }
  func.func @transform_12(%arg0: i32) -> (i32, i32) {
    %c0_i32 = arith.constant 0 : i32
    %c0_i32_0 = arith.constant 0 : i32
    %c0_i32_1 = arith.constant 0 : i32
    return %c0_i32, %c0_i32_0 : i32, i32
  }
  func.func @transform_13(%arg0: i32) -> (i32, i32, i32) {
    %c0_i32 = arith.constant 0 : i32
    %c0_i32_0 = arith.constant 0 : i32
    %c0_i32_1 = arith.constant 0 : i32
    return %c0_i32, %arg0, %c0_i32_0 : i32, i32, i32
  }
}

module attributes {stable_mosaic.version = 11 : i64} {
  func.func @_gmlp_kernel(%arg0: i32, %arg1: memref<8x8x32xf32, #tpu.memory_space<vmem>>, %arg2: memref<1x32xf32, #tpu.memory_space<vmem>>, %arg3: memref<1x32xf32, #tpu.memory_space<vmem>>, %arg4: memref<32x32xbf16, #tpu.memory_space<vmem>>, %arg5: memref<1x32xf32, #tpu.memory_space<vmem>>, %arg6: memref<32x32xbf16, #tpu.memory_space<vmem>>, %arg7: memref<1x32xf32, #tpu.memory_space<vmem>>, %arg8: memref<1x32xf32, #tpu.memory_space<vmem>>, %arg9: memref<1x32xf32, #tpu.memory_space<vmem>>, %arg10: memref<64x64xbf16, #tpu.memory_space<vmem>>, %arg11: memref<64x1xf32, #tpu.memory_space<vmem>>, %arg12: memref<32x32xbf16, #tpu.memory_space<vmem>>, %arg13: memref<1x32xf32, #tpu.memory_space<vmem>>, %arg14: memref<8x8x32xf32, #tpu.memory_space<vmem>>) attributes {dimension_semantics = [#tpu.dimension_semantics<parallel>], iteration_bounds = array<i64: 1>, scalar_prefetch = 0 : i64, scratch_operands = 0 : i64, tpu.core_type = #tpu.core_type<tc>, window_params = [{transform_indices = @transform_0, window_bounds = array<i64: 8, 8, 32>}, {pipeline_mode = #tpu.pipeline_mode<synchronous>, transform_indices = @transform_1, window_bounds = array<i64: 1, 32>}, {pipeline_mode = #tpu.pipeline_mode<synchronous>, transform_indices = @transform_2, window_bounds = array<i64: 1, 32>}, {pipeline_mode = #tpu.pipeline_mode<synchronous>, transform_indices = @transform_3, window_bounds = array<i64: 32, 32>}, {pipeline_mode = #tpu.pipeline_mode<synchronous>, transform_indices = @transform_4, window_bounds = array<i64: 1, 32>}, {pipeline_mode = #tpu.pipeline_mode<synchronous>, transform_indices = @transform_5, window_bounds = array<i64: 32, 32>}, {pipeline_mode = #tpu.pipeline_mode<synchronous>, transform_indices = @transform_6, window_bounds = array<i64: 1, 32>}, {pipeline_mode = #tpu.pipeline_mode<synchronous>, transform_indices = @transform_7, window_bounds = array<i64: 1, 32>}, {pipeline_mode = #tpu.pipeline_mode<synchronous>, transform_indices = @transform_8, window_bounds = array<i64: 1, 32>}, {pipeline_mode = #tpu.pipeline_mode<synchronous>, transform_indices = @transform_9, window_bounds = array<i64: 64, 64>}, {pipeline_mode = #tpu.pipeline_mode<synchronous>, transform_indices = @transform_10, window_bounds = array<i64: 64, 1>}, {pipeline_mode = #tpu.pipeline_mode<synchronous>, transform_indices = @transform_11, window_bounds = array<i64: 32, 32>}, {pipeline_mode = #tpu.pipeline_mode<synchronous>, transform_indices = @transform_12, window_bounds = array<i64: 1, 32>}, {transform_indices = @transform_13, window_bounds = array<i64: 8, 8, 32>}]} {
    %c0 = arith.constant 0 : index
    %c0_0 = arith.constant 0 : index
    %c0_1 = arith.constant 0 : index
    %0 = vector.load %arg1[%c0, %c0_0, %c0_1] : memref<8x8x32xf32, #tpu.memory_space<vmem>>, vector<8x8x32xf32>
    %1 = vector.shape_cast %0 : vector<8x8x32xf32> to vector<64x32xf32>
    %cst = arith.constant dense<0.000000e+00> : vector<64xf32>
    %2 = vector.multi_reduction <add>, %1, %cst [1] : vector<64x32xf32> to vector<64xf32>
    %3 = vector.shape_cast %2 : vector<64xf32> to vector<64x1xf32>
    %cst_2 = arith.constant 3.200000e+01 : f32
    %4 = vector.broadcast %cst_2 : f32 to vector<64x1xf32>
    %5 = arith.divf %3, %4 : vector<64x1xf32>
    %6 = vector.broadcast %5 : vector<64x1xf32> to vector<64x32xf32>
    %7 = arith.subf %1, %6 : vector<64x32xf32>
    %8 = arith.mulf %7, %7 : vector<64x32xf32>
    %cst_3 = arith.constant dense<0.000000e+00> : vector<64xf32>
    %9 = vector.multi_reduction <add>, %8, %cst_3 [1] : vector<64x32xf32> to vector<64xf32>
    %10 = vector.shape_cast %9 : vector<64xf32> to vector<64x1xf32>
    %cst_4 = arith.constant 3.200000e+01 : f32
    %11 = vector.broadcast %cst_4 : f32 to vector<64x1xf32>
    %12 = arith.divf %10, %11 : vector<64x1xf32>
    %13 = vector.broadcast %5 : vector<64x1xf32> to vector<64x32xf32>
    %14 = arith.subf %1, %13 : vector<64x32xf32>
    %cst_5 = arith.constant 9.99999974E-6 : f32
    %15 = vector.broadcast %cst_5 : f32 to vector<64x1xf32>
    %16 = arith.addf %12, %15 : vector<64x1xf32>
    %17 = math.rsqrt %16 : vector<64x1xf32>
    %18 = vector.broadcast %17 : vector<64x1xf32> to vector<64x32xf32>
    %19 = arith.mulf %14, %18 : vector<64x32xf32>
    %c0_6 = arith.constant 0 : index
    %c0_7 = arith.constant 0 : index
    %20 = vector.load %arg2[%c0_6, %c0_7] : memref<1x32xf32, #tpu.memory_space<vmem>>, vector<1x32xf32>
    %21 = vector.broadcast %20 : vector<1x32xf32> to vector<64x32xf32>
    %22 = arith.mulf %19, %21 : vector<64x32xf32>
    %c0_8 = arith.constant 0 : index
    %c0_9 = arith.constant 0 : index
    %23 = vector.load %arg3[%c0_8, %c0_9] : memref<1x32xf32, #tpu.memory_space<vmem>>, vector<1x32xf32>
    %24 = vector.broadcast %23 : vector<1x32xf32> to vector<64x32xf32>
    %25 = arith.addf %22, %24 : vector<64x32xf32>
    %26 = arith.truncf %25 : vector<64x32xf32> to vector<64x32xbf16>
    %c0_10 = arith.constant 0 : index
    %c0_11 = arith.constant 0 : index
    %27 = vector.load %arg6[%c0_10, %c0_11] : memref<32x32xbf16, #tpu.memory_space<vmem>>, vector<32x32xbf16>
    %cst_12 = arith.constant dense<0.000000e+00> : vector<64x32xf32>
    %28 = tpu.matmul %26, %27, %cst_12 {dimension_numbers = #tpu.dot_dimension_numbers<[1], [0], [0], [1], [0, 0, 1, 1], [], []>} : vector<64x32xbf16>, vector<32x32xbf16>, vector<64x32xf32> -> vector<64x32xf32>
    %c0_13 = arith.constant 0 : index
    %c0_14 = arith.constant 0 : index
    %29 = vector.load %arg7[%c0_13, %c0_14] : memref<1x32xf32, #tpu.memory_space<vmem>>, vector<1x32xf32>
    %30 = vector.broadcast %29 : vector<1x32xf32> to vector<64x32xf32>
    %31 = arith.addf %28, %30 : vector<64x32xf32>
    %cst_15 = arith.constant 5.000000e-01 : f32
    %32 = vector.broadcast %cst_15 : f32 to vector<64x32xf32>
    %33 = arith.mulf %32, %31 : vector<64x32xf32>
    %34 = arith.mulf %31, %31 : vector<64x32xf32>
    %35 = arith.mulf %34, %31 : vector<64x32xf32>
    %cst_16 = arith.constant 4.471500e-02 : f32
    %36 = vector.broadcast %cst_16 : f32 to vector<64x32xf32>
    %37 = arith.mulf %36, %35 : vector<64x32xf32>
    %38 = arith.addf %31, %37 : vector<64x32xf32>
    %cst_17 = arith.constant 0.797884583 : f32
    %39 = vector.broadcast %cst_17 : f32 to vector<64x32xf32>
    %40 = arith.mulf %39, %38 : vector<64x32xf32>
    %41 = math.tanh %40 : vector<64x32xf32>
    %cst_18 = arith.constant 1.000000e+00 : f32
    %42 = vector.broadcast %cst_18 : f32 to vector<64x32xf32>
    %43 = arith.addf %42, %41 : vector<64x32xf32>
    %44 = arith.mulf %33, %43 : vector<64x32xf32>
    %cst_19 = arith.constant dense<0.000000e+00> : vector<64xf32>
    %45 = vector.multi_reduction <add>, %44, %cst_19 [1] : vector<64x32xf32> to vector<64xf32>
    %46 = vector.shape_cast %45 : vector<64xf32> to vector<64x1xf32>
    %cst_20 = arith.constant 3.200000e+01 : f32
    %47 = vector.broadcast %cst_20 : f32 to vector<64x1xf32>
    %48 = arith.divf %46, %47 : vector<64x1xf32>
    %49 = vector.broadcast %48 : vector<64x1xf32> to vector<64x32xf32>
    %50 = arith.subf %44, %49 : vector<64x32xf32>
    %51 = arith.mulf %50, %50 : vector<64x32xf32>
    %cst_21 = arith.constant dense<0.000000e+00> : vector<64xf32>
    %52 = vector.multi_reduction <add>, %51, %cst_21 [1] : vector<64x32xf32> to vector<64xf32>
    %53 = vector.shape_cast %52 : vector<64xf32> to vector<64x1xf32>
    %cst_22 = arith.constant 3.200000e+01 : f32
    %54 = vector.broadcast %cst_22 : f32 to vector<64x1xf32>
    %55 = arith.divf %53, %54 : vector<64x1xf32>
    %56 = vector.broadcast %48 : vector<64x1xf32> to vector<64x32xf32>
    %57 = arith.subf %44, %56 : vector<64x32xf32>
    %cst_23 = arith.constant 9.99999974E-6 : f32
    %58 = vector.broadcast %cst_23 : f32 to vector<64x1xf32>
    %59 = arith.addf %55, %58 : vector<64x1xf32>
    %60 = math.rsqrt %59 : vector<64x1xf32>
    %61 = vector.broadcast %60 : vector<64x1xf32> to vector<64x32xf32>
    %62 = arith.mulf %57, %61 : vector<64x32xf32>
    %c0_24 = arith.constant 0 : index
    %c0_25 = arith.constant 0 : index
    %63 = vector.load %arg8[%c0_24, %c0_25] : memref<1x32xf32, #tpu.memory_space<vmem>>, vector<1x32xf32>
    %64 = vector.broadcast %63 : vector<1x32xf32> to vector<64x32xf32>
    %65 = arith.mulf %62, %64 : vector<64x32xf32>
    %c0_26 = arith.constant 0 : index
    %c0_27 = arith.constant 0 : index
    %66 = vector.load %arg9[%c0_26, %c0_27] : memref<1x32xf32, #tpu.memory_space<vmem>>, vector<1x32xf32>
    %67 = vector.broadcast %66 : vector<1x32xf32> to vector<64x32xf32>
    %68 = arith.addf %65, %67 : vector<64x32xf32>
    %c0_28 = arith.constant 0 : index
    %c0_29 = arith.constant 0 : index
    %69 = vector.load %arg10[%c0_28, %c0_29] : memref<64x64xbf16, #tpu.memory_space<vmem>>, vector<64x64xbf16>
    %70 = arith.truncf %68 : vector<64x32xf32> to vector<64x32xbf16>
    %cst_30 = arith.constant dense<0.000000e+00> : vector<64x32xf32>
    %71 = tpu.matmul %69, %70, %cst_30 {dimension_numbers = #tpu.dot_dimension_numbers<[1], [0], [0], [1], [0, 0, 1, 1], [], []>} : vector<64x64xbf16>, vector<64x32xbf16>, vector<64x32xf32> -> vector<64x32xf32>
    %c0_31 = arith.constant 0 : index
    %c0_32 = arith.constant 0 : index
    %72 = vector.load %arg11[%c0_31, %c0_32] : memref<64x1xf32, #tpu.memory_space<vmem>>, vector<64x1xf32>
    %73 = vector.broadcast %72 : vector<64x1xf32> to vector<64x32xf32>
    %74 = arith.addf %71, %73 : vector<64x32xf32>
    %c0_33 = arith.constant 0 : index
    %c0_34 = arith.constant 0 : index
    %75 = vector.load %arg4[%c0_33, %c0_34] : memref<32x32xbf16, #tpu.memory_space<vmem>>, vector<32x32xbf16>
    %cst_35 = arith.constant dense<0.000000e+00> : vector<64x32xf32>
    %76 = tpu.matmul %26, %75, %cst_35 {dimension_numbers = #tpu.dot_dimension_numbers<[1], [0], [0], [1], [0, 0, 1, 1], [], []>} : vector<64x32xbf16>, vector<32x32xbf16>, vector<64x32xf32> -> vector<64x32xf32>
    %c0_36 = arith.constant 0 : index
    %c0_37 = arith.constant 0 : index
    %77 = vector.load %arg5[%c0_36, %c0_37] : memref<1x32xf32, #tpu.memory_space<vmem>>, vector<1x32xf32>
    %78 = vector.broadcast %77 : vector<1x32xf32> to vector<64x32xf32>
    %79 = arith.addf %76, %78 : vector<64x32xf32>
    %cst_38 = arith.constant 5.000000e-01 : f32
    %80 = vector.broadcast %cst_38 : f32 to vector<64x32xf32>
    %81 = arith.mulf %80, %79 : vector<64x32xf32>
    %82 = arith.mulf %79, %79 : vector<64x32xf32>
    %83 = arith.mulf %82, %79 : vector<64x32xf32>
    %cst_39 = arith.constant 4.471500e-02 : f32
    %84 = vector.broadcast %cst_39 : f32 to vector<64x32xf32>
    %85 = arith.mulf %84, %83 : vector<64x32xf32>
    %86 = arith.addf %79, %85 : vector<64x32xf32>
    %cst_40 = arith.constant 0.797884583 : f32
    %87 = vector.broadcast %cst_40 : f32 to vector<64x32xf32>
    %88 = arith.mulf %87, %86 : vector<64x32xf32>
    %89 = math.tanh %88 : vector<64x32xf32>
    %cst_41 = arith.constant 1.000000e+00 : f32
    %90 = vector.broadcast %cst_41 : f32 to vector<64x32xf32>
    %91 = arith.addf %90, %89 : vector<64x32xf32>
    %92 = arith.mulf %81, %91 : vector<64x32xf32>
    %93 = arith.truncf %92 : vector<64x32xf32> to vector<64x32xbf16>
    %94 = arith.truncf %74 : vector<64x32xf32> to vector<64x32xbf16>
    %95 = arith.mulf %93, %94 : vector<64x32xbf16>
    %c0_42 = arith.constant 0 : index
    %c0_43 = arith.constant 0 : index
    %96 = vector.load %arg12[%c0_42, %c0_43] : memref<32x32xbf16, #tpu.memory_space<vmem>>, vector<32x32xbf16>
    %cst_44 = arith.constant dense<0.000000e+00> : vector<64x32xf32>
    %97 = tpu.matmul %95, %96, %cst_44 {dimension_numbers = #tpu.dot_dimension_numbers<[1], [0], [0], [1], [0, 0, 1, 1], [], []>} : vector<64x32xbf16>, vector<32x32xbf16>, vector<64x32xf32> -> vector<64x32xf32>
    %c0_45 = arith.constant 0 : index
    %c0_46 = arith.constant 0 : index
    %98 = vector.load %arg13[%c0_45, %c0_46] : memref<1x32xf32, #tpu.memory_space<vmem>>, vector<1x32xf32>
    %99 = vector.broadcast %98 : vector<1x32xf32> to vector<64x32xf32>
    %100 = arith.addf %97, %99 : vector<64x32xf32>
    %101 = arith.addf %100, %1 : vector<64x32xf32>
    %102 = vector.shape_cast %101 : vector<64x32xf32> to vector<8x8x32xf32>
    %c0_47 = arith.constant 0 : index
    %c0_48 = arith.constant 0 : index
    %c0_49 = arith.constant 0 : index
    %103 = vector.load %arg14[%c0_47, %c0_48, %c0_49] : memref<8x8x32xf32, #tpu.memory_space<vmem>>, vector<8x8x32xf32>
    tpu.vector_store %arg14[%c0_47, %c0_48, %c0_49], %102 {strides = array<i32>} : memref<8x8x32xf32, #tpu.memory_space<vmem>>, vector<8x8x32xf32>,
    return
  }
  func.func @transform_0(%arg0: i32) -> (i32, i32, i32) {
    %c0_i32 = arith.constant 0 : i32
    %c0_i32_0 = arith.constant 0 : i32
    %c0_i32_1 = arith.constant 0 : i32
    return %c0_i32, %arg0, %c0_i32_0 : i32, i32, i32
  }
  func.func @transform_1(%arg0: i32) -> (i32, i32) {
    %c0_i32 = arith.constant 0 : i32
    %c0_i32_0 = arith.constant 0 : i32
    %c0_i32_1 = arith.constant 0 : i32
    return %c0_i32, %c0_i32_0 : i32, i32
  }
  func.func @transform_2(%arg0: i32) -> (i32, i32) {
    %c0_i32 = arith.constant 0 : i32
    %c0_i32_0 = arith.constant 0 : i32
    %c0_i32_1 = arith.constant 0 : i32
    return %c0_i32, %c0_i32_0 : i32, i32
  }
  func.func @transform_3(%arg0: i32) -> (i32, i32) {
    %c0_i32 = arith.constant 0 : i32
    %c0_i32_0 = arith.constant 0 : i32
    %c0_i32_1 = arith.constant 0 : i32
    return %c0_i32, %c0_i32_0 : i32, i32
  }
  func.func @transform_4(%arg0: i32) -> (i32, i32) {
    %c0_i32 = arith.constant 0 : i32
    %c0_i32_0 = arith.constant 0 : i32
    %c0_i32_1 = arith.constant 0 : i32
    return %c0_i32, %c0_i32_0 : i32, i32
  }
  func.func @transform_5(%arg0: i32) -> (i32, i32) {
    %c0_i32 = arith.constant 0 : i32
    %c0_i32_0 = arith.constant 0 : i32
    %c0_i32_1 = arith.constant 0 : i32
    return %c0_i32, %c0_i32_0 : i32, i32
  }
  func.func @transform_6(%arg0: i32) -> (i32, i32) {
    %c0_i32 = arith.constant 0 : i32
    %c0_i32_0 = arith.constant 0 : i32
    %c0_i32_1 = arith.constant 0 : i32
    return %c0_i32, %c0_i32_0 : i32, i32
  }
  func.func @transform_7(%arg0: i32) -> (i32, i32) {
    %c0_i32 = arith.constant 0 : i32
    %c0_i32_0 = arith.constant 0 : i32
    %c0_i32_1 = arith.constant 0 : i32
    return %c0_i32, %c0_i32_0 : i32, i32
  }
  func.func @transform_8(%arg0: i32) -> (i32, i32) {
    %c0_i32 = arith.constant 0 : i32
    %c0_i32_0 = arith.constant 0 : i32
    %c0_i32_1 = arith.constant 0 : i32
    return %c0_i32, %c0_i32_0 : i32, i32
  }
  func.func @transform_9(%arg0: i32) -> (i32, i32) {
    %c0_i32 = arith.constant 0 : i32
    %c0_i32_0 = arith.constant 0 : i32
    %c0_i32_1 = arith.constant 0 : i32
    return %c0_i32, %c0_i32_0 : i32, i32
  }
  func.func @transform_10(%arg0: i32) -> (i32, i32) {
    %c0_i32 = arith.constant 0 : i32
    %c0_i32_0 = arith.constant 0 : i32
    %c0_i32_1 = arith.constant 0 : i32
    return %c0_i32, %c0_i32_0 : i32, i32
  }
  func.func @transform_11(%arg0: i32) -> (i32, i32) {
    %c0_i32 = arith.constant 0 : i32
    %c0_i32_0 = arith.constant 0 : i32
    %c0_i32_1 = arith.constant 0 : i32
    return %c0_i32, %c0_i32_0 : i32, i32
  }
  func.func @transform_12(%arg0: i32) -> (i32, i32) {
    %c0_i32 = arith.constant 0 : i32
    %c0_i32_0 = arith.constant 0 : i32
    %c0_i32_1 = arith.constant 0 : i32
    return %c0_i32, %c0_i32_0 : i32, i32
  }
  func.func @transform_13(%arg0: i32) -> (i32, i32, i32) {
    %c0_i32 = arith.constant 0 : i32
    %c0_i32_0 = arith.constant 0 : i32
    %c0_i32_1 = arith.constant 0 : i32
    return %c0_i32, %arg0, %c0_i32_0 : i32, i32, i32
  }
}

</mosaic_0001>

<bundles_post_ra>
// kernel: tpu_custom_call.1
= control target key start
LH: loop header
LB: loop body
LE: loop exit
PB: predicated region body
PF: predicated region fallthrough
CT: control target
= control target key end

     0   :  { %18 = vsyncpa [#allocation3], 0  ;;  %s2056_s0 = inlined_call_operand.vmem [shape: f32[8,8,32], index: 0, kind: input, shape index: {}]   ;;  %s2057_s1 = inlined_call_operand.vmem [shape: f32[1,32], index: 1, kind: input, shape index: {}]   ;;  %s2058_s2 = inlined_call_operand.vmem [shape: f32[1,32], index: 2, kind: input, shape index: {}]   ;;  %s2059_s3 = inlined_call_operand.hbm [shape: bf16[32,32], index: 3, kind: input, shape index: {}]   ;;  %s2060_s4 = inlined_call_operand.hbm [shape: f32[1,32], index: 4, kind: input, shape index: {}]   ;;  %s2061_s5 = inlined_call_operand.hbm [shape: bf16[32,32], index: 5, kind: input, shape index: {}]   ;;  %s2062_s6 = inlined_call_operand.hbm [shape: f32[1,32], index: 6, kind: input, shape index: {}]   ;;  %s2063_s7 = inlined_call_operand.hbm [shape: f32[1,32], index: 7, kind: input, shape index: {}]   ;;  %s2064_s8 = inlined_call_operand.hbm [shape: f32[1,32], index: 8, kind: input, shape index: {}]   ;;  %s2065_s9 = inlined_call_operand.vmem [shape: bf16[64,64], index: 9, kind: input, shape index: {}]   ;;  %s2066_s10 = inlined_call_operand.vmem [shape: f32[64,1], index: 10, kind: input, shape index: {}]   ;;  %s2067_s11 = inlined_call_operand.hbm [shape: bf16[32,32], index: 11, kind: input, shape index: {}]   ;;  %s2068_s12 = inlined_call_operand.vmem [shape: f32[1,32], index: 12, kind: input, shape index: {}]   ;;  %s2069_s13 = inlined_call_operand.hbm [shape: f32[8,8,32], index: 13, kind: output, shape index: {}]  }
   0x1   :  { %19 = vsyncpa [#allocation6], 0 }
   0x2   :  { %20 = vsyncpa [#allocation9], 0 }
   0x3   :  { %21 = vsyncpa [#allocation12], 0 }
   0x4   :  { %22 = vsyncpa [#allocation4], 0  ;;  %s1447_s25 = smov [#allocation5]   ;;  %s1448_s27 = smov [#allocation8]  }
   0x5   :  { %s47_s26 = sshll.u32 %s1447_s25, 4  ;;  %s69_s28 = sshll.u32 %s1448_s27, 4  ;;  %s48_s26 = int_to_ptr.vmem [resolvable:$true] %s47_s26  ;;  %s70_s28 = int_to_ptr.vmem [resolvable:$true] %s69_s28 }
   0x6   :  { %s1261_s14 = scalar_lea.hbm %s2060_s4, 16 }
   0x7   :  { %p1262_p0 = scmp.ne.s32.totalorder %s2060_s4, %s1261_s14  ;;  %p1265_p1 = scmp.lt.u32.totalorder %s1261_s14, %s2060_s4 }
   0x9   :  { %p1267_p2 = pnand %p1265_p1, %p1262_p0 }
   0xb   :  { %1270 = shalt.err (!%p1267_p2)
}
   0xc   :  { %s1271_s19 = scalar_lea.vmem %s48_s26, 16  ;;  %s1275_s20 = scalar_lea.vmem %s48_s26, 32 }
   0xd   :  { %p1272_p3 = scmp.ne.s32.totalorder %s48_s26, %s1271_s19  ;;  %p1276_p4 = scmp.lt.s32.totalorder %s48_s26, %s48_s26 }
   0xe   :  { %p1277_p5 = scmp.lt.s32.totalorder %s1275_s20, %s1271_s19 }
  0x10   :  { %p1278_p6 = por %p1277_p5, %p1276_p4 }
  0x12   :  { %p1279_p7 = pnand %p1278_p6, %p1272_p3 }
  0x14   :  { %1282 = shalt.err (!%p1279_p7)
}
  0x15   :  { %50 = dma.hbm_to_vmem [thread:$0]  %s2060_s4, 16, %s48_s26, [#allocation6]  }
  0x16   :  { %s1283_s25 = scalar_lea.hbm %s2062_s6, 16 }
  0x17   :  { %p1284_p8 = scmp.ne.s32.totalorder %s2062_s6, %s1283_s25  ;;  %p1287_p9 = scmp.lt.u32.totalorder %s1283_s25, %s2062_s6 }
  0x19   :  { %p1289_p10 = pnand %p1287_p9, %p1284_p8 }
  0x1b   :  { %1292 = shalt.err (!%p1289_p10)
}
  0x1c   :  { %s1293_s15 = scalar_lea.vmem %s70_s28, 16  ;;  %s1297_s16 = scalar_lea.vmem %s70_s28, 32 }
  0x1d   :  { %p1294_p11 = scmp.ne.s32.totalorder %s70_s28, %s1293_s15  ;;  %p1298_p12 = scmp.lt.s32.totalorder %s70_s28, %s70_s28 }
  0x1e   :  { %p1299_p13 = scmp.lt.s32.totalorder %s1297_s16, %s1293_s15 }
  0x20   :  { %p1300_p0 = por %p1299_p13, %p1298_p12 }
  0x22   :  { %p1301_p1 = pnand %p1300_p0, %p1294_p11 }
  0x24   :  { %1304 = shalt.err (!%p1301_p1)
}
  0x25   :  { %72 = dma.hbm_to_vmem [thread:$0]  %s2062_s6, 16, %s70_s28, [#allocation9]  }
  0x26   :  { %s1449_s17 = smov [#allocation11]   ;;  %s1450_s19 = smov [#allocation2]  }
  0x27   :  { %s89_s18 = sshll.u32 %s1449_s17, 4  ;;  %s34_s20 = sshll.u32 %s1450_s19, 4  ;;  %s90_s18 = int_to_ptr.vmem [resolvable:$true] %s89_s18  ;;  %s1554_s20 = int_to_ptr.vmem [resolvable:$true] %s34_s20 }
  0x28   :  { %s1305_s23 = scalar_lea.hbm %s2064_s8, 16 }
  0x29   :  { %p1306_p2 = scmp.ne.s32.totalorder %s2064_s8, %s1305_s23  ;;  %p1309_p3 = scmp.lt.u32.totalorder %s1305_s23, %s2064_s8 }
  0x2b   :  { %p1311_p4 = pnand %p1309_p3, %p1306_p2 }
  0x2d   :  { %1314 = shalt.err (!%p1311_p4)
}
  0x2e   :  { %s1315_s6 = scalar_lea.vmem %s90_s18, 16  ;;  %s1319_s28 = scalar_lea.vmem %s90_s18, 32 }
  0x2f   :  { %p1316_p5 = scmp.ne.s32.totalorder %s90_s18, %s1315_s6  ;;  %p1320_p6 = scmp.lt.s32.totalorder %s90_s18, %s90_s18 }
  0x30   :  { %p1321_p7 = scmp.lt.s32.totalorder %s1319_s28, %s1315_s6 }
  0x32   :  { %p1322_p8 = por %p1321_p7, %p1320_p6 }
  0x34   :  { %p1323_p9 = pnand %p1322_p8, %p1316_p5 }
  0x36   :  { %1326 = shalt.err (!%p1323_p9)
}
  0x37   :  { %92 = dma.hbm_to_vmem [thread:$0]  %s2064_s8, 16, %s90_s18, [#allocation12]  }
  0x38   :  { %s1327_s4 = scalar_lea.hbm %s2059_s3, 256 }
  0x39   :  { %p1328_p10 = scmp.ne.s32.totalorder %s2059_s3, %s1327_s4  ;;  %p1331_p11 = scmp.lt.u32.totalorder %s1327_s4, %s2059_s3 }
  0x3b   :  { %p1333_p12 = pnand %p1331_p11, %p1328_p10 }
  0x3d   :  { %1336 = shalt.err (!%p1333_p12)
}
  0x3e   :  { %s1337_s22 = scalar_lea.vmem %s1554_s20, 256  ;;  %p1342_p0 = scmp.lt.s32.totalorder %s1554_s20, %s1554_s20 }
  0x3f   :  { %p1338_p13 = scmp.ne.s32.totalorder %s1554_s20, %s1337_s22  ;;  %p1343_p1 = scmp.lt.s32.totalorder %s1337_s22, %s1337_s22 }
  0x41   :  { %p1344_p2 = por %p1343_p1, %p1342_p0 }
  0x43   :  { %p1345_p3 = pnand %p1344_p2, %p1338_p13 }
  0x45   :  { %1348 = shalt.err (!%p1345_p3)
}
  0x46   :  { %s1451_s8 = smov 64   ;;  %s1452_s18 = smov 4  }
  0x47   :  { %40 = dma.hbm_to_vmem [thread:$0]  %s2059_s3, 256, %s1554_s20, [#allocation3], %s1451_s8, %s1451_s8, %s1452_s18  }
  0x48   :  { %s1453_s25 = smov [#allocation7]   ;;  %s1454_s29 = smov [#allocation10]  }
  0x49   :  { %s56_s27 = sshll.u32 %s1453_s25, 4  ;;  %s79_s6 = sshll.u32 %s1454_s29, 4  ;;  %s57_s27 = int_to_ptr.vmem [resolvable:$true] %s56_s27  ;;  %s80_s6 = int_to_ptr.vmem [resolvable:$true] %s79_s6 }
  0x4a   :  { %s1349_s14 = scalar_lea.hbm %s2061_s5, 256 }
  0x4b   :  { %p1350_p4 = scmp.ne.s32.totalorder %s2061_s5, %s1349_s14  ;;  %p1353_p5 = scmp.lt.u32.totalorder %s1349_s14, %s2061_s5 }
  0x4d   :  { %p1355_p6 = pnand %p1353_p5, %p1350_p4 }
  0x4f   :  { %1358 = shalt.err (!%p1355_p6)
}
  0x50   :  { %s1359_s3 = scalar_lea.vmem %s57_s27, 256  ;;  %p1364_p8 = scmp.lt.s32.totalorder %s57_s27, %s57_s27 }
  0x51   :  { %p1360_p7 = scmp.ne.s32.totalorder %s57_s27, %s1359_s3  ;;  %p1365_p9 = scmp.lt.s32.totalorder %s1359_s3, %s1359_s3 }
  0x53   :  { %p1366_p10 = por %p1365_p9, %p1364_p8 }
  0x55   :  { %p1367_p11 = pnand %p1366_p10, %p1360_p7 }
  0x57   :  { %1370 = shalt.err (!%p1367_p11)
}
  0x58   :  { %62 = dma.hbm_to_vmem [thread:$0]  %s2061_s5, 256, %s57_s27, [#allocation6], %s1451_s8, %s1451_s8, %s1452_s18  }
  0x59   :  { %s1371_s22 = scalar_lea.hbm %s2063_s7, 16 }
  0x5a   :  { %p1372_p12 = scmp.ne.s32.totalorder %s2063_s7, %s1371_s22  ;;  %p1375_p13 = scmp.lt.u32.totalorder %s1371_s22, %s2063_s7 }
  0x5c   :  { %p1377_p0 = pnand %p1375_p13, %p1372_p12 }
  0x5e   :  { %1380 = shalt.err (!%p1377_p0)
}
  0x5f   :  { %s1381_s28 = scalar_lea.vmem %s80_s6, 16  ;;  %s1385_s30 = scalar_lea.vmem %s80_s6, 32 }
  0x60   :  { %p1382_p1 = scmp.ne.s32.totalorder %s80_s6, %s1381_s28  ;;  %p1386_p2 = scmp.lt.s32.totalorder %s80_s6, %s80_s6 }
  0x61   :  { %p1387_p3 = scmp.lt.s32.totalorder %s1385_s30, %s1381_s28 }
  0x63   :  { %p1388_p4 = por %p1387_p3, %p1386_p2 }
  0x65   :  { %p1389_p5 = pnand %p1388_p4, %p1382_p1 }
  0x67   :  { %1392 = shalt.err (!%p1389_p5)
}
  0x68   :  { %82 = dma.hbm_to_vmem [thread:$0]  %s2063_s7, 16, %s80_s6, [#allocation9]  }
  0x69   :  { %s1455_s14 = smov [#allocation13]   ;;  %s1393_s26 = scalar_lea.hbm %s2067_s11, 256 }
  0x6a   :  { %s102_s15 = sshll.u32 %s1455_s14, 4  ;;  %p1394_p6 = scmp.ne.s32.totalorder %s2067_s11, %s1393_s26  ;;  %s103_s15 = int_to_ptr.vmem [resolvable:$true] %s102_s15 }
  0x6b   :  { %p1397_p7 = scmp.lt.u32.totalorder %s1393_s26, %s2067_s11 }
  0x6d   :  { %p1399_p8 = pnand %p1397_p7, %p1394_p6 }
  0x6f   :  { %1402 = shalt.err (!%p1399_p8)
}
  0x70   :  { %s1403_s21 = scalar_lea.vmem %s103_s15, 256  ;;  %p1408_p10 = scmp.lt.s32.totalorder %s103_s15, %s103_s15 }
  0x71   :  { %p1404_p9 = scmp.ne.s32.totalorder %s103_s15, %s1403_s21  ;;  %p1409_p11 = scmp.lt.s32.totalorder %s1403_s21, %s1403_s21 }
  0x73   :  { %p1410_p12 = por %p1409_p11, %p1408_p10 }
  0x75   :  { %p1411_p13 = pnand %p1410_p12, %p1404_p9 }
  0x77   :  { %1414 = shalt.err (!%p1411_p13)
}
  0x78   :  { %108 = dma.hbm_to_vmem [thread:$0]  %s2067_s11, 256, %s103_s15, [#allocation12], %s1451_s8, %s1451_s8, %s1452_s18  }
  0x79   :  { %1437 = dma.done.wait [#allocation3], 256  }
  0x7a   :  { %1438 = vsyncadd [#allocation3], 4294967040 }
  0x7b   :  { %1439 = dma.done.wait [#allocation6], 272  }
  0x7c   :  { %1440 = vsyncadd [#allocation6], 4294967024 }
  0x7d   :  { %1441 = dma.done.wait [#allocation9], 32  }
  0x7e   :  { %1442 = vsyncadd [#allocation9], 4294967264 }
  0x7f   :  { %1443 = dma.done.wait [#allocation12], 272  }
  0x80   :  { %1444 = vsyncadd [#allocation12], 4294967024  ;;  %vm141_vm0 = vcmask 261120   ;;  %v133_v0 = vld [vmem:[%s2056_s0] sm:$0xff]  ;;  %v135_v1 = vld [vmem:[%s2056_s0 + $0x10] sm:$0xff]  ;;  %vm667_vm1 = vcmask 523264  }
  0x81   :  { %v134_v2 = vld [vmem:[%s2056_s0 + $0x8] sm:$0xff]  ;;  %v142_v3 = vsel %vm141_vm0, %v133_v0, 0.0  ;;  %v148_v4 = vsel %vm141_vm0, %v135_v1, 0.0  ;;  %v136_v5 = vld [vmem:[%s2056_s0 + $0x18] sm:$0xff]  ;;  %v137_v6 = vld [vmem:[%s2056_s0 + $0x20] sm:$0xff]  ;;  %s1457_s23 = smov [#allocation14]  }
  0x82   :  { %v138_v7 = vld [vmem:[%s2056_s0 + $0x28] sm:$0xff]  ;;  %143 = vadd.xlane.f32.xlu0 %v142_v3  ;;  %149 = vadd.xlane.f32.xlu1 %v148_v4  ;;  %v145_v8 = vsel %vm141_vm0, %v134_v2, 0.0  ;;  %v151_v9 = vsel %vm141_vm0, %v136_v5, 0.0  ;;  %v154_v10 = vsel %vm141_vm0, %v137_v6, 0.0  ;;  %v139_v12 = vld [vmem:[%s2056_s0 + $0x30] sm:$0xff]  ;;  %v140_v13 = vld [vmem:[%s2056_s0 + $0x38] sm:$0xff] }
  0x83   :  { %v157_v11 = vsel %vm141_vm0, %v138_v7, 0.0  ;;  %v160_v14 = vsel %vm141_vm0, %v139_v12, 0.0  ;;  %v163_v15 = vsel %vm141_vm0, %v140_v13, 0.0  ;;  %v1179_v56 = vld [vmem:[#allocation7] sm:$0xff]   ;;  %v1180_v57 = vld [vmem:[#allocation7 + $0x8] sm:$0xff]   ;;  %s1038_s24 = sshll.u32 %s1457_s23, 4  ;;  %s1039_s24 = int_to_ptr.vmem [resolvable:$true] %s1038_s24 }
  0x84   :  { %1112 = vmatprep.subr.bf16.mxu0 %v1179_v56  ;;  %v1702_v58 = vld [vmem:[#allocation2] sm:$0xff]   ;;  %s1415_s30 = scalar_lea.vmem %s1039_s24, 1024  ;;  %p1420_p1 = scmp.lt.s32.totalorder %s1039_s24, %s1039_s24 }
  0x85   :  { %1113 = vmatpush3.bf16.msra.mxu0 %v1179_v56  ;;  %p1416_p0 = scmp.ne.s32.totalorder %s1039_s24, %s1415_s30  ;;  %p1421_p2 = scmp.lt.s32.totalorder %s1415_s30, %s1415_s30 }
  0x86   :  { %146 = vadd.xlane.f32.xlu0 %v145_v8  ;;  %152 = vadd.xlane.f32.xlu1 %v151_v9 }
  0x87   :  { %1114 = vmatprep.subr.bf16.mxu0 %v1180_v57  ;;  %p1422_p3 = por %p1421_p2, %p1420_p1 }
  0x89   :  { %1115 = vmatpush3.bf16.msra.mxu0 %v1180_v57  ;;  %p1423_p4 = pnand %p1422_p3, %p1416_p0 }
  0x8a   :  { %155 = vadd.xlane.f32.xlu0 %v154_v10  ;;  %158 = vadd.xlane.f32.xlu1 %v157_v11 }
  0x8b   :  { %1140 = vmatprep.subr.bf16.mxu0 %v1702_v58 }
  0x8e   :  { %161 = vadd.xlane.f32.xlu0 %v160_v14  ;;  %164 = vadd.xlane.f32.xlu1 %v163_v15 }
 0x10f   :  { %v144_v16 = vpop.xlane.xlu0 %143  ;;  %v150_v17 = vpop.xlane.xlu1 %149 }
 0x110   :  { %v167_v18 = vmul.f32 0.03125, %v144_v16  ;;  %v169_v19 = vmul.f32 0.03125, %v150_v17 }
 0x112   :  { %v1662_v20 = vsub.f32 %v133_v0, %v167_v18  ;;  %v1664_v21 = vsub.f32 %v135_v1, %v169_v19 }
 0x113   :  { %v147_v22 = vpop.xlane.xlu0 %146  ;;  %v153_v23 = vpop.xlane.xlu1 %152 }
 0x114   :  { %v168_v24 = vmul.f32 0.03125, %v147_v22  ;;  %v170_v25 = vmul.f32 0.03125, %v153_v23  ;;  %v183_v26 = vmul.f32 %v1662_v20, %v1662_v20  ;;  %v185_v27 = vmul.f32 %v1664_v21, %v1664_v21  ;;  %v1053_v22 = vld [vmem:[%s2057_s1] ss:$0 sm:$0xff] }
 0x116   :  { %v1670_v28 = vsub.f32 %v134_v2, %v168_v24  ;;  %v1672_v29 = vsub.f32 %v136_v5, %v170_v25  ;;  %v191_v30 = vsel %vm141_vm0, %v183_v26, 0.0  ;;  %v197_v33 = vsel %vm141_vm0, %v185_v27, 0.0 }
 0x117   :  { %192 = vadd.xlane.f32.xlu0 %v191_v30  ;;  %v156_v31 = vpop.xlane.xlu0 %155  ;;  %v159_v32 = vpop.xlane.xlu1 %158 }
 0x118   :  { %v171_v34 = vmul.f32 0.03125, %v156_v31  ;;  %v172_v35 = vmul.f32 0.03125, %v159_v32  ;;  %v184_v36 = vmul.f32 %v1670_v28, %v1670_v28  ;;  %v186_v37 = vmul.f32 %v1672_v29, %v1672_v29 }
 0x11a   :  { %v1680_v38 = vsub.f32 %v137_v6, %v171_v34  ;;  %v1682_v39 = vsub.f32 %v138_v7, %v172_v35  ;;  %v194_v40 = vsel %vm141_vm0, %v184_v36, 0.0  ;;  %v200_v43 = vsel %vm141_vm0, %v186_v37, 0.0 }
 0x11b   :  { %198 = vadd.xlane.f32.xlu0 %v197_v33  ;;  %195 = vadd.xlane.f32.xlu1 %v194_v40  ;;  %v162_v41 = vpop.xlane.xlu0 %161  ;;  %v165_v42 = vpop.xlane.xlu1 %164 }
 0x11c   :  { %v173_v44 = vmul.f32 0.03125, %v162_v41  ;;  %v174_v45 = vmul.f32 0.03125, %v165_v42  ;;  %v187_v46 = vmul.f32 %v1680_v38, %v1680_v38  ;;  %v188_v47 = vmul.f32 %v1682_v39, %v1682_v39 }
 0x11e   :  { %v1690_v48 = vsub.f32 %v139_v12, %v173_v44  ;;  %v1692_v49 = vsub.f32 %v140_v13, %v174_v45  ;;  %v203_v50 = vsel %vm141_vm0, %v187_v46, 0.0  ;;  %v206_v51 = vsel %vm141_vm0, %v188_v47, 0.0 }
 0x11f   :  { %201 = vadd.xlane.f32.xlu1 %v200_v43  ;;  %204 = vadd.xlane.f32.xlu0 %v203_v50 }
 0x120   :  { %v189_v52 = vmul.f32 %v1690_v48, %v1690_v48  ;;  %v190_v53 = vmul.f32 %v1692_v49, %v1692_v49 }
 0x122   :  { %v209_v54 = vsel %vm141_vm0, %v189_v52, 0.0  ;;  %v212_v55 = vsel %vm141_vm0, %v190_v53, 0.0 }
 0x123   :  { %207 = vadd.xlane.f32.xlu1 %v206_v51  ;;  %210 = vadd.xlane.f32.xlu0 %v209_v54  ;;  %v1182_v51 = vld [vmem:[#allocation2 + $0x8] sm:$0xff]  }
 0x127   :  { %213 = vadd.xlane.f32.xlu1 %v212_v55 }
 0x1a4   :  { %v193_v59 = vpop.xlane.xlu0 %192 }
 0x1a5   :  { %v215_v60 = vmul.f32 0.03125, %v193_v59 }
 0x1a7   :  { %v223_v61 = vadd.f32 1e-05, %v215_v60 }
 0x1a8   :  { %v196_v62 = vpop.xlane.xlu1 %195  ;;  %v199_v63 = vpop.xlane.xlu0 %198 }
 0x1a9   :  { %1189 = vrsqrt.f32 %v223_v61  ;;  %v216_v0 = vmul.f32 0.03125, %v196_v62  ;;  %v217_v1 = vmul.f32 0.03125, %v199_v63 }
 0x1ab   :  { %v224_v2 = vadd.f32 1e-05, %v216_v0  ;;  %v225_v3 = vadd.f32 1e-05, %v217_v1 }
 0x1ac   :  { %v202_v4 = vpop.xlane.xlu1 %201  ;;  %v205_v5 = vpop.xlane.xlu0 %204 }
 0x1ad   :  { %1191 = vrsqrt.f32 %v224_v2  ;;  %v218_v6 = vmul.f32 0.03125, %v202_v4  ;;  %v219_v7 = vmul.f32 0.03125, %v205_v5 }
 0x1ae   :  { %1193 = vrsqrt.f32 %v225_v3 }
 0x1af   :  { %v226_v8 = vadd.f32 1e-05, %v218_v6  ;;  %v227_v9 = vadd.f32 1e-05, %v219_v7 }
 0x1b0   :  { %v208_v10 = vpop.xlane.xlu1 %207  ;;  %v211_v11 = vpop.xlane.xlu0 %210 }
 0x1b1   :  { %1195 = vrsqrt.f32 %v226_v8  ;;  %v220_v12 = vmul.f32 0.03125, %v208_v10  ;;  %v221_v13 = vmul.f32 0.03125, %v211_v11 }
 0x1b2   :  { %1197 = vrsqrt.f32 %v227_v9 }
 0x1b3   :  { %v1190_v14 = vpop.eup %1189  ;;  %v228_v15 = vadd.f32 1e-05, %v220_v12  ;;  %v229_v16 = vadd.f32 1e-05, %v221_v13 }
 0x1b4   :  { %v214_v17 = vpop.xlane.xlu1 %213  ;;  %v239_v18 = vmul.f32 %v1190_v14, %v1662_v20  ;;  %v1054_v20 = vld [vmem:[%s2058_s2] ss:$0 sm:$0xff] }
 0x1b5   :  { %1199 = vrsqrt.f32 %v228_v15  ;;  %v222_v19 = vmul.f32 0.03125, %v214_v17 }
 0x1b6   :  { %1201 = vrsqrt.f32 %v229_v16  ;;  %v254_v27 = vmul.f32 %v1053_v22, %v239_v18 }
 0x1b7   :  { %v1192_v23 = vpop.eup %1191  ;;  %v230_v24 = vadd.f32 1e-05, %v222_v19 }
 0x1b8   :  { %v1194_v25 = vpop.eup %1193  ;;  %v240_v26 = vmul.f32 %v1192_v23, %v1670_v28  ;;  %v269_v35 = vadd.f32 %v1054_v20, %v254_v27 }
 0x1b9   :  { %v241_v30 = vmul.f32 %v1194_v25, %v1664_v21  ;;  %1203 = vrsqrt.f32 %v230_v24 }
 0x1ba   :  { %v255_v31 = vmul.f32 %v1053_v22, %v240_v26 }
 0x1bb   :  { %v1196_v32 = vpop.eup %1195  ;;  %v256_v37 = vmul.f32 %v1053_v22, %v241_v30 }
 0x1bc   :  { %v1198_v33 = vpop.eup %1197  ;;  %v242_v34 = vmul.f32 %v1196_v32, %v1672_v29  ;;  %v270_v36 = vadd.f32 %v1054_v20, %v255_v31 }
 0x1bd   :  { %v243_v40 = vmul.f32 %v1198_v33, %v1680_v38  ;;  %v271_v44 = vadd.f32 %v1054_v20, %v256_v37  ;;  %v1762_v37 = vld [vmem:[#allocation5] ss:$0 sm:$0xff] }
 0x1be   :  { %v277_v41 = vpack.c.bf16 %v270_v36, %v269_v35  ;;  %v257_v28 = vmul.f32 %v1053_v22, %v242_v34 }
 0x1bf   :  { %v1200_v42 = vpop.eup %1199  ;;  %v258_v46 = vmul.f32 %v1053_v22, %v243_v40 }
 0x1c0   :  { %v1202_v43 = vpop.eup %1201  ;;  %v244_v21 = vmul.f32 %v1200_v42, %v1682_v39  ;;  %1116 = vmatprep.mubr.msk.bf16.mxu0 %vm141_vm0, %v277_v41  ;;  %v272_v45 = vadd.f32 %v1054_v20, %v257_v28 }
 0x1c1   :  { %v245_v47 = vmul.f32 %v1202_v43, %v1690_v48  ;;  %v273_v38 = vadd.f32 %v1054_v20, %v258_v46 }
 0x1c2   :  { %v278_v50 = vpack.c.bf16 %v272_v45, %v271_v44  ;;  %v259_v29 = vmul.f32 %v1053_v22, %v244_v21 }
 0x1c3   :  { %v1204_v52 = vpop.eup %1203  ;;  %v260_v55 = vmul.f32 %v1053_v22, %v245_v47 }
 0x1c4   :  { %v246_v53 = vmul.f32 %v1204_v52, %v1692_v49  ;;  %1117 = vmatmul.mubr.msk.bf16.vlgmr.msra.gmra.mrb[0].mxu0 %vm141_vm0, %v278_v50  ;;  %v274_v54 = vadd.f32 %v1054_v20, %v259_v29  ;;  %v1055_v49 = vld [vmem:[#allocation8] ss:$0 sm:$0xff] }
 0x1c5   :  { %1141 = vmatpush3.bf16.msra.mxu0 %v1702_v58  ;;  %v275_v57 = vadd.f32 %v1054_v20, %v260_v55 }
 0x1c6   :  { %v279_v39 = vpack.c.bf16 %v274_v54, %v273_v38  ;;  %v261_v56 = vmul.f32 %v1053_v22, %v246_v53  ;;  %1142 = vmatprep.subr.bf16.mxu0 %v1182_v51 }
 0x1c8   :  { %1120 = vmatprep.mubr.msk.bf16.mxu0 %vm141_vm0, %v279_v39  ;;  %v276_v48 = vadd.f32 %v1054_v20, %v261_v56 }
 0x1c9   :  { %1143 = vmatpush3.bf16.msra.mxu0 %v1182_v51 }
 0x1ca   :  { %v280_v59 = vpack.c.bf16 %v276_v48, %v275_v57 }
 0x1cc   :  { %1121 = vmatmul.mubr.msk.bf16.gmra.mrb[4].mxu0 %vm141_vm0, %v280_v59 }
 0x1cd   :  { %1144 = vmatprep.mubr.msk.bf16.mxu0 %vm141_vm0, %v277_v41 }
 0x1d4   :  { %1145 = vmatmul.mubr.msk.bf16.vlgmr.msra.gmra.mrb[8].mxu0 %vm141_vm0, %v278_v50 }
 0x1d5   :  { %1148 = vmatprep.mubr.msk.bf16.mxu0 %vm141_vm0, %v279_v39 }
 0x1dc   :  { %1149 = vmatmul.mubr.msk.bf16.gmra.mrb[12].mxu0 %vm141_vm0, %v280_v59 }
 0x297   :  { %v1118_v58 = vpop.f32.mrb[0].mxu0 }
 0x298   :  { %v359_v60 = vadd.f32 %v1118_v58, %v1055_v49  ;;  %v350_v61 = vpop.f32.mrb[1].mxu0 }
 0x299   :  { %v1728_v62 = vadd.f32 %v1055_v49, %v350_v61  ;;  %v1119_v63 = vpop.f32.mrb[2].mxu0 }
 0x29a   :  { %v391_v0 = vmul.f32 %v359_v60, %v359_v60  ;;  %v1730_v1 = vadd.f32 %v1119_v63, %v1055_v49  ;;  %v353_v2 = vpop.f32.mrb[3].mxu0  ;;  %v1781_v55 = vmul.f32 0.5, %v359_v60 }
 0x29b   :  { %v389_v3 = vmul.f32 %v1728_v62, %v1728_v62  ;;  %v1734_v4 = vadd.f32 %v1055_v49, %v353_v2  ;;  %v381_v61 = vmul.f32 0.5, %v1728_v62 }
 0x29c   :  { %v399_v5 = vmul.f32 %v391_v0, %v359_v60  ;;  %v392_v6 = vmul.f32 %v1730_v1, %v1730_v1 }
 0x29d   :  { %v397_v7 = vmul.f32 %v389_v3, %v1728_v62  ;;  %v390_v8 = vmul.f32 %v1734_v4, %v1734_v4  ;;  %v1797_v3 = vmul.f32 0.5, %v1730_v1 }
 0x29e   :  { %v407_v9 = vmul.f32 0.044715, %v399_v5  ;;  %v400_v10 = vmul.f32 %v392_v6, %v1730_v1 }
 0x29f   :  { %v405_v11 = vmul.f32 0.044715, %v397_v7  ;;  %v398_v12 = vmul.f32 %v390_v8, %v1734_v4  ;;  %v1122_v13 = vpop.f32.mrb[4].mxu0 }
 0x2a0   :  { %v408_v14 = vmul.f32 0.044715, %v400_v10  ;;  %v1743_v15 = vadd.f32 %v1122_v13, %v1055_v49  ;;  %v366_v16 = vpop.f32.mrb[5].mxu0  ;;  %v415_v17 = vadd.f32 %v407_v9, %v359_v60  ;;  %v382_v10 = vmul.f32 0.5, %v1734_v4 }
 0x2a1   :  { %v406_v18 = vmul.f32 0.044715, %v398_v12  ;;  %v1745_v19 = vadd.f32 %v1055_v49, %v366_v16  ;;  %v1123_v22 = vpop.f32.mrb[6].mxu0  ;;  %v413_v23 = vadd.f32 %v405_v11, %v1728_v62 }
 0x2a2   :  { %v395_v24 = vmul.f32 %v1743_v15, %v1743_v15  ;;  %v1750_v25 = vadd.f32 %v1123_v22, %v1055_v49  ;;  %v369_v26 = vpop.f32.mrb[7].mxu0  ;;  %v423_v27 = vmul.f32 0.7978846, %v415_v17  ;;  %v416_v34 = vadd.f32 %v408_v14, %v1730_v1 }
 0x2a3   :  { %v393_v30 = vmul.f32 %v1745_v19, %v1745_v19  ;;  %v1754_v20 = vadd.f32 %v1055_v49, %v369_v26  ;;  %v421_v31 = vmul.f32 0.7978846, %v413_v23  ;;  %v414_v32 = vadd.f32 %v406_v18, %v1734_v4 }
 0x2a4   :  { %v403_v33 = vmul.f32 %v395_v24, %v1743_v15  ;;  %1205 = vtanh.f32 %v423_v27  ;;  %v396_v41 = vmul.f32 %v1750_v25, %v1750_v25  ;;  %v424_v46 = vmul.f32 0.7978846, %v416_v34 }
 0x2a5   :  { %v401_v35 = vmul.f32 %v393_v30, %v1745_v19  ;;  %v394_v36 = vmul.f32 %v1754_v20, %v1754_v20  ;;  %1207 = vtanh.f32 %v421_v31  ;;  %v422_v43 = vmul.f32 0.7978846, %v414_v32 }
 0x2a6   :  { %v411_v40 = vmul.f32 0.044715, %v403_v33  ;;  %v404_v52 = vmul.f32 %v396_v41, %v1750_v25 }
 0x2a7   :  { %v409_v28 = vmul.f32 0.044715, %v401_v35  ;;  %v1146_v42 = vpop.f32.mrb[8].mxu0  ;;  %v402_v21 = vmul.f32 %v394_v36, %v1754_v20  ;;  %1209 = vtanh.f32 %v422_v43 }
 0x2a8   :  { %v1768_v44 = vadd.f32 %v1146_v42, %v1762_v37  ;;  %v802_v45 = vpop.f32.mrb[9].mxu0  ;;  %v419_v51 = vadd.f32 %v411_v40, %v1743_v15  ;;  %1211 = vtanh.f32 %v424_v46  ;;  %v412_v6 = vmul.f32 0.044715, %v404_v52 }
 0x2a9   :  { %v1771_v47 = vadd.f32 %v1762_v37, %v802_v45  ;;  %v1147_v50 = vpop.f32.mrb[10].mxu0  ;;  %v417_v29 = vadd.f32 %v409_v28, %v1745_v19  ;;  %v410_v48 = vmul.f32 0.044715, %v402_v21 }
 0x2aa   :  { %v843_v53 = vmul.f32 %v1768_v44, %v1768_v44  ;;  %v1779_v38 = vadd.f32 %v1147_v50, %v1762_v37  ;;  %v805_v54 = vpop.f32.mrb[11].mxu0  ;;  %v427_v63 = vmul.f32 0.7978846, %v419_v51  ;;  %v420_v51 = vadd.f32 %v412_v6, %v1750_v25 }
 0x2ab   :  { %v841_v39 = vmul.f32 %v1771_v47, %v1771_v47  ;;  %v1786_v56 = vadd.f32 %v1762_v37, %v805_v54  ;;  %v425_v57 = vmul.f32 0.7978846, %v417_v29  ;;  %v418_v1 = vadd.f32 %v410_v48, %v1754_v20 }
 0x2ac   :  { %v851_v59 = vmul.f32 %v843_v53, %v1768_v44  ;;  %v844_v49 = vmul.f32 %v1779_v38, %v1779_v38  ;;  %v385_v6 = vmul.f32 0.5, %v1745_v19 }
 0x2ad   :  { %v849_v58 = vmul.f32 %v841_v39, %v1771_v47  ;;  %v842_v60 = vmul.f32 %v1786_v56, %v1786_v56  ;;  %1213 = vtanh.f32 %v425_v57  ;;  %v426_v46 = vmul.f32 0.7978846, %v418_v1 }
 0x2ae   :  { %v859_v0 = vmul.f32 0.044715, %v851_v59  ;;  %v852_v2 = vmul.f32 %v844_v49, %v1779_v38  ;;  %v1206_v5 = vpop.eup %1205  ;;  %1215 = vtanh.f32 %v427_v63  ;;  %v428_v1 = vmul.f32 0.7978846, %v420_v51 }
 0x2af   :  { %v857_v7 = vmul.f32 0.044715, %v849_v58  ;;  %v850_v8 = vmul.f32 %v842_v60, %v1786_v56  ;;  %v1150_v9 = vpop.f32.mrb[12].mxu0  ;;  %v1208_v11 = vpop.eup %1207  ;;  %v439_v27 = vadd.f32 1.0, %v1206_v5 }
 0x2b0   :  { %v867_v12 = vadd.f32 %v859_v0, %v1768_v44  ;;  %v860_v62 = vmul.f32 0.044715, %v852_v2  ;;  %v1803_v13 = vadd.f32 %v1150_v9, %v1762_v37  ;;  %v818_v14 = vpop.f32.mrb[13].mxu0  ;;  %v437_v33 = vadd.f32 1.0, %v1208_v11 }
 0x2b1   :  { %v865_v16 = vadd.f32 %v857_v7, %v1771_v47  ;;  %v858_v17 = vmul.f32 0.044715, %v850_v8  ;;  %v1808_v18 = vadd.f32 %v1762_v37, %v818_v14  ;;  %v1151_v22 = vpop.f32.mrb[14].mxu0  ;;  %v1210_v40 = vpop.eup %1209  ;;  %v1836_v59 = vmul.f32 %v439_v27, %v1781_v55 }
 0x2b2   :  { %v875_v23 = vmul.f32 0.7978846, %v867_v12  ;;  %v868_v4 = vadd.f32 %v860_v62, %v1779_v38  ;;  %v847_v24 = vmul.f32 %v1803_v13, %v1803_v13  ;;  %v821_v26 = vpop.f32.mrb[15].mxu0  ;;  %v1818_v36 = vadd.f32 %v1151_v22, %v1762_v37  ;;  %v1212_v43 = vpop.eup %1211 }
 0x2b3   :  { %v873_v30 = vmul.f32 0.7978846, %v865_v16  ;;  %v866_v31 = vadd.f32 %v858_v17, %v1786_v56  ;;  %v845_v32 = vmul.f32 %v1808_v18, %v1808_v18  ;;  %v1822_v42 = vadd.f32 %v1762_v37, %v821_v26 }
 0x2b4   :  { %1217 = vtanh.f32 %v875_v23  ;;  %v876_v34 = vmul.f32 0.7978846, %v868_v4  ;;  %v855_v35 = vmul.f32 %v847_v24, %v1803_v13  ;;  %v848_v45 = vmul.f32 %v1818_v36, %v1818_v36 }
 0x2b5   :  { %1219 = vtanh.f32 %v873_v30  ;;  %v874_v41 = vmul.f32 0.7978846, %v866_v31  ;;  %v853_v28 = vmul.f32 %v845_v32, %v1808_v18  ;;  %v846_v29 = vmul.f32 %v1822_v42, %v1822_v42 }
 0x2b6   :  { %1221 = vtanh.f32 %v876_v34  ;;  %v863_v21 = vmul.f32 0.044715, %v855_v35  ;;  %v856_v37 = vmul.f32 %v848_v45, %v1818_v36  ;;  %v1831_v54 = vmul.f32 %v437_v33, %v381_v61 }
 0x2b7   :  { %1223 = vtanh.f32 %v874_v41  ;;  %v861_v50 = vmul.f32 0.044715, %v853_v28  ;;  %v1214_v52 = vpop.eup %1213  ;;  %v438_v39 = vadd.f32 1.0, %v1210_v40  ;;  %v854_v48 = vmul.f32 %v846_v29, %v1822_v42 }
 0x2b8   :  { %v871_v53 = vadd.f32 %v863_v21, %v1803_v13  ;;  %v440_v49 = vadd.f32 1.0, %v1212_v43  ;;  %v864_v60 = vmul.f32 0.044715, %v856_v37  ;;  %v453_v63 = vsel %vm141_vm0, %v1831_v54, 0.0  ;;  %v1216_v2 = vpop.eup %1215 }
 0x2b9   :  { %v869_v57 = vadd.f32 %v861_v50, %v1808_v18  ;;  %v1840_v0 = vmul.f32 %v438_v39, %v382_v10  ;;  %v862_v61 = vmul.f32 0.044715, %v854_v48  ;;  %454 = vadd.xlane.f32.xlu0 %v453_v63  ;;  %v441_v7 = vadd.f32 1.0, %v1214_v52 }
 0x2ba   :  { %v879_v58 = vmul.f32 0.7978846, %v871_v53  ;;  %v872_v8 = vadd.f32 %v864_v60, %v1818_v36  ;;  %v1847_v9 = vmul.f32 %v440_v49, %v1797_v3  ;;  %v459_v11 = vsel %vm141_vm0, %v1836_v59, 0.0 }
 0x2bb   :  { %v877_v5 = vmul.f32 0.7978846, %v869_v57  ;;  %v456_v55 = vsel %vm141_vm0, %v1840_v0, 0.0  ;;  %v870_v10 = vadd.f32 %v862_v61, %v1822_v42  ;;  %v1852_v12 = vmul.f32 %v441_v7, %v385_v6 }
 0x2bc   :  { %1225 = vtanh.f32 %v879_v58  ;;  %457 = vadd.xlane.f32.xlu1 %v456_v55  ;;  %v880_v62 = vmul.f32 0.7978846, %v872_v8  ;;  %v443_v14 = vadd.f32 1.0, %v1216_v2  ;;  %v835_v17 = vmul.f32 0.5, %v1768_v44 }
 0x2bd   :  { %1227 = vtanh.f32 %v877_v5  ;;  %v878_v22 = vmul.f32 0.7978846, %v870_v10  ;;  %460 = vadd.xlane.f32.xlu0 %v459_v11  ;;  %v387_v3 = vmul.f32 0.5, %v1743_v15  ;;  %v462_v24 = vsel %vm141_vm0, %v1847_v9, 0.0 }
 0x2be   :  { %v1218_v19 = vpop.eup %1217  ;;  %1229 = vtanh.f32 %v426_v46  ;;  %v465_v26 = vsel %vm141_vm0, %v1852_v12, 0.0  ;;  %v833_v31 = vmul.f32 0.5, %v1771_v47  ;;  %v836_v32 = vmul.f32 0.5, %v1779_v38 }
 0x2bf   :  { %v1220_v16 = vpop.eup %1219  ;;  %v891_v23 = vadd.f32 1.0, %v1218_v19  ;;  %1231 = vtanh.f32 %v880_v62  ;;  %v834_v15 = vmul.f32 0.5, %v1786_v56  ;;  %v1863_v33 = vmul.f32 %v443_v14, %v387_v3 }
 0x2c0   :  { %v1222_v4 = vpop.eup %1221  ;;  %v889_v27 = vadd.f32 1.0, %v1220_v16  ;;  %1233 = vtanh.f32 %v878_v22  ;;  %463 = vadd.xlane.f32.xlu1 %v462_v24  ;;  %v386_v46 = vmul.f32 0.5, %v1754_v20  ;;  %v839_v37 = vmul.f32 0.5, %v1803_v13 }
 0x2c1   :  { %v1224_v30 = vpop.eup %1223  ;;  %v892_v44 = vadd.f32 1.0, %v1222_v4  ;;  %1235 = vtanh.f32 %v428_v1  ;;  %466 = vadd.xlane.f32.xlu0 %v465_v26  ;;  %v1865_v35 = vmul.f32 %v891_v23, %v835_v17  ;;  %v471_v56 = vsel %vm141_vm0, %v1863_v33, 0.0 }
 0x2c2   :  { %v890_v34 = vadd.f32 1.0, %v1224_v30  ;;  %v1869_v41 = vmul.f32 %v889_v27, %v833_v31  ;;  %v840_v39 = vmul.f32 0.5, %v1818_v36  ;;  %v837_v58 = vmul.f32 0.5, %v1808_v18 }
 0x2c3   :  { %v1867_v40 = vmul.f32 %v892_v44, %v836_v32  ;;  %v838_v60 = vmul.f32 0.5, %v1822_v42  ;;  %v388_v63 = vmul.f32 0.5, %v1750_v25 }
 0x2c4   :  { %v1871_v28 = vmul.f32 %v890_v34, %v834_v15 }
 0x2c5   :  { %v906_v47 = vpack.c.bf16 %v1867_v40, %v1865_v35  ;;  %472 = vadd.xlane.f32.xlu0 %v471_v56 }
 0x2c6   :  { %v1226_v38 = vpop.eup %1225  ;;  %v905_v43 = vpack.c.bf16 %v1871_v28, %v1869_v41  ;;  %v1079_v28 = vld [vmem:[%s2068_s12] ss:$0 sm:$0xff] }
 0x2c7   :  { %v1228_v21 = vpop.eup %1227  ;;  %v895_v29 = vadd.f32 1.0, %v1226_v38 }
 0x2c8   :  { %v1230_v45 = vpop.eup %1229  ;;  %v893_v52 = vadd.f32 1.0, %v1228_v21 }
 0x2c9   :  { %v442_v50 = vadd.f32 1.0, %v1230_v45  ;;  %v1232_v51 = vpop.eup %1231  ;;  %v1886_v61 = vmul.f32 %v895_v29, %v839_v37 }
 0x2ca   :  { %v1234_v53 = vpop.eup %1233  ;;  %v896_v48 = vadd.f32 1.0, %v1232_v51  ;;  %v1890_v13 = vmul.f32 %v893_v52, %v837_v58  ;;  %v601_v58 = vld [vmem:[%s2066_s10 + $0x10] sm:$0xff] }
 0x2cb   :  { %v450_v57 = vmul.f32 %v442_v50, %v386_v46  ;;  %v1236_v49 = vpop.eup %1235  ;;  %v894_v2 = vadd.f32 1.0, %v1234_v53 }
 0x2cc   :  { %v444_v5 = vadd.f32 1.0, %v1236_v49  ;;  %v1888_v6 = vmul.f32 %v896_v48, %v840_v39  ;;  %v1183_v39 = vld [vmem:[%s2065_s9] sm:$0xff]   ;;  %v1456_v48 = vmov 0  }
 0x2cd   :  { %v468_v20 = vsel %vm141_vm0, %v450_v57, 0.0  ;;  %v1892_v36 = vmul.f32 %v894_v2, %v838_v60  ;;  %1132 = vmatprep.mubr.msk.bf16.mxu1 %vm667_vm1, %v1183_v39  ;;  %1178 = vset.pattern.permute.xlu1 %v1456_v48  ;;  %v599_v49 = vld [vmem:[%s2066_s10] sm:$0xff]  ;;  %v602_v60 = vld [vmem:[%s2066_s10 + $0x18] sm:$0xff]  ;;  %v604_v2 = vld [vmem:[%s2066_s10 + $0x28] sm:$0xff] }
 0x2ce   :  { %469 = vadd.xlane.f32.xlu1 %v468_v20  ;;  %v452_v7 = vmul.f32 %v444_v5, %v388_v63  ;;  %v908_v18 = vpack.c.bf16 %v1888_v6, %v1886_v61  ;;  %1177 = vset.pattern.permute.xlu0 %v1456_v48  ;;  %v603_v63 = vld [vmem:[%s2066_s10 + $0x20] sm:$0xff]  ;;  %v605_v20 = vld [vmem:[%s2066_s10 + $0x30] sm:$0xff]  ;;  %v606_v5 = vld [vmem:[%s2066_s10 + $0x38] sm:$0xff] }
 0x2cf   :  { %v907_v25 = vpack.c.bf16 %v1892_v36, %v1890_v13  ;;  %v1253_v61 = vld [vmem:[%s2056_s0 + $0x10] sm:$0xff] }
 0x2d0   :  { %v474_v42 = vsel %vm141_vm0, %v452_v7, 0.0 }
 0x2d2   :  { %475 = vadd.xlane.f32.xlu1 %v474_v42 }
 0x346   :  { %v455_v8 = vpop.xlane.xlu0 %454 }
 0x347   :  { %v477_v55 = vmul.f32 0.03125, %v455_v8 }
 0x349   :  { %v458_v10 = vpop.xlane.xlu1 %457  ;;  %v1900_v11 = vsub.f32 %v1831_v54, %v477_v55 }
 0x34a   :  { %v478_v19 = vmul.f32 0.03125, %v458_v10  ;;  %v461_v62 = vpop.xlane.xlu0 %460 }
 0x34b   :  { %v479_v1 = vmul.f32 0.03125, %v461_v62  ;;  %v493_v16 = vmul.f32 %v1900_v11, %v1900_v11 }
 0x34c   :  { %v1903_v14 = vsub.f32 %v1840_v0, %v478_v19 }
 0x34d   :  { %v464_v17 = vpop.xlane.xlu1 %463  ;;  %v1908_v22 = vsub.f32 %v1836_v59, %v479_v1  ;;  %v501_v23 = vsel %vm141_vm0, %v493_v16, 0.0 }
 0x34e   :  { %v480_v3 = vmul.f32 0.03125, %v464_v17  ;;  %v494_v54 = vmul.f32 %v1903_v14, %v1903_v14  ;;  %502 = vadd.xlane.f32.xlu0 %v501_v23  ;;  %v467_v4 = vpop.xlane.xlu0 %466 }
 0x34f   :  { %v481_v0 = vmul.f32 0.03125, %v467_v4  ;;  %v495_v27 = vmul.f32 %v1908_v22, %v1908_v22 }
 0x350   :  { %v1914_v24 = vsub.f32 %v1847_v9, %v480_v3  ;;  %v504_v26 = vsel %vm141_vm0, %v494_v54, 0.0 }
 0x351   :  { %505 = vadd.xlane.f32.xlu1 %v504_v26  ;;  %v1920_v59 = vsub.f32 %v1852_v12, %v481_v0  ;;  %v507_v30 = vsel %vm141_vm0, %v495_v27, 0.0 }
 0x352   :  { %v496_v31 = vmul.f32 %v1914_v24, %v1914_v24  ;;  %508 = vadd.xlane.f32.xlu0 %v507_v30  ;;  %v473_v32 = vpop.xlane.xlu0 %472 }
 0x353   :  { %v483_v44 = vmul.f32 0.03125, %v473_v32  ;;  %v497_v15 = vmul.f32 %v1920_v59, %v1920_v59 }
 0x354   :  { %v510_v9 = vsel %vm141_vm0, %v496_v31, 0.0  ;;  %v1062_v31 = vld [vmem:[#allocation10] ss:$0 sm:$0xff] }
 0x355   :  { %511 = vadd.xlane.f32.xlu1 %v510_v9  ;;  %v1929_v34 = vsub.f32 %v1863_v33, %v483_v44  ;;  %v513_v12 = vsel %vm141_vm0, %v497_v15, 0.0 }
 0x356   :  { %514 = vadd.xlane.f32.xlu0 %v513_v12 }
 0x357   :  { %v499_v38 = vmul.f32 %v1929_v34, %v1929_v34 }
 0x359   :  { %v519_v21 = vsel %vm141_vm0, %v499_v38, 0.0  ;;  %v1063_v38 = vld [vmem:[#allocation11] ss:$0 sm:$0xff] }
 0x35a   :  { %520 = vadd.xlane.f32.xlu0 %v519_v21 }
 0x35b   :  { %v470_v56 = vpop.xlane.xlu1 %469 }
 0x35c   :  { %v482_v45 = vmul.f32 0.03125, %v470_v56 }
 0x35e   :  { %v1935_v46 = vsub.f32 %v450_v57, %v482_v45  ;;  %v600_v57 = vld [vmem:[%s2066_s10 + $0x8] sm:$0xff] }
 0x35f   :  { %v476_v50 = vpop.xlane.xlu1 %475 }
 0x360   :  { %v484_v29 = vmul.f32 0.03125, %v476_v50  ;;  %v498_v51 = vmul.f32 %v1935_v46, %v1935_v46 }
 0x362   :  { %v1939_v33 = vsub.f32 %v452_v7, %v484_v29  ;;  %v516_v52 = vsel %vm141_vm0, %v498_v51, 0.0 }
 0x363   :  { %517 = vadd.xlane.f32.xlu1 %v516_v52 }
 0x364   :  { %v500_v53 = vmul.f32 %v1939_v33, %v1939_v33 }
 0x366   :  { %v522_v37 = vsel %vm141_vm0, %v500_v53, 0.0 }
 0x367   :  { %523 = vadd.xlane.f32.xlu1 %v522_v37 }
 0x370   :  { %609 = vperm.xlu0 %1177, %v599_v49  }
 0x378   :  { %614 = vperm.xlu1 %1178, %v600_v57  }
 0x37c   :  { %619 = vperm.xlu1 %1178, %v601_v58  }
 0x380   :  { %624 = vperm.xlu1 %1178, %v602_v60  }
 0x384   :  { %629 = vperm.xlu1 %1178, %v603_v63  }
 0x388   :  { %634 = vperm.xlu1 %1178, %v604_v2  }
 0x38c   :  { %639 = vperm.xlu1 %1178, %v605_v20  }
 0x390   :  { %644 = vperm.xlu1 %1178, %v606_v5  }
 0x3db   :  { %v503_v7 = vpop.xlane.xlu0 %502 }
 0x3dc   :  { %v525_v42 = vmul.f32 0.03125, %v503_v7 }
 0x3de   :  { %v506_v8 = vpop.xlane.xlu1 %505  ;;  %v533_v55 = vadd.f32 1e-05, %v525_v42 }
 0x3df   :  { %v526_v10 = vmul.f32 0.03125, %v506_v8  ;;  %v509_v19 = vpop.xlane.xlu0 %508 }
 0x3e0   :  { %1237 = vrsqrt.f32 %v533_v55  ;;  %v527_v1 = vmul.f32 0.03125, %v509_v19 }
 0x3e1   :  { %v534_v62 = vadd.f32 1e-05, %v526_v10 }
 0x3e2   :  { %v512_v16 = vpop.xlane.xlu1 %511  ;;  %v535_v17 = vadd.f32 1e-05, %v527_v1 }
 0x3e3   :  { %1239 = vrsqrt.f32 %v534_v62  ;;  %v528_v3 = vmul.f32 0.03125, %v512_v16  ;;  %v515_v23 = vpop.xlane.xlu0 %514 }
 0x3e4   :  { %1241 = vrsqrt.f32 %v535_v17  ;;  %v529_v4 = vmul.f32 0.03125, %v515_v23 }
 0x3e5   :  { %v536_v54 = vadd.f32 1e-05, %v528_v3 }
 0x3e6   :  { %v537_v27 = vadd.f32 1e-05, %v529_v4  ;;  %v1187_v4 = vld [vmem:[#allocation13] sm:$0xff]  }
 0x3e7   :  { %1243 = vrsqrt.f32 %v536_v54  ;;  %v521_v0 = vpop.xlane.xlu0 %520 }
 0x3e8   :  { %v531_v26 = vmul.f32 0.03125, %v521_v0  ;;  %1245 = vrsqrt.f32 %v537_v27  ;;  %v1188_v0 = vld [vmem:[#allocation13 + $0x8] sm:$0xff]  }
 0x3ea   :  { %v1238_v30 = vpop.eup %1237  ;;  %v539_v9 = vadd.f32 1e-05, %v531_v26 }
 0x3eb   :  { %v549_v32 = vmul.f32 %v1238_v30, %v1900_v11 }
 0x3ec   :  { %1247 = vrsqrt.f32 %v539_v9 }
 0x3ed   :  { %v1240_v44 = vpop.eup %1239  ;;  %v564_v12 = vmul.f32 %v1062_v31, %v549_v32 }
 0x3ee   :  { %v550_v15 = vmul.f32 %v1240_v44, %v1903_v14  ;;  %v1242_v56 = vpop.eup %1241 }
 0x3ef   :  { %v551_v29 = vmul.f32 %v1242_v56, %v1908_v22  ;;  %v579_v52 = vadd.f32 %v1063_v38, %v564_v12 }
 0x3f0   :  { %v518_v21 = vpop.xlane.xlu1 %517  ;;  %v565_v50 = vmul.f32 %v1062_v31, %v550_v15  ;;  %v610_v15 = vpop.permute.xlu0 %609 }
 0x3f1   :  { %v530_v45 = vmul.f32 0.03125, %v518_v21  ;;  %v1244_v51 = vpop.eup %1243  ;;  %v566_v39 = vmul.f32 %v1062_v31, %v551_v29 }
 0x3f2   :  { %v580_v37 = vadd.f32 %v1063_v38, %v565_v50  ;;  %v552_v11 = vmul.f32 %v1244_v51, %v1914_v24  ;;  %v1246_v2 = vpop.eup %1245 }
 0x3f3   :  { %v538_v53 = vadd.f32 1e-05, %v530_v45  ;;  %v581_v60 = vadd.f32 %v1063_v38, %v566_v39  ;;  %v553_v5 = vmul.f32 %v1246_v2, %v1920_v59 }
 0x3f4   :  { %v524_v57 = vpop.xlane.xlu1 %523  ;;  %v595_v14 = vpack.c.bf16 %v580_v37, %v579_v52  ;;  %v567_v49 = vmul.f32 %v1062_v31, %v552_v11 }
 0x3f5   :  { %1249 = vrsqrt.f32 %v538_v53  ;;  %v532_v48 = vmul.f32 0.03125, %v524_v57  ;;  %v568_v42 = vmul.f32 %v1062_v31, %v553_v5 }
 0x3f6   :  { %1124 = vmatprep.subr.bf16.mxu1 %v595_v14  ;;  %v582_v63 = vadd.f32 %v1063_v38, %v567_v49  ;;  %v1248_v20 = vpop.eup %1247 }
 0x3f7   :  { %v540_v58 = vadd.f32 1e-05, %v532_v48  ;;  %1125 = vmatpush3.bf16.msra.mxu1 %v595_v14  ;;  %v555_v8 = vmul.f32 %v1248_v20, %v1929_v34  ;;  %v583_v19 = vadd.f32 %v1063_v38, %v568_v42  ;;  %v1184_v34 = vld [vmem:[%s2065_s9 + $0x8] sm:$0xff]  }
 0x3f8   :  { %v596_v22 = vpack.c.bf16 %v582_v63, %v581_v60  ;;  %v615_v26 = vpop.permute.xlu1 %614 }
 0x3f9   :  { %1251 = vrsqrt.f32 %v540_v58  ;;  %v570_v16 = vmul.f32 %v1062_v31, %v555_v8  ;;  %v1256_v8 = vld [vmem:[%s2056_s0 + $0x8] sm:$0xff] }
 0x3fa   :  { %1126 = vmatprep.subr.bf16.mxu1 %v596_v22 }
 0x3fb   :  { %1127 = vmatpush3.bf16.msra.mxu1 %v596_v22  ;;  %v585_v23 = vadd.f32 %v1063_v38, %v570_v16 }
 0x3fc   :  { %v620_v27 = vpop.permute.xlu1 %619 }
 0x3ff   :  { %v1250_v24 = vpop.eup %1249 }
 0x400   :  { %v554_v7 = vmul.f32 %v1250_v24, %v1935_v46  ;;  %v1185_v46 = vld [vmem:[%s2065_s9 + $0x10] sm:$0xff]   ;;  %v625_v30 = vpop.permute.xlu1 %624 }
 0x402   :  { %v569_v55 = vmul.f32 %v1062_v31, %v554_v7  ;;  %v1255_v7 = vld [vmem:[%s2056_s0 + $0x18] sm:$0xff] }
 0x403   :  { %v1252_v10 = vpop.eup %1251 }
 0x404   :  { %v584_v62 = vadd.f32 %v1063_v38, %v569_v55  ;;  %v556_v1 = vmul.f32 %v1252_v10, %v1939_v33  ;;  %v1186_v33 = vld [vmem:[%s2065_s9 + $0x18] sm:$0xff]  }
 0x406   :  { %v597_v17 = vpack.c.bf16 %v584_v62, %v583_v19  ;;  %v571_v3 = vmul.f32 %v1062_v31, %v556_v1  ;;  %v630_v31 = vpop.permute.xlu1 %629 }
 0x408   :  { %1128 = vmatprep.subr.bf16.mxu1 %v597_v17  ;;  %v586_v54 = vadd.f32 %v1063_v38, %v571_v3 }
 0x409   :  { %1129 = vmatpush3.bf16.msra.mxu1 %v597_v17  ;;  %v1257_v17 = vld [vmem:[%s2056_s0 + $0x30] sm:$0xff] }
 0x40a   :  { %v598_v59 = vpack.c.bf16 %v586_v54, %v585_v23  ;;  %v635_v32 = vpop.permute.xlu1 %634 }
 0x40c   :  { %1130 = vmatprep.subr.bf16.mxu1 %v598_v59 }
 0x40d   :  { %1131 = vmatpush3.bf16.msra.mxu1 %v598_v59  ;;  %v1258_v59 = vld [vmem:[%s2056_s0 + $0x20] sm:$0xff] }
 0x40e   :  { %1152 = vmatprep.subr.bf16.mxu1 %v1187_v4  ;;  %v640_v45 = vpop.permute.xlu1 %639 }
 0x410   :  { %1133 = vmatmul.mubr.msk.bf16.vlgmr.msra.gmra.mrb[0].mxu1 %vm667_vm1, %v1184_v34 }
 0x411   :  { %1136 = vmatprep.mubr.msk.bf16.mxu1 %vm667_vm1, %v1185_v46  ;;  %1153 = vmatpush3.bf16.msra.mxu1 %v1187_v4  ;;  %v1259_v46 = vld [vmem:[%s2056_s0 + $0x38] sm:$0xff] }
 0x412   :  { %1154 = vmatprep.subr.bf16.mxu1 %v1188_v0  ;;  %v645_v57 = vpop.permute.xlu1 %644 }
 0x415   :  { %1155 = vmatpush3.bf16.msra.mxu1 %v1188_v0  ;;  %v1260_v0 = vld [vmem:[%s2056_s0 + $0x28] sm:$0xff] }
 0x418   :  { %1137 = vmatmul.mubr.msk.bf16.gmra.mrb[4].mxu1 %vm667_vm1, %v1186_v33 }
 0x4e3   :  { %v1134_v44 = vpop.f32.mrb[0].mxu1 }
 0x4e4   :  { %v714_v9 = vpop.f32.mrb[1].mxu1  ;;  %v723_v38 = vadd.f32 %v1134_v44, %v620_v27 }
 0x4e5   :  { %v1135_v12 = vpop.f32.mrb[2].mxu1  ;;  %v715_v50 = vadd.f32 %v714_v9, %v610_v15 }
 0x4e6   :  { %v726_v56 = vadd.f32 %v1135_v12, %v625_v30  ;;  %v717_v21 = vpop.f32.mrb[3].mxu1 }
 0x4e7   :  { %v718_v29 = vadd.f32 %v717_v21, %v615_v26 }
 0x4e8   :  { %v910_v51 = vpack.c.bf16 %v726_v56, %v723_v38 }
 0x4e9   :  { %v909_v52 = vpack.c.bf16 %v718_v29, %v715_v50 }
 0x4ea   :  { %v914_v53 = vmul.bf16 %v910_v51, %v906_v47 }
 0x4eb   :  { %v913_v37 = vmul.bf16 %v909_v52, %v905_v43  ;;  %v1138_v11 = vpop.f32.mrb[4].mxu1 }
 0x4ec   :  { %v730_v39 = vpop.f32.mrb[5].mxu1  ;;  %v739_v14 = vadd.f32 %v1138_v11, %v640_v45 }
 0x4ed   :  { %v1139_v48 = vpop.f32.mrb[6].mxu1  ;;  %1156 = vmatprep.mubr.msk.bf16.mxu1 %vm141_vm0, %v913_v37  ;;  %v731_v60 = vadd.f32 %v730_v39, %v630_v31 }
 0x4ee   :  { %v742_v49 = vadd.f32 %v1139_v48, %v645_v57  ;;  %v733_v58 = vpop.f32.mrb[7].mxu1  ;;  %1157 = vmatmul.mubr.msk.bf16.vlgmr.msra.gmra.mrb[8].mxu1 %vm141_vm0, %v914_v53 }
 0x4ef   :  { %v734_v63 = vadd.f32 %v733_v58, %v635_v32 }
 0x4f0   :  { %v912_v2 = vpack.c.bf16 %v742_v49, %v739_v14 }
 0x4f1   :  { %v911_v35 = vpack.c.bf16 %v734_v63, %v731_v60 }
 0x4f2   :  { %v916_v40 = vmul.bf16 %v912_v2, %v908_v18  ;;  %v1254_v18 = vld [vmem:[%s2056_s0] sm:$0xff] }
 0x4f3   :  { %v915_v41 = vmul.bf16 %v911_v35, %v907_v25 }
 0x4f5   :  { %1160 = vmatprep.mubr.msk.bf16.mxu1 %vm141_vm0, %v915_v41 }
 0x4f6   :  { %1161 = vmatmul.mubr.msk.bf16.gmra.mrb[12].mxu1 %vm141_vm0, %v916_v40 }
 0x5c1   :  { %v1158_v47 = vpop.f32.mrb[8].mxu1 }
 0x5c2   :  { %v995_v43 = vadd.f32 %v1158_v47, %v1079_v28  ;;  %v986_v22 = vpop.f32.mrb[9].mxu1 }
 0x5c3   :  { %v987_v20 = vadd.f32 %v1079_v28, %v986_v22  ;;  %v1159_v5 = vpop.f32.mrb[10].mxu1 }
 0x5c4   :  { %v1019_v6 = vadd.f32 %v1253_v61, %v995_v43  ;;  %v998_v13 = vadd.f32 %v1159_v5, %v1079_v28  ;;  %v989_v36 = vpop.f32.mrb[11].mxu1 }
 0x5c5   :  { %v1017_v25 = vadd.f32 %v1254_v18, %v987_v20  ;;  %v990_v24 = vadd.f32 %v1079_v28, %v989_v36 }
 0x5c6   :  { %1027 = vst.msk [vmem:[#allocation14 + $0x10] sm:$0xff] %vm141_vm0, %v1019_v6  ;;  %v1020_v42 = vadd.f32 %v1255_v7, %v998_v13 }
 0x5c7   :  { %1025 = vst.msk [vmem:[#allocation14] sm:$0xff] %vm141_vm0, %v1017_v25  ;;  %v1018_v55 = vadd.f32 %v1256_v8, %v990_v24 }
 0x5c8   :  { %1028 = vst.msk [vmem:[#allocation14 + $0x18] sm:$0xff] %vm141_vm0, %v1020_v42 }
 0x5c9   :  { %1026 = vst.msk [vmem:[#allocation14 + $0x8] sm:$0xff] %vm141_vm0, %v1018_v55  ;;  %v1162_v10 = vpop.f32.mrb[12].mxu1 }
 0x5ca   :  { %v1011_v19 = vadd.f32 %v1162_v10, %v1079_v28  ;;  %v1002_v62 = vpop.f32.mrb[13].mxu1 }
 0x5cb   :  { %v1003_v1 = vadd.f32 %v1079_v28, %v1002_v62  ;;  %v1163_v16 = vpop.f32.mrb[14].mxu1 }
 0x5cc   :  { %v1023_v3 = vadd.f32 %v1257_v17, %v1011_v19  ;;  %v1014_v23 = vadd.f32 %v1163_v16, %v1079_v28  ;;  %v1005_v54 = vpop.f32.mrb[15].mxu1 }
 0x5cd   :  { %v1021_v4 = vadd.f32 %v1258_v59, %v1003_v1  ;;  %v1006_v34 = vadd.f32 %v1079_v28, %v1005_v54 }
 0x5ce   :  { %1031 = vst.msk [vmem:[#allocation14 + $0x30] sm:$0xff] %vm141_vm0, %v1023_v3  ;;  %v1024_v33 = vadd.f32 %v1259_v46, %v1014_v23 }
 0x5cf   :  { %1029 = vst.msk [vmem:[#allocation14 + $0x20] sm:$0xff] %vm141_vm0, %v1021_v4  ;;  %v1022_v26 = vadd.f32 %v1260_v0, %v1006_v34 }
 0x5d0   :  { %1032 = vst.msk [vmem:[#allocation14 + $0x38] sm:$0xff] %vm141_vm0, %v1024_v33 }
 0x5d1   :  { %1030 = vst.msk [vmem:[#allocation14 + $0x28] sm:$0xff] %vm141_vm0, %v1022_v26 }
 0x5d2   :  { %1426 = shalt.err (!%p1423_p4)
}
 0x5d3   :  { %s1427_s10 = scalar_lea.hbm %s2069_s13, 1024 }
 0x5d4   :  { %p1428_p5 = scmp.ne.s32.totalorder %s2069_s13, %s1427_s10  ;;  %p1431_p6 = scmp.lt.u32.totalorder %s1427_s10, %s2069_s13 }
 0x5d6   :  { %p1433_p7 = pnand %p1431_p6, %p1428_p5 }
 0x5d8   :  { %1436 = shalt.err (!%p1433_p7)
}
 0x5d9   :  { %s1458_s4 = smov 128   ;;  %s1459_s26 = smov 8  }
 0x5da   :  { %1044 = dma.vmem_to_hbm [thread:$0]  %s1039_s24, 1024, %s2069_s13, [#allocation4], %s1458_s4, %s1458_s4, %s1459_s26  }
 0x5db   :  { %1445 = dma.done.wait [#allocation4], 1024  }
 0x5dc   :  { %1446 = vsyncadd [#allocation4], 4294966272 }
 0x5dd   :  { %1048 = vsyncpa [#allocation3], 1 }
 0x5de   :  { %1049 = vsyncpa [#allocation6], 1 }
 0x5df   :  { %1050 = vsyncpa [#allocation9], 1 }
 0x5e0   :  { %1051 = vsyncpa [#allocation12], 1 }
 0x5e1   :  { %1052 = vsyncpa [#allocation4], 1 }

// kernel: tpu_custom_call.1
= control target key start
LH: loop header
LB: loop body
LE: loop exit
PB: predicated region body
PF: predicated region fallthrough
CT: control target
= control target key end

     0   :  { %18 = vsyncpa [#allocation3], 0  ;;  %s2056_s0 = inlined_call_operand.vmem [shape: f32[8,8,32], index: 0, kind: input, shape index: {}]   ;;  %s2057_s1 = inlined_call_operand.vmem [shape: f32[1,32], index: 1, kind: input, shape index: {}]   ;;  %s2058_s2 = inlined_call_operand.vmem [shape: f32[1,32], index: 2, kind: input, shape index: {}]   ;;  %s2059_s3 = inlined_call_operand.hbm [shape: bf16[32,32], index: 3, kind: input, shape index: {}]   ;;  %s2060_s4 = inlined_call_operand.hbm [shape: f32[1,32], index: 4, kind: input, shape index: {}]   ;;  %s2061_s5 = inlined_call_operand.hbm [shape: bf16[32,32], index: 5, kind: input, shape index: {}]   ;;  %s2062_s6 = inlined_call_operand.hbm [shape: f32[1,32], index: 6, kind: input, shape index: {}]   ;;  %s2063_s7 = inlined_call_operand.hbm [shape: f32[1,32], index: 7, kind: input, shape index: {}]   ;;  %s2064_s8 = inlined_call_operand.hbm [shape: f32[1,32], index: 8, kind: input, shape index: {}]   ;;  %s2065_s9 = inlined_call_operand.vmem [shape: bf16[64,64], index: 9, kind: input, shape index: {}]   ;;  %s2066_s10 = inlined_call_operand.vmem [shape: f32[64,1], index: 10, kind: input, shape index: {}]   ;;  %s2067_s11 = inlined_call_operand.hbm [shape: bf16[32,32], index: 11, kind: input, shape index: {}]   ;;  %s2068_s12 = inlined_call_operand.vmem [shape: f32[1,32], index: 12, kind: input, shape index: {}]   ;;  %s2069_s13 = inlined_call_operand.hbm [shape: f32[8,8,32], index: 13, kind: output, shape index: {}]  }
   0x1   :  { %19 = vsyncpa [#allocation6], 0 }
   0x2   :  { %20 = vsyncpa [#allocation9], 0 }
   0x3   :  { %21 = vsyncpa [#allocation12], 0 }
   0x4   :  { %22 = vsyncpa [#allocation4], 0  ;;  %s1447_s25 = smov [#allocation5]   ;;  %s1448_s27 = smov [#allocation8]  }
   0x5   :  { %s47_s26 = sshll.u32 %s1447_s25, 4  ;;  %s69_s28 = sshll.u32 %s1448_s27, 4  ;;  %s48_s26 = int_to_ptr.vmem [resolvable:$true] %s47_s26  ;;  %s70_s28 = int_to_ptr.vmem [resolvable:$true] %s69_s28 }
   0x6   :  { %s1261_s14 = scalar_lea.hbm %s2060_s4, 16 }
   0x7   :  { %p1262_p0 = scmp.ne.s32.totalorder %s2060_s4, %s1261_s14  ;;  %p1265_p1 = scmp.lt.u32.totalorder %s1261_s14, %s2060_s4 }
   0x9   :  { %p1267_p2 = pnand %p1265_p1, %p1262_p0 }
   0xb   :  { %1270 = shalt.err (!%p1267_p2)
}
   0xc   :  { %s1271_s19 = scalar_lea.vmem %s48_s26, 16  ;;  %s1275_s20 = scalar_lea.vmem %s48_s26, 32 }
   0xd   :  { %p1272_p3 = scmp.ne.s32.totalorder %s48_s26, %s1271_s19  ;;  %p1276_p4 = scmp.lt.s32.totalorder %s48_s26, %s48_s26 }
   0xe   :  { %p1277_p5 = scmp.lt.s32.totalorder %s1275_s20, %s1271_s19 }
  0x10   :  { %p1278_p6 = por %p1277_p5, %p1276_p4 }
  0x12   :  { %p1279_p7 = pnand %p1278_p6, %p1272_p3 }
  0x14   :  { %1282 = shalt.err (!%p1279_p7)
}
  0x15   :  { %50 = dma.hbm_to_vmem [thread:$0]  %s2060_s4, 16, %s48_s26, [#allocation6]  }
  0x16   :  { %s1283_s25 = scalar_lea.hbm %s2062_s6, 16 }
  0x17   :  { %p1284_p8 = scmp.ne.s32.totalorder %s2062_s6, %s1283_s25  ;;  %p1287_p9 = scmp.lt.u32.totalorder %s1283_s25, %s2062_s6 }
  0x19   :  { %p1289_p10 = pnand %p1287_p9, %p1284_p8 }
  0x1b   :  { %1292 = shalt.err (!%p1289_p10)
}
  0x1c   :  { %s1293_s15 = scalar_lea.vmem %s70_s28, 16  ;;  %s1297_s16 = scalar_lea.vmem %s70_s28, 32 }
  0x1d   :  { %p1294_p11 = scmp.ne.s32.totalorder %s70_s28, %s1293_s15  ;;  %p1298_p12 = scmp.lt.s32.totalorder %s70_s28, %s70_s28 }
  0x1e   :  { %p1299_p13 = scmp.lt.s32.totalorder %s1297_s16, %s1293_s15 }
  0x20   :  { %p1300_p0 = por %p1299_p13, %p1298_p12 }
  0x22   :  { %p1301_p1 = pnand %p1300_p0, %p1294_p11 }
  0x24   :  { %1304 = shalt.err (!%p1301_p1)
}
  0x25   :  { %72 = dma.hbm_to_vmem [thread:$0]  %s2062_s6, 16, %s70_s28, [#allocation9]  }
  0x26   :  { %s1449_s17 = smov [#allocation11]   ;;  %s1450_s19 = smov [#allocation2]  }
  0x27   :  { %s89_s18 = sshll.u32 %s1449_s17, 4  ;;  %s34_s20 = sshll.u32 %s1450_s19, 4  ;;  %s90_s18 = int_to_ptr.vmem [resolvable:$true] %s89_s18  ;;  %s1554_s20 = int_to_ptr.vmem [resolvable:$true] %s34_s20 }
  0x28   :  { %s1305_s23 = scalar_lea.hbm %s2064_s8, 16 }
  0x29   :  { %p1306_p2 = scmp.ne.s32.totalorder %s2064_s8, %s1305_s23  ;;  %p1309_p3 = scmp.lt.u32.totalorder %s1305_s23, %s2064_s8 }
  0x2b   :  { %p1311_p4 = pnand %p1309_p3, %p1306_p2 }
  0x2d   :  { %1314 = shalt.err (!%p1311_p4)
}
  0x2e   :  { %s1315_s6 = scalar_lea.vmem %s90_s18, 16  ;;  %s1319_s28 = scalar_lea.vmem %s90_s18, 32 }
  0x2f   :  { %p1316_p5 = scmp.ne.s32.totalorder %s90_s18, %s1315_s6  ;;  %p1320_p6 = scmp.lt.s32.totalorder %s90_s18, %s90_s18 }
  0x30   :  { %p1321_p7 = scmp.lt.s32.totalorder %s1319_s28, %s1315_s6 }
  0x32   :  { %p1322_p8 = por %p1321_p7, %p1320_p6 }
  0x34   :  { %p1323_p9 = pnand %p1322_p8, %p1316_p5 }
  0x36   :  { %1326 = shalt.err (!%p1323_p9)
}
  0x37   :  { %92 = dma.hbm_to_vmem [thread:$0]  %s2064_s8, 16, %s90_s18, [#allocation12]  }
  0x38   :  { %s1327_s4 = scalar_lea.hbm %s2059_s3, 256 }
  0x39   :  { %p1328_p10 = scmp.ne.s32.totalorder %s2059_s3, %s1327_s4  ;;  %p1331_p11 = scmp.lt.u32.totalorder %s1327_s4, %s2059_s3 }
  0x3b   :  { %p1333_p12 = pnand %p1331_p11, %p1328_p10 }
  0x3d   :  { %1336 = shalt.err (!%p1333_p12)
}
  0x3e   :  { %s1337_s22 = scalar_lea.vmem %s1554_s20, 256  ;;  %p1342_p0 = scmp.lt.s32.totalorder %s1554_s20, %s1554_s20 }
  0x3f   :  { %p1338_p13 = scmp.ne.s32.totalorder %s1554_s20, %s1337_s22  ;;  %p1343_p1 = scmp.lt.s32.totalorder %s1337_s22, %s1337_s22 }
  0x41   :  { %p1344_p2 = por %p1343_p1, %p1342_p0 }
  0x43   :  { %p1345_p3 = pnand %p1344_p2, %p1338_p13 }
  0x45   :  { %1348 = shalt.err (!%p1345_p3)
}
  0x46   :  { %s1451_s8 = smov 64   ;;  %s1452_s18 = smov 4  }
  0x47   :  { %40 = dma.hbm_to_vmem [thread:$0]  %s2059_s3, 256, %s1554_s20, [#allocation3], %s1451_s8, %s1451_s8, %s1452_s18  }
  0x48   :  { %s1453_s25 = smov [#allocation7]   ;;  %s1454_s29 = smov [#allocation10]  }
  0x49   :  { %s56_s27 = sshll.u32 %s1453_s25, 4  ;;  %s79_s6 = sshll.u32 %s1454_s29, 4  ;;  %s57_s27 = int_to_ptr.vmem [resolvable:$true] %s56_s27  ;;  %s80_s6 = int_to_ptr.vmem [resolvable:$true] %s79_s6 }
  0x4a   :  { %s1349_s14 = scalar_lea.hbm %s2061_s5, 256 }
  0x4b   :  { %p1350_p4 = scmp.ne.s32.totalorder %s2061_s5, %s1349_s14  ;;  %p1353_p5 = scmp.lt.u32.totalorder %s1349_s14, %s2061_s5 }
  0x4d   :  { %p1355_p6 = pnand %p1353_p5, %p1350_p4 }
  0x4f   :  { %1358 = shalt.err (!%p1355_p6)
}
  0x50   :  { %s1359_s3 = scalar_lea.vmem %s57_s27, 256  ;;  %p1364_p8 = scmp.lt.s32.totalorder %s57_s27, %s57_s27 }
  0x51   :  { %p1360_p7 = scmp.ne.s32.totalorder %s57_s27, %s1359_s3  ;;  %p1365_p9 = scmp.lt.s32.totalorder %s1359_s3, %s1359_s3 }
  0x53   :  { %p1366_p10 = por %p1365_p9, %p1364_p8 }
  0x55   :  { %p1367_p11 = pnand %p1366_p10, %p1360_p7 }
  0x57   :  { %1370 = shalt.err (!%p1367_p11)
}
  0x58   :  { %62 = dma.hbm_to_vmem [thread:$0]  %s2061_s5, 256, %s57_s27, [#allocation6], %s1451_s8, %s1451_s8, %s1452_s18  }
  0x59   :  { %s1371_s22 = scalar_lea.hbm %s2063_s7, 16 }
  0x5a   :  { %p1372_p12 = scmp.ne.s32.totalorder %s2063_s7, %s1371_s22  ;;  %p1375_p13 = scmp.lt.u32.totalorder %s1371_s22, %s2063_s7 }
  0x5c   :  { %p1377_p0 = pnand %p1375_p13, %p1372_p12 }
  0x5e   :  { %1380 = shalt.err (!%p1377_p0)
}
  0x5f   :  { %s1381_s28 = scalar_lea.vmem %s80_s6, 16  ;;  %s1385_s30 = scalar_lea.vmem %s80_s6, 32 }
  0x60   :  { %p1382_p1 = scmp.ne.s32.totalorder %s80_s6, %s1381_s28  ;;  %p1386_p2 = scmp.lt.s32.totalorder %s80_s6, %s80_s6 }
  0x61   :  { %p1387_p3 = scmp.lt.s32.totalorder %s1385_s30, %s1381_s28 }
  0x63   :  { %p1388_p4 = por %p1387_p3, %p1386_p2 }
  0x65   :  { %p1389_p5 = pnand %p1388_p4, %p1382_p1 }
  0x67   :  { %1392 = shalt.err (!%p1389_p5)
}
  0x68   :  { %82 = dma.hbm_to_vmem [thread:$0]  %s2063_s7, 16, %s80_s6, [#allocation9]  }
  0x69   :  { %s1455_s14 = smov [#allocation13]   ;;  %s1393_s26 = scalar_lea.hbm %s2067_s11, 256 }
  0x6a   :  { %s102_s15 = sshll.u32 %s1455_s14, 4  ;;  %p1394_p6 = scmp.ne.s32.totalorder %s2067_s11, %s1393_s26  ;;  %s103_s15 = int_to_ptr.vmem [resolvable:$true] %s102_s15 }
  0x6b   :  { %p1397_p7 = scmp.lt.u32.totalorder %s1393_s26, %s2067_s11 }
  0x6d   :  { %p1399_p8 = pnand %p1397_p7, %p1394_p6 }
  0x6f   :  { %1402 = shalt.err (!%p1399_p8)
}
  0x70   :  { %s1403_s21 = scalar_lea.vmem %s103_s15, 256  ;;  %p1408_p10 = scmp.lt.s32.totalorder %s103_s15, %s103_s15 }
  0x71   :  { %p1404_p9 = scmp.ne.s32.totalorder %s103_s15, %s1403_s21  ;;  %p1409_p11 = scmp.lt.s32.totalorder %s1403_s21, %s1403_s21 }
  0x73   :  { %p1410_p12 = por %p1409_p11, %p1408_p10 }
  0x75   :  { %p1411_p13 = pnand %p1410_p12, %p1404_p9 }
  0x77   :  { %1414 = shalt.err (!%p1411_p13)
}
  0x78   :  { %108 = dma.hbm_to_vmem [thread:$0]  %s2067_s11, 256, %s103_s15, [#allocation12], %s1451_s8, %s1451_s8, %s1452_s18  }
  0x79   :  { %1437 = dma.done.wait [#allocation3], 256  }
  0x7a   :  { %1438 = vsyncadd [#allocation3], 4294967040 }
  0x7b   :  { %1439 = dma.done.wait [#allocation6], 272  }
  0x7c   :  { %1440 = vsyncadd [#allocation6], 4294967024 }
  0x7d   :  { %1441 = dma.done.wait [#allocation9], 32  }
  0x7e   :  { %1442 = vsyncadd [#allocation9], 4294967264 }
  0x7f   :  { %1443 = dma.done.wait [#allocation12], 272  }
  0x80   :  { %1444 = vsyncadd [#allocation12], 4294967024  ;;  %vm141_vm0 = vcmask 261120   ;;  %v133_v0 = vld [vmem:[%s2056_s0] sm:$0xff]  ;;  %v135_v1 = vld [vmem:[%s2056_s0 + $0x10] sm:$0xff]  ;;  %vm667_vm1 = vcmask 523264  }
  0x81   :  { %v134_v2 = vld [vmem:[%s2056_s0 + $0x8] sm:$0xff]  ;;  %v142_v3 = vsel %vm141_vm0, %v133_v0, 0.0  ;;  %v148_v4 = vsel %vm141_vm0, %v135_v1, 0.0  ;;  %v136_v5 = vld [vmem:[%s2056_s0 + $0x18] sm:$0xff]  ;;  %v137_v6 = vld [vmem:[%s2056_s0 + $0x20] sm:$0xff]  ;;  %s1457_s23 = smov [#allocation14]  }
  0x82   :  { %v138_v7 = vld [vmem:[%s2056_s0 + $0x28] sm:$0xff]  ;;  %143 = vadd.xlane.f32.xlu0 %v142_v3  ;;  %149 = vadd.xlane.f32.xlu1 %v148_v4  ;;  %v145_v8 = vsel %vm141_vm0, %v134_v2, 0.0  ;;  %v151_v9 = vsel %vm141_vm0, %v136_v5, 0.0  ;;  %v154_v10 = vsel %vm141_vm0, %v137_v6, 0.0  ;;  %v139_v12 = vld [vmem:[%s2056_s0 + $0x30] sm:$0xff]  ;;  %v140_v13 = vld [vmem:[%s2056_s0 + $0x38] sm:$0xff] }
  0x83   :  { %v157_v11 = vsel %vm141_vm0, %v138_v7, 0.0  ;;  %v160_v14 = vsel %vm141_vm0, %v139_v12, 0.0  ;;  %v163_v15 = vsel %vm141_vm0, %v140_v13, 0.0  ;;  %v1179_v56 = vld [vmem:[#allocation7] sm:$0xff]   ;;  %v1180_v57 = vld [vmem:[#allocation7 + $0x8] sm:$0xff]   ;;  %s1038_s24 = sshll.u32 %s1457_s23, 4  ;;  %s1039_s24 = int_to_ptr.vmem [resolvable:$true] %s1038_s24 }
  0x84   :  { %1112 = vmatprep.subr.bf16.mxu0 %v1179_v56  ;;  %v1702_v58 = vld [vmem:[#allocation2] sm:$0xff]   ;;  %s1415_s30 = scalar_lea.vmem %s1039_s24, 1024  ;;  %p1420_p1 = scmp.lt.s32.totalorder %s1039_s24, %s1039_s24 }
  0x85   :  { %1113 = vmatpush3.bf16.msra.mxu0 %v1179_v56  ;;  %p1416_p0 = scmp.ne.s32.totalorder %s1039_s24, %s1415_s30  ;;  %p1421_p2 = scmp.lt.s32.totalorder %s1415_s30, %s1415_s30 }
  0x86   :  { %146 = vadd.xlane.f32.xlu0 %v145_v8  ;;  %152 = vadd.xlane.f32.xlu1 %v151_v9 }
  0x87   :  { %1114 = vmatprep.subr.bf16.mxu0 %v1180_v57  ;;  %p1422_p3 = por %p1421_p2, %p1420_p1 }
  0x89   :  { %1115 = vmatpush3.bf16.msra.mxu0 %v1180_v57  ;;  %p1423_p4 = pnand %p1422_p3, %p1416_p0 }
  0x8a   :  { %155 = vadd.xlane.f32.xlu0 %v154_v10  ;;  %158 = vadd.xlane.f32.xlu1 %v157_v11 }
  0x8b   :  { %1140 = vmatprep.subr.bf16.mxu0 %v1702_v58 }
  0x8e   :  { %161 = vadd.xlane.f32.xlu0 %v160_v14  ;;  %164 = vadd.xlane.f32.xlu1 %v163_v15 }
 0x10f   :  { %v144_v16 = vpop.xlane.xlu0 %143  ;;  %v150_v17 = vpop.xlane.xlu1 %149 }
 0x110   :  { %v167_v18 = vmul.f32 0.03125, %v144_v16  ;;  %v169_v19 = vmul.f32 0.03125, %v150_v17 }
 0x112   :  { %v1662_v20 = vsub.f32 %v133_v0, %v167_v18  ;;  %v1664_v21 = vsub.f32 %v135_v1, %v169_v19 }
 0x113   :  { %v147_v22 = vpop.xlane.xlu0 %146  ;;  %v153_v23 = vpop.xlane.xlu1 %152 }
 0x114   :  { %v168_v24 = vmul.f32 0.03125, %v147_v22  ;;  %v170_v25 = vmul.f32 0.03125, %v153_v23  ;;  %v183_v26 = vmul.f32 %v1662_v20, %v1662_v20  ;;  %v185_v27 = vmul.f32 %v1664_v21, %v1664_v21  ;;  %v1053_v22 = vld [vmem:[%s2057_s1] ss:$0 sm:$0xff] }
 0x116   :  { %v1670_v28 = vsub.f32 %v134_v2, %v168_v24  ;;  %v1672_v29 = vsub.f32 %v136_v5, %v170_v25  ;;  %v191_v30 = vsel %vm141_vm0, %v183_v26, 0.0  ;;  %v197_v33 = vsel %vm141_vm0, %v185_v27, 0.0 }
 0x117   :  { %192 = vadd.xlane.f32.xlu0 %v191_v30  ;;  %v156_v31 = vpop.xlane.xlu0 %155  ;;  %v159_v32 = vpop.xlane.xlu1 %158 }
 0x118   :  { %v171_v34 = vmul.f32 0.03125, %v156_v31  ;;  %v172_v35 = vmul.f32 0.03125, %v159_v32  ;;  %v184_v36 = vmul.f32 %v1670_v28, %v1670_v28  ;;  %v186_v37 = vmul.f32 %v1672_v29, %v1672_v29 }
 0x11a   :  { %v1680_v38 = vsub.f32 %v137_v6, %v171_v34  ;;  %v1682_v39 = vsub.f32 %v138_v7, %v172_v35  ;;  %v194_v40 = vsel %vm141_vm0, %v184_v36, 0.0  ;;  %v200_v43 = vsel %vm141_vm0, %v186_v37, 0.0 }
 0x11b   :  { %198 = vadd.xlane.f32.xlu0 %v197_v33  ;;  %195 = vadd.xlane.f32.xlu1 %v194_v40  ;;  %v162_v41 = vpop.xlane.xlu0 %161  ;;  %v165_v42 = vpop.xlane.xlu1 %164 }
 0x11c   :  { %v173_v44 = vmul.f32 0.03125, %v162_v41  ;;  %v174_v45 = vmul.f32 0.03125, %v165_v42  ;;  %v187_v46 = vmul.f32 %v1680_v38, %v1680_v38  ;;  %v188_v47 = vmul.f32 %v1682_v39, %v1682_v39 }
 0x11e   :  { %v1690_v48 = vsub.f32 %v139_v12, %v173_v44  ;;  %v1692_v49 = vsub.f32 %v140_v13, %v174_v45  ;;  %v203_v50 = vsel %vm141_vm0, %v187_v46, 0.0  ;;  %v206_v51 = vsel %vm141_vm0, %v188_v47, 0.0 }
 0x11f   :  { %201 = vadd.xlane.f32.xlu1 %v200_v43  ;;  %204 = vadd.xlane.f32.xlu0 %v203_v50 }
 0x120   :  { %v189_v52 = vmul.f32 %v1690_v48, %v1690_v48  ;;  %v190_v53 = vmul.f32 %v1692_v49, %v1692_v49 }
 0x122   :  { %v209_v54 = vsel %vm141_vm0, %v189_v52, 0.0  ;;  %v212_v55 = vsel %vm141_vm0, %v190_v53, 0.0 }
 0x123   :  { %207 = vadd.xlane.f32.xlu1 %v206_v51  ;;  %210 = vadd.xlane.f32.xlu0 %v209_v54  ;;  %v1182_v51 = vld [vmem:[#allocation2 + $0x8] sm:$0xff]  }
 0x127   :  { %213 = vadd.xlane.f32.xlu1 %v212_v55 }
 0x1a4   :  { %v193_v59 = vpop.xlane.xlu0 %192 }
 0x1a5   :  { %v215_v60 = vmul.f32 0.03125, %v193_v59 }
 0x1a7   :  { %v223_v61 = vadd.f32 1e-05, %v215_v60 }
 0x1a8   :  { %v196_v62 = vpop.xlane.xlu1 %195  ;;  %v199_v63 = vpop.xlane.xlu0 %198 }
 0x1a9   :  { %1189 = vrsqrt.f32 %v223_v61  ;;  %v216_v0 = vmul.f32 0.03125, %v196_v62  ;;  %v217_v1 = vmul.f32 0.03125, %v199_v63 }
 0x1ab   :  { %v224_v2 = vadd.f32 1e-05, %v216_v0  ;;  %v225_v3 = vadd.f32 1e-05, %v217_v1 }
 0x1ac   :  { %v202_v4 = vpop.xlane.xlu1 %201  ;;  %v205_v5 = vpop.xlane.xlu0 %204 }
 0x1ad   :  { %1191 = vrsqrt.f32 %v224_v2  ;;  %v218_v6 = vmul.f32 0.03125, %v202_v4  ;;  %v219_v7 = vmul.f32 0.03125, %v205_v5 }
 0x1ae   :  { %1193 = vrsqrt.f32 %v225_v3 }
 0x1af   :  { %v226_v8 = vadd.f32 1e-05, %v218_v6  ;;  %v227_v9 = vadd.f32 1e-05, %v219_v7 }
 0x1b0   :  { %v208_v10 = vpop.xlane.xlu1 %207  ;;  %v211_v11 = vpop.xlane.xlu0 %210 }
 0x1b1   :  { %1195 = vrsqrt.f32 %v226_v8  ;;  %v220_v12 = vmul.f32 0.03125, %v208_v10  ;;  %v221_v13 = vmul.f32 0.03125, %v211_v11 }
 0x1b2   :  { %1197 = vrsqrt.f32 %v227_v9 }
 0x1b3   :  { %v1190_v14 = vpop.eup %1189  ;;  %v228_v15 = vadd.f32 1e-05, %v220_v12  ;;  %v229_v16 = vadd.f32 1e-05, %v221_v13 }
 0x1b4   :  { %v214_v17 = vpop.xlane.xlu1 %213  ;;  %v239_v18 = vmul.f32 %v1190_v14, %v1662_v20  ;;  %v1054_v20 = vld [vmem:[%s2058_s2] ss:$0 sm:$0xff] }
 0x1b5   :  { %1199 = vrsqrt.f32 %v228_v15  ;;  %v222_v19 = vmul.f32 0.03125, %v214_v17 }
 0x1b6   :  { %1201 = vrsqrt.f32 %v229_v16  ;;  %v254_v27 = vmul.f32 %v1053_v22, %v239_v18 }
 0x1b7   :  { %v1192_v23 = vpop.eup %1191  ;;  %v230_v24 = vadd.f32 1e-05, %v222_v19 }
 0x1b8   :  { %v1194_v25 = vpop.eup %1193  ;;  %v240_v26 = vmul.f32 %v1192_v23, %v1670_v28  ;;  %v269_v35 = vadd.f32 %v1054_v20, %v254_v27 }
 0x1b9   :  { %v241_v30 = vmul.f32 %v1194_v25, %v1664_v21  ;;  %1203 = vrsqrt.f32 %v230_v24 }
 0x1ba   :  { %v255_v31 = vmul.f32 %v1053_v22, %v240_v26 }
 0x1bb   :  { %v1196_v32 = vpop.eup %1195  ;;  %v256_v37 = vmul.f32 %v1053_v22, %v241_v30 }
 0x1bc   :  { %v1198_v33 = vpop.eup %1197  ;;  %v242_v34 = vmul.f32 %v1196_v32, %v1672_v29  ;;  %v270_v36 = vadd.f32 %v1054_v20, %v255_v31 }
 0x1bd   :  { %v243_v40 = vmul.f32 %v1198_v33, %v1680_v38  ;;  %v271_v44 = vadd.f32 %v1054_v20, %v256_v37  ;;  %v1762_v37 = vld [vmem:[#allocation5] ss:$0 sm:$0xff] }
 0x1be   :  { %v277_v41 = vpack.c.bf16 %v270_v36, %v269_v35  ;;  %v257_v28 = vmul.f32 %v1053_v22, %v242_v34 }
 0x1bf   :  { %v1200_v42 = vpop.eup %1199  ;;  %v258_v46 = vmul.f32 %v1053_v22, %v243_v40 }
 0x1c0   :  { %v1202_v43 = vpop.eup %1201  ;;  %v244_v21 = vmul.f32 %v1200_v42, %v1682_v39  ;;  %1116 = vmatprep.mubr.msk.bf16.mxu0 %vm141_vm0, %v277_v41  ;;  %v272_v45 = vadd.f32 %v1054_v20, %v257_v28 }
 0x1c1   :  { %v245_v47 = vmul.f32 %v1202_v43, %v1690_v48  ;;  %v273_v38 = vadd.f32 %v1054_v20, %v258_v46 }
 0x1c2   :  { %v278_v50 = vpack.c.bf16 %v272_v45, %v271_v44  ;;  %v259_v29 = vmul.f32 %v1053_v22, %v244_v21 }
 0x1c3   :  { %v1204_v52 = vpop.eup %1203  ;;  %v260_v55 = vmul.f32 %v1053_v22, %v245_v47 }
 0x1c4   :  { %v246_v53 = vmul.f32 %v1204_v52, %v1692_v49  ;;  %1117 = vmatmul.mubr.msk.bf16.vlgmr.msra.gmra.mrb[0].mxu0 %vm141_vm0, %v278_v50  ;;  %v274_v54 = vadd.f32 %v1054_v20, %v259_v29  ;;  %v1055_v49 = vld [vmem:[#allocation8] ss:$0 sm:$0xff] }
 0x1c5   :  { %1141 = vmatpush3.bf16.msra.mxu0 %v1702_v58  ;;  %v275_v57 = vadd.f32 %v1054_v20, %v260_v55 }
 0x1c6   :  { %v279_v39 = vpack.c.bf16 %v274_v54, %v273_v38  ;;  %v261_v56 = vmul.f32 %v1053_v22, %v246_v53  ;;  %1142 = vmatprep.subr.bf16.mxu0 %v1182_v51 }
 0x1c8   :  { %1120 = vmatprep.mubr.msk.bf16.mxu0 %vm141_vm0, %v279_v39  ;;  %v276_v48 = vadd.f32 %v1054_v20, %v261_v56 }
 0x1c9   :  { %1143 = vmatpush3.bf16.msra.mxu0 %v1182_v51 }
 0x1ca   :  { %v280_v59 = vpack.c.bf16 %v276_v48, %v275_v57 }
 0x1cc   :  { %1121 = vmatmul.mubr.msk.bf16.gmra.mrb[4].mxu0 %vm141_vm0, %v280_v59 }
 0x1cd   :  { %1144 = vmatprep.mubr.msk.bf16.mxu0 %vm141_vm0, %v277_v41 }
 0x1d4   :  { %1145 = vmatmul.mubr.msk.bf16.vlgmr.msra.gmra.mrb[8].mxu0 %vm141_vm0, %v278_v50 }
 0x1d5   :  { %1148 = vmatprep.mubr.msk.bf16.mxu0 %vm141_vm0, %v279_v39 }
 0x1dc   :  { %1149 = vmatmul.mubr.msk.bf16.gmra.mrb[12].mxu0 %vm141_vm0, %v280_v59 }
 0x297   :  { %v1118_v58 = vpop.f32.mrb[0].mxu0 }
 0x298   :  { %v359_v60 = vadd.f32 %v1118_v58, %v1055_v49  ;;  %v350_v61 = vpop.f32.mrb[1].mxu0 }
 0x299   :  { %v1728_v62 = vadd.f32 %v1055_v49, %v350_v61  ;;  %v1119_v63 = vpop.f32.mrb[2].mxu0 }
 0x29a   :  { %v391_v0 = vmul.f32 %v359_v60, %v359_v60  ;;  %v1730_v1 = vadd.f32 %v1119_v63, %v1055_v49  ;;  %v353_v2 = vpop.f32.mrb[3].mxu0  ;;  %v1781_v55 = vmul.f32 0.5, %v359_v60 }
 0x29b   :  { %v389_v3 = vmul.f32 %v1728_v62, %v1728_v62  ;;  %v1734_v4 = vadd.f32 %v1055_v49, %v353_v2  ;;  %v381_v61 = vmul.f32 0.5, %v1728_v62 }
 0x29c   :  { %v399_v5 = vmul.f32 %v391_v0, %v359_v60  ;;  %v392_v6 = vmul.f32 %v1730_v1, %v1730_v1 }
 0x29d   :  { %v397_v7 = vmul.f32 %v389_v3, %v1728_v62  ;;  %v390_v8 = vmul.f32 %v1734_v4, %v1734_v4  ;;  %v1797_v3 = vmul.f32 0.5, %v1730_v1 }
 0x29e   :  { %v407_v9 = vmul.f32 0.044715, %v399_v5  ;;  %v400_v10 = vmul.f32 %v392_v6, %v1730_v1 }
 0x29f   :  { %v405_v11 = vmul.f32 0.044715, %v397_v7  ;;  %v398_v12 = vmul.f32 %v390_v8, %v1734_v4  ;;  %v1122_v13 = vpop.f32.mrb[4].mxu0 }
 0x2a0   :  { %v408_v14 = vmul.f32 0.044715, %v400_v10  ;;  %v1743_v15 = vadd.f32 %v1122_v13, %v1055_v49  ;;  %v366_v16 = vpop.f32.mrb[5].mxu0  ;;  %v415_v17 = vadd.f32 %v407_v9, %v359_v60  ;;  %v382_v10 = vmul.f32 0.5, %v1734_v4 }
 0x2a1   :  { %v406_v18 = vmul.f32 0.044715, %v398_v12  ;;  %v1745_v19 = vadd.f32 %v1055_v49, %v366_v16  ;;  %v1123_v22 = vpop.f32.mrb[6].mxu0  ;;  %v413_v23 = vadd.f32 %v405_v11, %v1728_v62 }
 0x2a2   :  { %v395_v24 = vmul.f32 %v1743_v15, %v1743_v15  ;;  %v1750_v25 = vadd.f32 %v1123_v22, %v1055_v49  ;;  %v369_v26 = vpop.f32.mrb[7].mxu0  ;;  %v423_v27 = vmul.f32 0.7978846, %v415_v17  ;;  %v416_v34 = vadd.f32 %v408_v14, %v1730_v1 }
 0x2a3   :  { %v393_v30 = vmul.f32 %v1745_v19, %v1745_v19  ;;  %v1754_v20 = vadd.f32 %v1055_v49, %v369_v26  ;;  %v421_v31 = vmul.f32 0.7978846, %v413_v23  ;;  %v414_v32 = vadd.f32 %v406_v18, %v1734_v4 }
 0x2a4   :  { %v403_v33 = vmul.f32 %v395_v24, %v1743_v15  ;;  %1205 = vtanh.f32 %v423_v27  ;;  %v396_v41 = vmul.f32 %v1750_v25, %v1750_v25  ;;  %v424_v46 = vmul.f32 0.7978846, %v416_v34 }
 0x2a5   :  { %v401_v35 = vmul.f32 %v393_v30, %v1745_v19  ;;  %v394_v36 = vmul.f32 %v1754_v20, %v1754_v20  ;;  %1207 = vtanh.f32 %v421_v31  ;;  %v422_v43 = vmul.f32 0.7978846, %v414_v32 }
 0x2a6   :  { %v411_v40 = vmul.f32 0.044715, %v403_v33  ;;  %v404_v52 = vmul.f32 %v396_v41, %v1750_v25 }
 0x2a7   :  { %v409_v28 = vmul.f32 0.044715, %v401_v35  ;;  %v1146_v42 = vpop.f32.mrb[8].mxu0  ;;  %v402_v21 = vmul.f32 %v394_v36, %v1754_v20  ;;  %1209 = vtanh.f32 %v422_v43 }
 0x2a8   :  { %v1768_v44 = vadd.f32 %v1146_v42, %v1762_v37  ;;  %v802_v45 = vpop.f32.mrb[9].mxu0  ;;  %v419_v51 = vadd.f32 %v411_v40, %v1743_v15  ;;  %1211 = vtanh.f32 %v424_v46  ;;  %v412_v6 = vmul.f32 0.044715, %v404_v52 }
 0x2a9   :  { %v1771_v47 = vadd.f32 %v1762_v37, %v802_v45  ;;  %v1147_v50 = vpop.f32.mrb[10].mxu0  ;;  %v417_v29 = vadd.f32 %v409_v28, %v1745_v19  ;;  %v410_v48 = vmul.f32 0.044715, %v402_v21 }
 0x2aa   :  { %v843_v53 = vmul.f32 %v1768_v44, %v1768_v44  ;;  %v1779_v38 = vadd.f32 %v1147_v50, %v1762_v37  ;;  %v805_v54 = vpop.f32.mrb[11].mxu0  ;;  %v427_v63 = vmul.f32 0.7978846, %v419_v51  ;;  %v420_v51 = vadd.f32 %v412_v6, %v1750_v25 }
 0x2ab   :  { %v841_v39 = vmul.f32 %v1771_v47, %v1771_v47  ;;  %v1786_v56 = vadd.f32 %v1762_v37, %v805_v54  ;;  %v425_v57 = vmul.f32 0.7978846, %v417_v29  ;;  %v418_v1 = vadd.f32 %v410_v48, %v1754_v20 }
 0x2ac   :  { %v851_v59 = vmul.f32 %v843_v53, %v1768_v44  ;;  %v844_v49 = vmul.f32 %v1779_v38, %v1779_v38  ;;  %v385_v6 = vmul.f32 0.5, %v1745_v19 }
 0x2ad   :  { %v849_v58 = vmul.f32 %v841_v39, %v1771_v47  ;;  %v842_v60 = vmul.f32 %v1786_v56, %v1786_v56  ;;  %1213 = vtanh.f32 %v425_v57  ;;  %v426_v46 = vmul.f32 0.7978846, %v418_v1 }
 0x2ae   :  { %v859_v0 = vmul.f32 0.044715, %v851_v59  ;;  %v852_v2 = vmul.f32 %v844_v49, %v1779_v38  ;;  %v1206_v5 = vpop.eup %1205  ;;  %1215 = vtanh.f32 %v427_v63  ;;  %v428_v1 = vmul.f32 0.7978846, %v420_v51 }
 0x2af   :  { %v857_v7 = vmul.f32 0.044715, %v849_v58  ;;  %v850_v8 = vmul.f32 %v842_v60, %v1786_v56  ;;  %v1150_v9 = vpop.f32.mrb[12].mxu0  ;;  %v1208_v11 = vpop.eup %1207  ;;  %v439_v27 = vadd.f32 1.0, %v1206_v5 }
 0x2b0   :  { %v867_v12 = vadd.f32 %v859_v0, %v1768_v44  ;;  %v860_v62 = vmul.f32 0.044715, %v852_v2  ;;  %v1803_v13 = vadd.f32 %v1150_v9, %v1762_v37  ;;  %v818_v14 = vpop.f32.mrb[13].mxu0  ;;  %v437_v33 = vadd.f32 1.0, %v1208_v11 }
 0x2b1   :  { %v865_v16 = vadd.f32 %v857_v7, %v1771_v47  ;;  %v858_v17 = vmul.f32 0.044715, %v850_v8  ;;  %v1808_v18 = vadd.f32 %v1762_v37, %v818_v14  ;;  %v1151_v22 = vpop.f32.mrb[14].mxu0  ;;  %v1210_v40 = vpop.eup %1209  ;;  %v1836_v59 = vmul.f32 %v439_v27, %v1781_v55 }
 0x2b2   :  { %v875_v23 = vmul.f32 0.7978846, %v867_v12  ;;  %v868_v4 = vadd.f32 %v860_v62, %v1779_v38  ;;  %v847_v24 = vmul.f32 %v1803_v13, %v1803_v13  ;;  %v821_v26 = vpop.f32.mrb[15].mxu0  ;;  %v1818_v36 = vadd.f32 %v1151_v22, %v1762_v37  ;;  %v1212_v43 = vpop.eup %1211 }
 0x2b3   :  { %v873_v30 = vmul.f32 0.7978846, %v865_v16  ;;  %v866_v31 = vadd.f32 %v858_v17, %v1786_v56  ;;  %v845_v32 = vmul.f32 %v1808_v18, %v1808_v18  ;;  %v1822_v42 = vadd.f32 %v1762_v37, %v821_v26 }
 0x2b4   :  { %1217 = vtanh.f32 %v875_v23  ;;  %v876_v34 = vmul.f32 0.7978846, %v868_v4  ;;  %v855_v35 = vmul.f32 %v847_v24, %v1803_v13  ;;  %v848_v45 = vmul.f32 %v1818_v36, %v1818_v36 }
 0x2b5   :  { %1219 = vtanh.f32 %v873_v30  ;;  %v874_v41 = vmul.f32 0.7978846, %v866_v31  ;;  %v853_v28 = vmul.f32 %v845_v32, %v1808_v18  ;;  %v846_v29 = vmul.f32 %v1822_v42, %v1822_v42 }
 0x2b6   :  { %1221 = vtanh.f32 %v876_v34  ;;  %v863_v21 = vmul.f32 0.044715, %v855_v35  ;;  %v856_v37 = vmul.f32 %v848_v45, %v1818_v36  ;;  %v1831_v54 = vmul.f32 %v437_v33, %v381_v61 }
 0x2b7   :  { %1223 = vtanh.f32 %v874_v41  ;;  %v861_v50 = vmul.f32 0.044715, %v853_v28  ;;  %v1214_v52 = vpop.eup %1213  ;;  %v438_v39 = vadd.f32 1.0, %v1210_v40  ;;  %v854_v48 = vmul.f32 %v846_v29, %v1822_v42 }
 0x2b8   :  { %v871_v53 = vadd.f32 %v863_v21, %v1803_v13  ;;  %v440_v49 = vadd.f32 1.0, %v1212_v43  ;;  %v864_v60 = vmul.f32 0.044715, %v856_v37  ;;  %v453_v63 = vsel %vm141_vm0, %v1831_v54, 0.0  ;;  %v1216_v2 = vpop.eup %1215 }
 0x2b9   :  { %v869_v57 = vadd.f32 %v861_v50, %v1808_v18  ;;  %v1840_v0 = vmul.f32 %v438_v39, %v382_v10  ;;  %v862_v61 = vmul.f32 0.044715, %v854_v48  ;;  %454 = vadd.xlane.f32.xlu0 %v453_v63  ;;  %v441_v7 = vadd.f32 1.0, %v1214_v52 }
 0x2ba   :  { %v879_v58 = vmul.f32 0.7978846, %v871_v53  ;;  %v872_v8 = vadd.f32 %v864_v60, %v1818_v36  ;;  %v1847_v9 = vmul.f32 %v440_v49, %v1797_v3  ;;  %v459_v11 = vsel %vm141_vm0, %v1836_v59, 0.0 }
 0x2bb   :  { %v877_v5 = vmul.f32 0.7978846, %v869_v57  ;;  %v456_v55 = vsel %vm141_vm0, %v1840_v0, 0.0  ;;  %v870_v10 = vadd.f32 %v862_v61, %v1822_v42  ;;  %v1852_v12 = vmul.f32 %v441_v7, %v385_v6 }
 0x2bc   :  { %1225 = vtanh.f32 %v879_v58  ;;  %457 = vadd.xlane.f32.xlu1 %v456_v55  ;;  %v880_v62 = vmul.f32 0.7978846, %v872_v8  ;;  %v443_v14 = vadd.f32 1.0, %v1216_v2  ;;  %v835_v17 = vmul.f32 0.5, %v1768_v44 }
 0x2bd   :  { %1227 = vtanh.f32 %v877_v5  ;;  %v878_v22 = vmul.f32 0.7978846, %v870_v10  ;;  %460 = vadd.xlane.f32.xlu0 %v459_v11  ;;  %v387_v3 = vmul.f32 0.5, %v1743_v15  ;;  %v462_v24 = vsel %vm141_vm0, %v1847_v9, 0.0 }
 0x2be   :  { %v1218_v19 = vpop.eup %1217  ;;  %1229 = vtanh.f32 %v426_v46  ;;  %v465_v26 = vsel %vm141_vm0, %v1852_v12, 0.0  ;;  %v833_v31 = vmul.f32 0.5, %v1771_v47  ;;  %v836_v32 = vmul.f32 0.5, %v1779_v38 }
 0x2bf   :  { %v1220_v16 = vpop.eup %1219  ;;  %v891_v23 = vadd.f32 1.0, %v1218_v19  ;;  %1231 = vtanh.f32 %v880_v62  ;;  %v834_v15 = vmul.f32 0.5, %v1786_v56  ;;  %v1863_v33 = vmul.f32 %v443_v14, %v387_v3 }
 0x2c0   :  { %v1222_v4 = vpop.eup %1221  ;;  %v889_v27 = vadd.f32 1.0, %v1220_v16  ;;  %1233 = vtanh.f32 %v878_v22  ;;  %463 = vadd.xlane.f32.xlu1 %v462_v24  ;;  %v386_v46 = vmul.f32 0.5, %v1754_v20  ;;  %v839_v37 = vmul.f32 0.5, %v1803_v13 }
 0x2c1   :  { %v1224_v30 = vpop.eup %1223  ;;  %v892_v44 = vadd.f32 1.0, %v1222_v4  ;;  %1235 = vtanh.f32 %v428_v1  ;;  %466 = vadd.xlane.f32.xlu0 %v465_v26  ;;  %v1865_v35 = vmul.f32 %v891_v23, %v835_v17  ;;  %v471_v56 = vsel %vm141_vm0, %v1863_v33, 0.0 }
 0x2c2   :  { %v890_v34 = vadd.f32 1.0, %v1224_v30  ;;  %v1869_v41 = vmul.f32 %v889_v27, %v833_v31  ;;  %v840_v39 = vmul.f32 0.5, %v1818_v36  ;;  %v837_v58 = vmul.f32 0.5, %v1808_v18 }
 0x2c3   :  { %v1867_v40 = vmul.f32 %v892_v44, %v836_v32  ;;  %v838_v60 = vmul.f32 0.5, %v1822_v42  ;;  %v388_v63 = vmul.f32 0.5, %v1750_v25 }
 0x2c4   :  { %v1871_v28 = vmul.f32 %v890_v34, %v834_v15 }
 0x2c5   :  { %v906_v47 = vpack.c.bf16 %v1867_v40, %v1865_v35  ;;  %472 = vadd.xlane.f32.xlu0 %v471_v56 }
 0x2c6   :  { %v1226_v38 = vpop.eup %1225  ;;  %v905_v43 = vpack.c.bf16 %v1871_v28, %v1869_v41  ;;  %v1079_v28 = vld [vmem:[%s2068_s12] ss:$0 sm:$0xff] }
 0x2c7   :  { %v1228_v21 = vpop.eup %1227  ;;  %v895_v29 = vadd.f32 1.0, %v1226_v38 }
 0x2c8   :  { %v1230_v45 = vpop.eup %1229  ;;  %v893_v52 = vadd.f32 1.0, %v1228_v21 }
 0x2c9   :  { %v442_v50 = vadd.f32 1.0, %v1230_v45  ;;  %v1232_v51 = vpop.eup %1231  ;;  %v1886_v61 = vmul.f32 %v895_v29, %v839_v37 }
 0x2ca   :  { %v1234_v53 = vpop.eup %1233  ;;  %v896_v48 = vadd.f32 1.0, %v1232_v51  ;;  %v1890_v13 = vmul.f32 %v893_v52, %v837_v58  ;;  %v601_v58 = vld [vmem:[%s2066_s10 + $0x10] sm:$0xff] }
 0x2cb   :  { %v450_v57 = vmul.f32 %v442_v50, %v386_v46  ;;  %v1236_v49 = vpop.eup %1235  ;;  %v894_v2 = vadd.f32 1.0, %v1234_v53 }
 0x2cc   :  { %v444_v5 = vadd.f32 1.0, %v1236_v49  ;;  %v1888_v6 = vmul.f32 %v896_v48, %v840_v39  ;;  %v1183_v39 = vld [vmem:[%s2065_s9] sm:$0xff]   ;;  %v1456_v48 = vmov 0  }
 0x2cd   :  { %v468_v20 = vsel %vm141_vm0, %v450_v57, 0.0  ;;  %v1892_v36 = vmul.f32 %v894_v2, %v838_v60  ;;  %1132 = vmatprep.mubr.msk.bf16.mxu1 %vm667_vm1, %v1183_v39  ;;  %1178 = vset.pattern.permute.xlu1 %v1456_v48  ;;  %v599_v49 = vld [vmem:[%s2066_s10] sm:$0xff]  ;;  %v602_v60 = vld [vmem:[%s2066_s10 + $0x18] sm:$0xff]  ;;  %v604_v2 = vld [vmem:[%s2066_s10 + $0x28] sm:$0xff] }
 0x2ce   :  { %469 = vadd.xlane.f32.xlu1 %v468_v20  ;;  %v452_v7 = vmul.f32 %v444_v5, %v388_v63  ;;  %v908_v18 = vpack.c.bf16 %v1888_v6, %v1886_v61  ;;  %1177 = vset.pattern.permute.xlu0 %v1456_v48  ;;  %v603_v63 = vld [vmem:[%s2066_s10 + $0x20] sm:$0xff]  ;;  %v605_v20 = vld [vmem:[%s2066_s10 + $0x30] sm:$0xff]  ;;  %v606_v5 = vld [vmem:[%s2066_s10 + $0x38] sm:$0xff] }
 0x2cf   :  { %v907_v25 = vpack.c.bf16 %v1892_v36, %v1890_v13  ;;  %v1253_v61 = vld [vmem:[%s2056_s0 + $0x10] sm:$0xff] }
 0x2d0   :  { %v474_v42 = vsel %vm141_vm0, %v452_v7, 0.0 }
 0x2d2   :  { %475 = vadd.xlane.f32.xlu1 %v474_v42 }
 0x346   :  { %v455_v8 = vpop.xlane.xlu0 %454 }
 0x347   :  { %v477_v55 = vmul.f32 0.03125, %v455_v8 }
 0x349   :  { %v458_v10 = vpop.xlane.xlu1 %457  ;;  %v1900_v11 = vsub.f32 %v1831_v54, %v477_v55 }
 0x34a   :  { %v478_v19 = vmul.f32 0.03125, %v458_v10  ;;  %v461_v62 = vpop.xlane.xlu0 %460 }
 0x34b   :  { %v479_v1 = vmul.f32 0.03125, %v461_v62  ;;  %v493_v16 = vmul.f32 %v1900_v11, %v1900_v11 }
 0x34c   :  { %v1903_v14 = vsub.f32 %v1840_v0, %v478_v19 }
 0x34d   :  { %v464_v17 = vpop.xlane.xlu1 %463  ;;  %v1908_v22 = vsub.f32 %v1836_v59, %v479_v1  ;;  %v501_v23 = vsel %vm141_vm0, %v493_v16, 0.0 }
 0x34e   :  { %v480_v3 = vmul.f32 0.03125, %v464_v17  ;;  %v494_v54 = vmul.f32 %v1903_v14, %v1903_v14  ;;  %502 = vadd.xlane.f32.xlu0 %v501_v23  ;;  %v467_v4 = vpop.xlane.xlu0 %466 }
 0x34f   :  { %v481_v0 = vmul.f32 0.03125, %v467_v4  ;;  %v495_v27 = vmul.f32 %v1908_v22, %v1908_v22 }
 0x350   :  { %v1914_v24 = vsub.f32 %v1847_v9, %v480_v3  ;;  %v504_v26 = vsel %vm141_vm0, %v494_v54, 0.0 }
 0x351   :  { %505 = vadd.xlane.f32.xlu1 %v504_v26  ;;  %v1920_v59 = vsub.f32 %v1852_v12, %v481_v0  ;;  %v507_v30 = vsel %vm141_vm0, %v495_v27, 0.0 }
 0x352   :  { %v496_v31 = vmul.f32 %v1914_v24, %v1914_v24  ;;  %508 = vadd.xlane.f32.xlu0 %v507_v30  ;;  %v473_v32 = vpop.xlane.xlu0 %472 }
 0x353   :  { %v483_v44 = vmul.f32 0.03125, %v473_v32  ;;  %v497_v15 = vmul.f32 %v1920_v59, %v1920_v59 }
 0x354   :  { %v510_v9 = vsel %vm141_vm0, %v496_v31, 0.0  ;;  %v1062_v31 = vld [vmem:[#allocation10] ss:$0 sm:$0xff] }
 0x355   :  { %511 = vadd.xlane.f32.xlu1 %v510_v9  ;;  %v1929_v34 = vsub.f32 %v1863_v33, %v483_v44  ;;  %v513_v12 = vsel %vm141_vm0, %v497_v15, 0.0 }
 0x356   :  { %514 = vadd.xlane.f32.xlu0 %v513_v12 }
 0x357   :  { %v499_v38 = vmul.f32 %v1929_v34, %v1929_v34 }
 0x359   :  { %v519_v21 = vsel %vm141_vm0, %v499_v38, 0.0  ;;  %v1063_v38 = vld [vmem:[#allocation11] ss:$0 sm:$0xff] }
 0x35a   :  { %520 = vadd.xlane.f32.xlu0 %v519_v21 }
 0x35b   :  { %v470_v56 = vpop.xlane.xlu1 %469 }
 0x35c   :  { %v482_v45 = vmul.f32 0.03125, %v470_v56 }
 0x35e   :  { %v1935_v46 = vsub.f32 %v450_v57, %v482_v45  ;;  %v600_v57 = vld [vmem:[%s2066_s10 + $0x8] sm:$0xff] }
 0x35f   :  { %v476_v50 = vpop.xlane.xlu1 %475 }
 0x360   :  { %v484_v29 = vmul.f32 0.03125, %v476_v50  ;;  %v498_v51 = vmul.f32 %v1935_v46, %v1935_v46 }
 0x362   :  { %v1939_v33 = vsub.f32 %v452_v7, %v484_v29  ;;  %v516_v52 = vsel %vm141_vm0, %v498_v51, 0.0 }
 0x363   :  { %517 = vadd.xlane.f32.xlu1 %v516_v52 }
 0x364   :  { %v500_v53 = vmul.f32 %v1939_v33, %v1939_v33 }
 0x366   :  { %v522_v37 = vsel %vm141_vm0, %v500_v53, 0.0 }
 0x367   :  { %523 = vadd.xlane.f32.xlu1 %v522_v37 }
 0x370   :  { %609 = vperm.xlu0 %1177, %v599_v49  }
 0x378   :  { %614 = vperm.xlu1 %1178, %v600_v57  }
 0x37c   :  { %619 = vperm.xlu1 %1178, %v601_v58  }
 0x380   :  { %624 = vperm.xlu1 %1178, %v602_v60  }
 0x384   :  { %629 = vperm.xlu1 %1178, %v603_v63  }
 0x388   :  { %634 = vperm.xlu1 %1178, %v604_v2  }
 0x38c   :  { %639 = vperm.xlu1 %1178, %v605_v20  }
 0x390   :  { %644 = vperm.xlu1 %1178, %v606_v5  }
 0x3db   :  { %v503_v7 = vpop.xlane.xlu0 %502 }
 0x3dc   :  { %v525_v42 = vmul.f32 0.03125, %v503_v7 }
 0x3de   :  { %v506_v8 = vpop.xlane.xlu1 %505  ;;  %v533_v55 = vadd.f32 1e-05, %v525_v42 }
 0x3df   :  { %v526_v10 = vmul.f32 0.03125, %v506_v8  ;;  %v509_v19 = vpop.xlane.xlu0 %508 }
 0x3e0   :  { %1237 = vrsqrt.f32 %v533_v55  ;;  %v527_v1 = vmul.f32 0.03125, %v509_v19 }
 0x3e1   :  { %v534_v62 = vadd.f32 1e-05, %v526_v10 }
 0x3e2   :  { %v512_v16 = vpop.xlane.xlu1 %511  ;;  %v535_v17 = vadd.f32 1e-05, %v527_v1 }
 0x3e3   :  { %1239 = vrsqrt.f32 %v534_v62  ;;  %v528_v3 = vmul.f32 0.03125, %v512_v16  ;;  %v515_v23 = vpop.xlane.xlu0 %514 }
 0x3e4   :  { %1241 = vrsqrt.f32 %v535_v17  ;;  %v529_v4 = vmul.f32 0.03125, %v515_v23 }
 0x3e5   :  { %v536_v54 = vadd.f32 1e-05, %v528_v3 }
 0x3e6   :  { %v537_v27 = vadd.f32 1e-05, %v529_v4  ;;  %v1187_v4 = vld [vmem:[#allocation13] sm:$0xff]  }
 0x3e7   :  { %1243 = vrsqrt.f32 %v536_v54  ;;  %v521_v0 = vpop.xlane.xlu0 %520 }
 0x3e8   :  { %v531_v26 = vmul.f32 0.03125, %v521_v0  ;;  %1245 = vrsqrt.f32 %v537_v27  ;;  %v1188_v0 = vld [vmem:[#allocation13 + $0x8] sm:$0xff]  }
 0x3ea   :  { %v1238_v30 = vpop.eup %1237  ;;  %v539_v9 = vadd.f32 1e-05, %v531_v26 }
 0x3eb   :  { %v549_v32 = vmul.f32 %v1238_v30, %v1900_v11 }
 0x3ec   :  { %1247 = vrsqrt.f32 %v539_v9 }
 0x3ed   :  { %v1240_v44 = vpop.eup %1239  ;;  %v564_v12 = vmul.f32 %v1062_v31, %v549_v32 }
 0x3ee   :  { %v550_v15 = vmul.f32 %v1240_v44, %v1903_v14  ;;  %v1242_v56 = vpop.eup %1241 }
 0x3ef   :  { %v551_v29 = vmul.f32 %v1242_v56, %v1908_v22  ;;  %v579_v52 = vadd.f32 %v1063_v38, %v564_v12 }
 0x3f0   :  { %v518_v21 = vpop.xlane.xlu1 %517  ;;  %v565_v50 = vmul.f32 %v1062_v31, %v550_v15  ;;  %v610_v15 = vpop.permute.xlu0 %609 }
 0x3f1   :  { %v530_v45 = vmul.f32 0.03125, %v518_v21  ;;  %v1244_v51 = vpop.eup %1243  ;;  %v566_v39 = vmul.f32 %v1062_v31, %v551_v29 }
 0x3f2   :  { %v580_v37 = vadd.f32 %v1063_v38, %v565_v50  ;;  %v552_v11 = vmul.f32 %v1244_v51, %v1914_v24  ;;  %v1246_v2 = vpop.eup %1245 }
 0x3f3   :  { %v538_v53 = vadd.f32 1e-05, %v530_v45  ;;  %v581_v60 = vadd.f32 %v1063_v38, %v566_v39  ;;  %v553_v5 = vmul.f32 %v1246_v2, %v1920_v59 }
 0x3f4   :  { %v524_v57 = vpop.xlane.xlu1 %523  ;;  %v595_v14 = vpack.c.bf16 %v580_v37, %v579_v52  ;;  %v567_v49 = vmul.f32 %v1062_v31, %v552_v11 }
 0x3f5   :  { %1249 = vrsqrt.f32 %v538_v53  ;;  %v532_v48 = vmul.f32 0.03125, %v524_v57  ;;  %v568_v42 = vmul.f32 %v1062_v31, %v553_v5 }
 0x3f6   :  { %1124 = vmatprep.subr.bf16.mxu1 %v595_v14  ;;  %v582_v63 = vadd.f32 %v1063_v38, %v567_v49  ;;  %v1248_v20 = vpop.eup %1247 }
 0x3f7   :  { %v540_v58 = vadd.f32 1e-05, %v532_v48  ;;  %1125 = vmatpush3.bf16.msra.mxu1 %v595_v14  ;;  %v555_v8 = vmul.f32 %v1248_v20, %v1929_v34  ;;  %v583_v19 = vadd.f32 %v1063_v38, %v568_v42  ;;  %v1184_v34 = vld [vmem:[%s2065_s9 + $0x8] sm:$0xff]  }
 0x3f8   :  { %v596_v22 = vpack.c.bf16 %v582_v63, %v581_v60  ;;  %v615_v26 = vpop.permute.xlu1 %614 }
 0x3f9   :  { %1251 = vrsqrt.f32 %v540_v58  ;;  %v570_v16 = vmul.f32 %v1062_v31, %v555_v8  ;;  %v1256_v8 = vld [vmem:[%s2056_s0 + $0x8] sm:$0xff] }
 0x3fa   :  { %1126 = vmatprep.subr.bf16.mxu1 %v596_v22 }
 0x3fb   :  { %1127 = vmatpush3.bf16.msra.mxu1 %v596_v22  ;;  %v585_v23 = vadd.f32 %v1063_v38, %v570_v16 }
 0x3fc   :  { %v620_v27 = vpop.permute.xlu1 %619 }
 0x3ff   :  { %v1250_v24 = vpop.eup %1249 }
 0x400   :  { %v554_v7 = vmul.f32 %v1250_v24, %v1935_v46  ;;  %v1185_v46 = vld [vmem:[%s2065_s9 + $0x10] sm:$0xff]   ;;  %v625_v30 = vpop.permute.xlu1 %624 }
 0x402   :  { %v569_v55 = vmul.f32 %v1062_v31, %v554_v7  ;;  %v1255_v7 = vld [vmem:[%s2056_s0 + $0x18] sm:$0xff] }
 0x403   :  { %v1252_v10 = vpop.eup %1251 }
 0x404   :  { %v584_v62 = vadd.f32 %v1063_v38, %v569_v55  ;;  %v556_v1 = vmul.f32 %v1252_v10, %v1939_v33  ;;  %v1186_v33 = vld [vmem:[%s2065_s9 + $0x18] sm:$0xff]  }
 0x406   :  { %v597_v17 = vpack.c.bf16 %v584_v62, %v583_v19  ;;  %v571_v3 = vmul.f32 %v1062_v31, %v556_v1  ;;  %v630_v31 = vpop.permute.xlu1 %629 }
 0x408   :  { %1128 = vmatprep.subr.bf16.mxu1 %v597_v17  ;;  %v586_v54 = vadd.f32 %v1063_v38, %v571_v3 }
 0x409   :  { %1129 = vmatpush3.bf16.msra.mxu1 %v597_v17  ;;  %v1257_v17 = vld [vmem:[%s2056_s0 + $0x30] sm:$0xff] }
 0x40a   :  { %v598_v59 = vpack.c.bf16 %v586_v54, %v585_v23  ;;  %v635_v32 = vpop.permute.xlu1 %634 }
 0x40c   :  { %1130 = vmatprep.subr.bf16.mxu1 %v598_v59 }
 0x40d   :  { %1131 = vmatpush3.bf16.msra.mxu1 %v598_v59  ;;  %v1258_v59 = vld [vmem:[%s2056_s0 + $0x20] sm:$0xff] }
 0x40e   :  { %1152 = vmatprep.subr.bf16.mxu1 %v1187_v4  ;;  %v640_v45 = vpop.permute.xlu1 %639 }
 0x410   :  { %1133 = vmatmul.mubr.msk.bf16.vlgmr.msra.gmra.mrb[0].mxu1 %vm667_vm1, %v1184_v34 }
 0x411   :  { %1136 = vmatprep.mubr.msk.bf16.mxu1 %vm667_vm1, %v1185_v46  ;;  %1153 = vmatpush3.bf16.msra.mxu1 %v1187_v4  ;;  %v1259_v46 = vld [vmem:[%s2056_s0 + $0x38] sm:$0xff] }
 0x412   :  { %1154 = vmatprep.subr.bf16.mxu1 %v1188_v0  ;;  %v645_v57 = vpop.permute.xlu1 %644 }
 0x415   :  { %1155 = vmatpush3.bf16.msra.mxu1 %v1188_v0  ;;  %v1260_v0 = vld [vmem:[%s2056_s0 + $0x28] sm:$0xff] }
 0x418   :  { %1137 = vmatmul.mubr.msk.bf16.gmra.mrb[4].mxu1 %vm667_vm1, %v1186_v33 }
 0x4e3   :  { %v1134_v44 = vpop.f32.mrb[0].mxu1 }
 0x4e4   :  { %v714_v9 = vpop.f32.mrb[1].mxu1  ;;  %v723_v38 = vadd.f32 %v1134_v44, %v620_v27 }
 0x4e5   :  { %v1135_v12 = vpop.f32.mrb[2].mxu1  ;;  %v715_v50 = vadd.f32 %v714_v9, %v610_v15 }
 0x4e6   :  { %v726_v56 = vadd.f32 %v1135_v12, %v625_v30  ;;  %v717_v21 = vpop.f32.mrb[3].mxu1 }
 0x4e7   :  { %v718_v29 = vadd.f32 %v717_v21, %v615_v26 }
 0x4e8   :  { %v910_v51 = vpack.c.bf16 %v726_v56, %v723_v38 }
 0x4e9   :  { %v909_v52 = vpack.c.bf16 %v718_v29, %v715_v50 }
 0x4ea   :  { %v914_v53 = vmul.bf16 %v910_v51, %v906_v47 }
 0x4eb   :  { %v913_v37 = vmul.bf16 %v909_v52, %v905_v43  ;;  %v1138_v11 = vpop.f32.mrb[4].mxu1 }
 0x4ec   :  { %v730_v39 = vpop.f32.mrb[5].mxu1  ;;  %v739_v14 = vadd.f32 %v1138_v11, %v640_v45 }
 0x4ed   :  { %v1139_v48 = vpop.f32.mrb[6].mxu1  ;;  %1156 = vmatprep.mubr.msk.bf16.mxu1 %vm141_vm0, %v913_v37  ;;  %v731_v60 = vadd.f32 %v730_v39, %v630_v31 }
 0x4ee   :  { %v742_v49 = vadd.f32 %v1139_v48, %v645_v57  ;;  %v733_v58 = vpop.f32.mrb[7].mxu1  ;;  %1157 = vmatmul.mubr.msk.bf16.vlgmr.msra.gmra.mrb[8].mxu1 %vm141_vm0, %v914_v53 }
 0x4ef   :  { %v734_v63 = vadd.f32 %v733_v58, %v635_v32 }
 0x4f0   :  { %v912_v2 = vpack.c.bf16 %v742_v49, %v739_v14 }
 0x4f1   :  { %v911_v35 = vpack.c.bf16 %v734_v63, %v731_v60 }
 0x4f2   :  { %v916_v40 = vmul.bf16 %v912_v2, %v908_v18  ;;  %v1254_v18 = vld [vmem:[%s2056_s0] sm:$0xff] }
 0x4f3   :  { %v915_v41 = vmul.bf16 %v911_v35, %v907_v25 }
 0x4f5   :  { %1160 = vmatprep.mubr.msk.bf16.mxu1 %vm141_vm0, %v915_v41 }
 0x4f6   :  { %1161 = vmatmul.mubr.msk.bf16.gmra.mrb[12].mxu1 %vm141_vm0, %v916_v40 }
 0x5c1   :  { %v1158_v47 = vpop.f32.mrb[8].mxu1 }
 0x5c2   :  { %v995_v43 = vadd.f32 %v1158_v47, %v1079_v28  ;;  %v986_v22 = vpop.f32.mrb[9].mxu1 }
 0x5c3   :  { %v987_v20 = vadd.f32 %v1079_v28, %v986_v22  ;;  %v1159_v5 = vpop.f32.mrb[10].mxu1 }
 0x5c4   :  { %v1019_v6 = vadd.f32 %v1253_v61, %v995_v43  ;;  %v998_v13 = vadd.f32 %v1159_v5, %v1079_v28  ;;  %v989_v36 = vpop.f32.mrb[11].mxu1 }
 0x5c5   :  { %v1017_v25 = vadd.f32 %v1254_v18, %v987_v20  ;;  %v990_v24 = vadd.f32 %v1079_v28, %v989_v36 }
 0x5c6   :  { %1027 = vst.msk [vmem:[#allocation14 + $0x10] sm:$0xff] %vm141_vm0, %v1019_v6  ;;  %v1020_v42 = vadd.f32 %v1255_v7, %v998_v13 }
 0x5c7   :  { %1025 = vst.msk [vmem:[#allocation14] sm:$0xff] %vm141_vm0, %v1017_v25  ;;  %v1018_v55 = vadd.f32 %v1256_v8, %v990_v24 }
 0x5c8   :  { %1028 = vst.msk [vmem:[#allocation14 + $0x18] sm:$0xff] %vm141_vm0, %v1020_v42 }
 0x5c9   :  { %1026 = vst.msk [vmem:[#allocation14 + $0x8] sm:$0xff] %vm141_vm0, %v1018_v55  ;;  %v1162_v10 = vpop.f32.mrb[12].mxu1 }
 0x5ca   :  { %v1011_v19 = vadd.f32 %v1162_v10, %v1079_v28  ;;  %v1002_v62 = vpop.f32.mrb[13].mxu1 }
 0x5cb   :  { %v1003_v1 = vadd.f32 %v1079_v28, %v1002_v62  ;;  %v1163_v16 = vpop.f32.mrb[14].mxu1 }
 0x5cc   :  { %v1023_v3 = vadd.f32 %v1257_v17, %v1011_v19  ;;  %v1014_v23 = vadd.f32 %v1163_v16, %v1079_v28  ;;  %v1005_v54 = vpop.f32.mrb[15].mxu1 }
 0x5cd   :  { %v1021_v4 = vadd.f32 %v1258_v59, %v1003_v1  ;;  %v1006_v34 = vadd.f32 %v1079_v28, %v1005_v54 }
 0x5ce   :  { %1031 = vst.msk [vmem:[#allocation14 + $0x30] sm:$0xff] %vm141_vm0, %v1023_v3  ;;  %v1024_v33 = vadd.f32 %v1259_v46, %v1014_v23 }
 0x5cf   :  { %1029 = vst.msk [vmem:[#allocation14 + $0x20] sm:$0xff] %vm141_vm0, %v1021_v4  ;;  %v1022_v26 = vadd.f32 %v1260_v0, %v1006_v34 }
 0x5d0   :  { %1032 = vst.msk [vmem:[#allocation14 + $0x38] sm:$0xff] %vm141_vm0, %v1024_v33 }
 0x5d1   :  { %1030 = vst.msk [vmem:[#allocation14 + $0x28] sm:$0xff] %vm141_vm0, %v1022_v26 }
 0x5d2   :  { %1426 = shalt.err (!%p1423_p4)
}
 0x5d3   :  { %s1427_s10 = scalar_lea.hbm %s2069_s13, 1024 }
 0x5d4   :  { %p1428_p5 = scmp.ne.s32.totalorder %s2069_s13, %s1427_s10  ;;  %p1431_p6 = scmp.lt.u32.totalorder %s1427_s10, %s2069_s13 }
 0x5d6   :  { %p1433_p7 = pnand %p1431_p6, %p1428_p5 }
 0x5d8   :  { %1436 = shalt.err (!%p1433_p7)
}
 0x5d9   :  { %s1458_s4 = smov 128   ;;  %s1459_s26 = smov 8  }
 0x5da   :  { %1044 = dma.vmem_to_hbm [thread:$0]  %s1039_s24, 1024, %s2069_s13, [#allocation4], %s1458_s4, %s1458_s4, %s1459_s26  }
 0x5db   :  { %1445 = dma.done.wait [#allocation4], 1024  }
 0x5dc   :  { %1446 = vsyncadd [#allocation4], 4294966272 }
 0x5dd   :  { %1048 = vsyncpa [#allocation3], 1 }
 0x5de   :  { %1049 = vsyncpa [#allocation6], 1 }
 0x5df   :  { %1050 = vsyncpa [#allocation9], 1 }
 0x5e0   :  { %1051 = vsyncpa [#allocation12], 1 }
 0x5e1   :  { %1052 = vsyncpa [#allocation4], 1 }

</bundles_post_ra>
